<compile_context>
chip_gen: v7x
topology: tpu7x:2x2x1
jax: 0.10.0
libtpu: 0.0.40
codegen_flags: <defaults>
</compile_context>

<pallas_src>
import functools

import jax
import jax.numpy as jnp
import numpy as np
from jax.experimental import pallas as pl
from jax.experimental.pallas import tpu as pltpu

# ----------------------------------------------------------------------------
# Model hyper-parameters (np.unique(Labels_name).shape[0] is not available in a
# self-contained script, so num_classes is fixed deterministically).
NUM_CLASSES = 12
KERNEL_SIZE = 4          # `kernelsize` ctor argument
C_IN = 28
C1 = 124
C2 = 31
HIDDEN = 2000
STRIDE1 = 2


def _round_up(x, m):
    return ((x + m - 1) // m) * m


# ----------------------------------------------------------------------------
# Pallas kernel (one batch tile per grid step):
#   in-kernel im2col -> conv1 (one K=112 dot) + ReLU + maxpool,
#   conv2 (1x1 dot) + ReLU, maxpool2 fused into the flat fc1 activation,
#   fc1 (one K=224 dot) + ReLU, fc2, log_softmax.
def mov1dcnn_kernel(xr_ref, w1_ref, b1_ref, w2_ref, b2_ref,
                    wfc1_ref, bfc1_ref, wfc2_ref, bfc2_ref, out_ref,
                    pbuf, fbuf, *, k, l1, p2):
    tn, lh, twoc = xr_ref.shape           # (TILE_N, l1+1, 2*C_in) bf16, stride-2 pairs
    l1p, kc = pbuf.shape[1], pbuf.shape[2]  # (32, 112): padded time, im2col K
    c1p = w1_ref.shape[1]                 # 128 (padded C1)
    c2p = w2_ref.shape[1]                 # 32  (padded C2, = per-tap lane stride)
    p1p = l1p // 2                        # 16

    # --- in-kernel im2col: tap pair j covers input rows [j, j+l1) of the
    #     (time/2, 2*C_in) view; lanes [j*2C, (j+1)*2C) of the patch buffer.
    #     Patch lane kk*C_in + c == x[n, c, 2t + kk], matching w1_mat rows.
    xr = xr_ref[...]                                       # (tn, lh, 2*C_in)
    for j in range(k // 2):
        pbuf[:, 0:l1, j * twoc:(j + 1) * twoc] = xr[:, j:j + l1, :]
    # pbuf row l1..l1p-1 is stale/unwritten; it only reaches h2 rows >= 2*p2,
    # which are never read below, so it cannot affect the output.

    # --- layer1: Conv1d(28->124, k, stride=2) as one matmul + ReLU + MaxPool ---
    h1 = jnp.dot(pbuf[...].reshape(tn * l1p, kc), w1_ref[...],
                 preferred_element_type=jnp.float32)
    h1 = jnp.maximum(h1 + b1_ref[...], 0.0).astype(jnp.bfloat16)
    h1 = h1.reshape(tn, p1p, 2, c1p)                       # pool pairs over time
    h1 = jnp.maximum(h1[:, :, 0, :], h1[:, :, 1, :])       # (tn, p1p, c1p) bf16

    # --- layer2: Conv1d(124->31, kernel_size=1) == matmul over channels ---
    h2 = jnp.dot(h1.reshape(tn * p1p, c1p), w2_ref[...],
                 preferred_element_type=jnp.float32)
    h2 = jnp.maximum(h2 + b2_ref[...], 0.0).astype(jnp.bfloat16)
    h2 = h2.reshape(tn, p1p, c2p)

    # --- MaxPool1d(2,2) fused with the channel-major->flat reorder: tap t of
    #     the fc1 activation occupies lanes [t*c2p, (t+1)*c2p).  Padded channel
    #     lane 31 is exactly zero (zero w2 column + zero bias pad). ---
    for t in range(p2):
        fbuf[:, t * c2p:(t + 1) * c2p] = jnp.maximum(h2[:, 2 * t, :],
                                                     h2[:, 2 * t + 1, :])

    # --- fc1: single K = p2*c2p dot (dropout1 is identity at inference) ---
    z1 = jnp.dot(fbuf[...], wfc1_ref[...], preferred_element_type=jnp.float32)
    z1 = jnp.maximum(z1 + bfc1_ref[...], 0.0)              # (tn, hidp) f32

    # --- fc2 (dropout2 identity) + log_softmax over the unpadded 12 classes ---
    z2 = jnp.dot(z1.astype(jnp.bfloat16), wfc2_ref[...],
                 preferred_element_type=jnp.float32) + bfc2_ref[...]
    m = jnp.max(z2, axis=1, keepdims=True)
    s = z2 - m
    out_ref[...] = s - jnp.log(jnp.sum(jnp.exp(s), axis=1, keepdims=True))


# ----------------------------------------------------------------------------
# Wrapper: layout plumbing (bf16 cast, transpose, time-pair fold, weight
# permutation/padding/bf16) plus the batch-tiled pallas_call.
@jax.jit
def mov1dcnn_forward(x_ncl, params):
    w1, b1, w2, b2, wfc1, bfc1, wfc2, bfc2 = params
    n, c_in, length = x_ncl.shape
    k = w1.shape[2]
    c1, c2 = w1.shape[0], w2.shape[0]
    hidden, ncls = wfc1.shape[0], wfc2.shape[0]
    assert k % 2 == 0 and STRIDE1 == 2, "pairs-layout im2col assumes stride 2, even k"

    l1 = (length - k) // STRIDE1 + 1          # conv1 output length (31)
    p1 = l1 // 2                              # pool1 output length (15)
    p2 = p1 // 2                              # pool2 output length (7)
    lh = (STRIDE1 * (l1 - 1) + k) // 2        # time-pair rows consumed (32)
    kc = k * c_in                             # im2col contraction size (112)
    l1p = _round_up(l1, 8)                    # padded conv1 time extent (32)
    c1p = _round_up(c1, 128)                  # 124 -> 128
    c2p = _round_up(c2, 8)                    # 31 -> 32 (per-tap lane stride)
    hidp = _round_up(hidden, 128)             # 2000 -> 2048
    kflat = p2 * c2p                          # fc1 contraction size (224)

    # Batch tiling: big tiles amortize the ~0.35us/step overhead; keep >=2 grid
    # steps when n > 128 so "parallel" can use both v7x TensorCores.
    if n >= 512:
        tile_n = 256
    elif n >= 128:
        tile_n = 128
    else:
        tile_n = _round_up(n, 8)
    n_pad = _round_up(n, tile_n)

    # Input: early bf16 cast, NCW -> NLC, trim to the exactly-consumed window,
    # zero-pad batch rows (sliced off below), fold time into stride-2 pairs so
    # the kernel's im2col is two plain sublane-shifted copies.
    x_nlc = jnp.transpose(x_ncl.astype(jnp.bfloat16), (0, 2, 1))[:, :2 * lh, :]
    if n_pad != n:
        x_nlc = jnp.pad(x_nlc, ((0, n_pad - n), (0, 0), (0, 0)))
    xr = x_nlc.reshape(n_pad, lh, 2 * c_in)                       # (n_pad, 32, 56)

    # conv1 weight as an im2col matmul matrix; row kk*C_in + c = w1[o, c, kk].
    w1_mat = jnp.transpose(w1, (2, 1, 0)).reshape(kc, c1)
    w1_mat = jnp.pad(w1_mat, ((0, 0), (0, c1p - c1))).astype(jnp.bfloat16)   # (112, 128)
    b1_row = jnp.pad(b1, (0, c1p - c1)).reshape(1, c1p)                      # zero pads
    # conv2 (1x1): (c1p, c2p) with zero rows/cols on pads -> padded channel 31 is 0.
    w2_mat = jnp.pad(w2[:, :, 0].T,
                     ((0, c1p - c1), (0, c2p - c2))).astype(jnp.bfloat16)    # (128, 32)
    b2_row = jnp.pad(b2, (0, c2p - c2)).reshape(1, c2p)
    # fc1: PyTorch flattens (N, C2, P2) channel-major (index c*p2 + t); reorganize
    # to the kernel's flat layout (index t*c2p + c), pad, and fold to one matrix.
    wfc1_3d = jnp.transpose(wfc1.reshape(hidden, c2, p2), (2, 1, 0))         # (p2, c2, hid)
    wfc1_3d = jnp.pad(wfc1_3d, ((0, 0), (0, c2p - c2), (0, hidp - hidden)))
    wfc1_flat = wfc1_3d.reshape(kflat, hidp).astype(jnp.bfloat16)            # (224, 2048)
    bfc1_row = jnp.pad(bfc1, (0, hidp - hidden)).reshape(1, hidp)            # zero pads
    wfc2_mat = jnp.pad(wfc2.T, ((0, hidp - hidden), (0, 0))).astype(jnp.bfloat16)  # (2048, 12)
    bfc2_row = bfc2.reshape(1, ncls)

    def resident(arr):
        nd = arr.ndim
        # Constant index_map => fetched once, VMEM-resident across grid steps.
        return pl.BlockSpec(arr.shape, lambda i, _nd=nd: (0,) * _nd)

    kern = functools.partial(mov1dcnn_kernel, k=k, l1=l1, p2=p2)
    out = pl.pallas_call(
        kern,
        out_shape=jax.ShapeDtypeStruct((n_pad, ncls), jnp.float32),
        grid=(n_pad // tile_n,),
        in_specs=[
            pl.BlockSpec((tile_n, lh, 2 * c_in), lambda i: (i, 0, 0)),
            resident(w1_mat), resident(b1_row),
            resident(w2_mat), resident(b2_row),
            resident(wfc1_flat), resident(bfc1_row),
            resident(wfc2_mat), resident(bfc2_row),
        ],
        out_specs=pl.BlockSpec((tile_n, ncls), lambda i: (i, 0)),
        scratch_shapes=[
            pltpu.VMEM((tile_n, l1p, kc), jnp.bfloat16),   # im2col patch buffer
            pltpu.VMEM((tile_n, kflat), jnp.bfloat16),     # flat fc1 activations
        ],
        compiler_params=pltpu.CompilerParams(
            dimension_semantics=("parallel",),
            vmem_limit_bytes=48 * 1024 * 1024),
    )(xr, w1_mat, b1_row, w2_mat, b2_row,
      wfc1_flat, bfc1_row, wfc2_mat, bfc2_row)

    return out[:n]


# ----------------------------------------------------------------------------
# Pure-JAX reference mirroring the PyTorch forward (NCW layout, f32 HIGHEST).
def reference_forward(x_ncl, params):
    w1, b1, w2, b2, wfc1, bfc1, wfc2, bfc2 = params
    hi = jax.lax.Precision.HIGHEST

    y = jax.lax.conv_general_dilated(
        x_ncl, w1, (STRIDE1,), "VALID",
        dimension_numbers=("NCH", "OIH", "NCH"), precision=hi)
    y = jnp.maximum(y + b1[None, :, None], 0.0)
    n, c, l = y.shape
    p = l // 2
    y = y[:, :, :2 * p].reshape(n, c, p, 2).max(axis=3)

    y = jax.lax.conv_general_dilated(
        y, w2, (1,), "VALID",
        dimension_numbers=("NCH", "OIH", "NCH"), precision=hi)
    y = jnp.maximum(y + b2[None, :, None], 0.0)
    n, c, l = y.shape
    p = l // 2
    y = y[:, :, :2 * p].reshape(n, c, p, 2).max(axis=3)

    y = y.reshape(n, -1)
    y = jnp.maximum(jnp.dot(y, wfc1.T, precision=hi) + bfc1, 0.0)
    y = jnp.dot(y, wfc2.T, precision=hi) + bfc2
    return jax.nn.log_softmax(y, axis=1)


# ----------------------------------------------------------------------------
def init_params(key, in_fc1_size):
    ks = jax.random.split(key, 8)
    scale = 0.05
    w1 = scale * jax.random.normal(ks[0], (C1, C_IN, KERNEL_SIZE), jnp.float32)
    b1 = scale * jax.random.normal(ks[1], (C1,), jnp.float32)
    w2 = scale * jax.random.normal(ks[2], (C2, C1, 1), jnp.float32)
    b2 = scale * jax.random.normal(ks[3], (C2,), jnp.float32)
    wfc1 = scale * jax.random.normal(ks[4], (HIDDEN, in_fc1_size), jnp.float32)
    bfc1 = scale * jax.random.normal(ks[5], (HIDDEN,), jnp.float32)
    wfc2 = scale * jax.random.normal(ks[6], (NUM_CLASSES, HIDDEN), jnp.float32)
    bfc2 = scale * jax.random.normal(ks[7], (NUM_CLASSES,), jnp.float32)
    return (w1, b1, w2, b2, wfc1, bfc1, wfc2, bfc2)


if __name__ == "__main__":
    batch = 2
    seq_len = 64                                  # input time steps
    l1 = (seq_len - KERNEL_SIZE) // STRIDE1 + 1   # 31
    p1 = l1 // 2                                  # 15
    p2 = p1 // 2                                  # 7
    in_fc1_size = C2 * p2                         # 217

    key = jax.random.PRNGKey(0)
    kx, kp = jax.random.split(key)
    x = jax.random.normal(kx, (batch, C_IN, seq_len), jnp.float32)   # PyTorch NCW
    params = init_params(kp, in_fc1_size)

    out = mov1dcnn_forward(x, params)
    out = jax.block_until_ready(out)

    ref = jax.block_until_ready(reference_forward(x, params))
    # Tolerance is deliberately loose enough to cover bf16-weight / bf16-input
    # MXU matmuls with f32 accumulation vs. the f32 HIGHEST reference.
    np.testing.assert_allclose(np.asarray(out), np.asarray(ref), rtol=2e-2, atol=2e-2)

    print("KERNEL_OK")
</pallas_src>

<mosaic_0001>
module attributes {stable_mosaic.version = 11 : i64} {
  func.func @mov1dcnn_kernel(%arg0: i32, %arg1: memref<8x32x56xbf16, #tpu.memory_space<vmem>>, %arg2: memref<112x128xbf16, #tpu.memory_space<vmem>>, %arg3: memref<1x128xf32, #tpu.memory_space<vmem>>, %arg4: memref<128x32xbf16, #tpu.memory_space<vmem>>, %arg5: memref<1x32xf32, #tpu.memory_space<vmem>>, %arg6: memref<224x2048xbf16, #tpu.memory_space<vmem>>, %arg7: memref<1x2048xf32, #tpu.memory_space<vmem>>, %arg8: memref<2048x12xbf16, #tpu.memory_space<vmem>>, %arg9: memref<1x12xf32, #tpu.memory_space<vmem>>, %arg10: memref<8x12xf32, #tpu.memory_space<vmem>>, %arg11: memref<8x32x112xbf16, #tpu.memory_space<vmem>>, %arg12: memref<8x224xbf16, #tpu.memory_space<vmem>>) attributes {dimension_semantics = [#tpu.dimension_semantics<parallel>], iteration_bounds = array<i64: 1>, scalar_prefetch = 0 : i64, scratch_operands = 2 : i64, tpu.core_type = #tpu.core_type<tc>, window_params = [{transform_indices = @transform_0, window_bounds = array<i64: 8, 32, 56>}, {pipeline_mode = #tpu.pipeline_mode<synchronous>, transform_indices = @transform_1, window_bounds = array<i64: 112, 128>}, {pipeline_mode = #tpu.pipeline_mode<synchronous>, transform_indices = @transform_2, window_bounds = array<i64: 1, 128>}, {pipeline_mode = #tpu.pipeline_mode<synchronous>, transform_indices = @transform_3, window_bounds = array<i64: 128, 32>}, {pipeline_mode = #tpu.pipeline_mode<synchronous>, transform_indices = @transform_4, window_bounds = array<i64: 1, 32>}, {pipeline_mode = #tpu.pipeline_mode<synchronous>, transform_indices = @transform_5, window_bounds = array<i64: 224, 2048>}, {pipeline_mode = #tpu.pipeline_mode<synchronous>, transform_indices = @transform_6, window_bounds = array<i64: 1, 2048>}, {pipeline_mode = #tpu.pipeline_mode<synchronous>, transform_indices = @transform_7, window_bounds = array<i64: 2048, 12>}, {pipeline_mode = #tpu.pipeline_mode<synchronous>, transform_indices = @transform_8, window_bounds = array<i64: 1, 12>}, {transform_indices = @transform_9, window_bounds = array<i64: 8, 12>}]} {
    %c0 = arith.constant 0 : index
    %c0_0 = arith.constant 0 : index
    %c0_1 = arith.constant 0 : index
    %0 = vector.load %arg1[%c0, %c0_0, %c0_1] : memref<8x32x56xbf16, #tpu.memory_space<vmem>>, vector<8x32x56xbf16>
    %1 = vector.extract_strided_slice %0 {offsets = [0, 0, 0], sizes = [8, 31, 56], strides = [1, 1, 1]} : vector<8x32x56xbf16> to vector<8x31x56xbf16>
    %c0_2 = arith.constant 0 : index
    %c0_3 = arith.constant 0 : index
    %c0_4 = arith.constant 0 : index
    %2 = vector.load %arg11[%c0_2, %c0_3, %c0_4] : memref<8x32x112xbf16, #tpu.memory_space<vmem>>, vector<8x31x56xbf16>
    tpu.vector_store %arg11[%c0_2, %c0_3, %c0_4], %1 {strides = array<i32>} : memref<8x32x112xbf16, #tpu.memory_space<vmem>>, vector<8x31x56xbf16>,
    %3 = vector.extract_strided_slice %0 {offsets = [0, 1, 0], sizes = [8, 31, 56], strides = [1, 1, 1]} : vector<8x32x56xbf16> to vector<8x31x56xbf16>
    %c0_5 = arith.constant 0 : index
    %c0_6 = arith.constant 0 : index
    %c56 = arith.constant 56 : index
    %4 = vector.load %arg11[%c0_5, %c0_6, %c56] : memref<8x32x112xbf16, #tpu.memory_space<vmem>>, vector<8x31x56xbf16>
    tpu.vector_store %arg11[%c0_5, %c0_6, %c56], %3 {strides = array<i32>} : memref<8x32x112xbf16, #tpu.memory_space<vmem>>, vector<8x31x56xbf16>,
    %c0_7 = arith.constant 0 : index
    %c0_8 = arith.constant 0 : index
    %c0_9 = arith.constant 0 : index
    %5 = vector.load %arg11[%c0_7, %c0_8, %c0_9] : memref<8x32x112xbf16, #tpu.memory_space<vmem>>, vector<8x32x112xbf16>
    %6 = vector.shape_cast %5 : vector<8x32x112xbf16> to vector<256x112xbf16>
    %c0_10 = arith.constant 0 : index
    %c0_11 = arith.constant 0 : index
    %7 = vector.load %arg2[%c0_10, %c0_11] : memref<112x128xbf16, #tpu.memory_space<vmem>>, vector<112x128xbf16>
    %cst = arith.constant dense<0.000000e+00> : vector<256x128xf32>
    %8 = tpu.matmul %6, %7, %cst {dimension_numbers = #tpu.dot_dimension_numbers<[1], [0], [0], [1], [0, 0, 1, 1], [], []>} : vector<256x112xbf16>, vector<112x128xbf16>, vector<256x128xf32> -> vector<256x128xf32>
    %c0_12 = arith.constant 0 : index
    %c0_13 = arith.constant 0 : index
    %9 = vector.load %arg3[%c0_12, %c0_13] : memref<1x128xf32, #tpu.memory_space<vmem>>, vector<1x128xf32>
    %10 = vector.broadcast %9 : vector<1x128xf32> to vector<256x128xf32>
    %11 = arith.addf %8, %10 : vector<256x128xf32>
    %cst_14 = arith.constant 0.000000e+00 : f32
    %12 = vector.broadcast %cst_14 : f32 to vector<256x128xf32>
    %13 = arith.maximumf %11, %12 : vector<256x128xf32>
    %14 = arith.truncf %13 : vector<256x128xf32> to vector<256x128xbf16>
    %15 = vector.shape_cast %14 : vector<256x128xbf16> to vector<8x16x2x128xbf16>
    %16 = vector.extract_strided_slice %15 {offsets = [0, 0, 0, 0], sizes = [8, 16, 1, 128], strides = [1, 1, 1, 1]} : vector<8x16x2x128xbf16> to vector<8x16x1x128xbf16>
    %17 = vector.shape_cast %16 : vector<8x16x1x128xbf16> to vector<8x16x128xbf16>
    %18 = vector.extract_strided_slice %15 {offsets = [0, 0, 1, 0], sizes = [8, 16, 1, 128], strides = [1, 1, 1, 1]} : vector<8x16x2x128xbf16> to vector<8x16x1x128xbf16>
    %19 = vector.shape_cast %18 : vector<8x16x1x128xbf16> to vector<8x16x128xbf16>
    %20 = arith.maximumf %17, %19 : vector<8x16x128xbf16>
    %21 = vector.shape_cast %20 : vector<8x16x128xbf16> to vector<128x128xbf16>
    %c0_15 = arith.constant 0 : index
    %c0_16 = arith.constant 0 : index
    %22 = vector.load %arg4[%c0_15, %c0_16] : memref<128x32xbf16, #tpu.memory_space<vmem>>, vector<128x32xbf16>
    %cst_17 = arith.constant dense<0.000000e+00> : vector<128x32xf32>
    %23 = tpu.matmul %21, %22, %cst_17 {dimension_numbers = #tpu.dot_dimension_numbers<[1], [0], [0], [1], [0, 0, 1, 1], [], []>} : vector<128x128xbf16>, vector<128x32xbf16>, vector<128x32xf32> -> vector<128x32xf32>
    %c0_18 = arith.constant 0 : index
    %c0_19 = arith.constant 0 : index
    %24 = vector.load %arg5[%c0_18, %c0_19] : memref<1x32xf32, #tpu.memory_space<vmem>>, vector<1x32xf32>
    %25 = vector.broadcast %24 : vector<1x32xf32> to vector<128x32xf32>
    %26 = arith.addf %23, %25 : vector<128x32xf32>
    %cst_20 = arith.constant 0.000000e+00 : f32
    %27 = vector.broadcast %cst_20 : f32 to vector<128x32xf32>
    %28 = arith.maximumf %26, %27 : vector<128x32xf32>
    %29 = arith.truncf %28 : vector<128x32xf32> to vector<128x32xbf16>
    %30 = vector.shape_cast %29 : vector<128x32xbf16> to vector<8x16x32xbf16>
    %31 = vector.extract_strided_slice %30 {offsets = [0, 0, 0], sizes = [8, 1, 32], strides = [1, 1, 1]} : vector<8x16x32xbf16> to vector<8x1x32xbf16>
    %32 = vector.shape_cast %31 : vector<8x1x32xbf16> to vector<8x32xbf16>
    %33 = vector.extract_strided_slice %30 {offsets = [0, 1, 0], sizes = [8, 1, 32], strides = [1, 1, 1]} : vector<8x16x32xbf16> to vector<8x1x32xbf16>
    %34 = vector.shape_cast %33 : vector<8x1x32xbf16> to vector<8x32xbf16>
    %35 = arith.maximumf %32, %34 : vector<8x32xbf16>
    %c0_21 = arith.constant 0 : index
    %c0_22 = arith.constant 0 : index
    %36 = vector.load %arg12[%c0_21, %c0_22] : memref<8x224xbf16, #tpu.memory_space<vmem>>, vector<8x32xbf16>
    tpu.vector_store %arg12[%c0_21, %c0_22], %35 {strides = array<i32>} : memref<8x224xbf16, #tpu.memory_space<vmem>>, vector<8x32xbf16>,
    %37 = vector.extract_strided_slice %30 {offsets = [0, 2, 0], sizes = [8, 1, 32], strides = [1, 1, 1]} : vector<8x16x32xbf16> to vector<8x1x32xbf16>
    %38 = vector.shape_cast %37 : vector<8x1x32xbf16> to vector<8x32xbf16>
    %39 = vector.extract_strided_slice %30 {offsets = [0, 3, 0], sizes = [8, 1, 32], strides = [1, 1, 1]} : vector<8x16x32xbf16> to vector<8x1x32xbf16>
    %40 = vector.shape_cast %39 : vector<8x1x32xbf16> to vector<8x32xbf16>
    %41 = arith.maximumf %38, %40 : vector<8x32xbf16>
    %c0_23 = arith.constant 0 : index
    %c32 = arith.constant 32 : index
    %42 = vector.load %arg12[%c0_23, %c32] : memref<8x224xbf16, #tpu.memory_space<vmem>>, vector<8x32xbf16>
    tpu.vector_store %arg12[%c0_23, %c32], %41 {strides = array<i32>} : memref<8x224xbf16, #tpu.memory_space<vmem>>, vector<8x32xbf16>,
    %43 = vector.extract_strided_slice %30 {offsets = [0, 4, 0], sizes = [8, 1, 32], strides = [1, 1, 1]} : vector<8x16x32xbf16> to vector<8x1x32xbf16>
    %44 = vector.shape_cast %43 : vector<8x1x32xbf16> to vector<8x32xbf16>
    %45 = vector.extract_strided_slice %30 {offsets = [0, 5, 0], sizes = [8, 1, 32], strides = [1, 1, 1]} : vector<8x16x32xbf16> to vector<8x1x32xbf16>
    %46 = vector.shape_cast %45 : vector<8x1x32xbf16> to vector<8x32xbf16>
    %47 = arith.maximumf %44, %46 : vector<8x32xbf16>
    %c0_24 = arith.constant 0 : index
    %c64 = arith.constant 64 : index
    %48 = vector.load %arg12[%c0_24, %c64] : memref<8x224xbf16, #tpu.memory_space<vmem>>, vector<8x32xbf16>
    tpu.vector_store %arg12[%c0_24, %c64], %47 {strides = array<i32>} : memref<8x224xbf16, #tpu.memory_space<vmem>>, vector<8x32xbf16>,
    %49 = vector.extract_strided_slice %30 {offsets = [0, 6, 0], sizes = [8, 1, 32], strides = [1, 1, 1]} : vector<8x16x32xbf16> to vector<8x1x32xbf16>
    %50 = vector.shape_cast %49 : vector<8x1x32xbf16> to vector<8x32xbf16>
    %51 = vector.extract_strided_slice %30 {offsets = [0, 7, 0], sizes = [8, 1, 32], strides = [1, 1, 1]} : vector<8x16x32xbf16> to vector<8x1x32xbf16>
    %52 = vector.shape_cast %51 : vector<8x1x32xbf16> to vector<8x32xbf16>
    %53 = arith.maximumf %50, %52 : vector<8x32xbf16>
    %c0_25 = arith.constant 0 : index
    %c96 = arith.constant 96 : index
    %54 = vector.load %arg12[%c0_25, %c96] : memref<8x224xbf16, #tpu.memory_space<vmem>>, vector<8x32xbf16>
    tpu.vector_store %arg12[%c0_25, %c96], %53 {strides = array<i32>} : memref<8x224xbf16, #tpu.memory_space<vmem>>, vector<8x32xbf16>,
    %55 = vector.extract_strided_slice %30 {offsets = [0, 8, 0], sizes = [8, 1, 32], strides = [1, 1, 1]} : vector<8x16x32xbf16> to vector<8x1x32xbf16>
    %56 = vector.shape_cast %55 : vector<8x1x32xbf16> to vector<8x32xbf16>
    %57 = vector.extract_strided_slice %30 {offsets = [0, 9, 0], sizes = [8, 1, 32], strides = [1, 1, 1]} : vector<8x16x32xbf16> to vector<8x1x32xbf16>
    %58 = vector.shape_cast %57 : vector<8x1x32xbf16> to vector<8x32xbf16>
    %59 = arith.maximumf %56, %58 : vector<8x32xbf16>
    %c0_26 = arith.constant 0 : index
    %c128 = arith.constant 128 : index
    %60 = vector.load %arg12[%c0_26, %c128] : memref<8x224xbf16, #tpu.memory_space<vmem>>, vector<8x32xbf16>
    tpu.vector_store %arg12[%c0_26, %c128], %59 {strides = array<i32>} : memref<8x224xbf16, #tpu.memory_space<vmem>>, vector<8x32xbf16>,
    %61 = vector.extract_strided_slice %30 {offsets = [0, 10, 0], sizes = [8, 1, 32], strides = [1, 1, 1]} : vector<8x16x32xbf16> to vector<8x1x32xbf16>
    %62 = vector.shape_cast %61 : vector<8x1x32xbf16> to vector<8x32xbf16>
    %63 = vector.extract_strided_slice %30 {offsets = [0, 11, 0], sizes = [8, 1, 32], strides = [1, 1, 1]} : vector<8x16x32xbf16> to vector<8x1x32xbf16>
    %64 = vector.shape_cast %63 : vector<8x1x32xbf16> to vector<8x32xbf16>
    %65 = arith.maximumf %62, %64 : vector<8x32xbf16>
    %c0_27 = arith.constant 0 : index
    %c160 = arith.constant 160 : index
    %66 = vector.load %arg12[%c0_27, %c160] : memref<8x224xbf16, #tpu.memory_space<vmem>>, vector<8x32xbf16>
    tpu.vector_store %arg12[%c0_27, %c160], %65 {strides = array<i32>} : memref<8x224xbf16, #tpu.memory_space<vmem>>, vector<8x32xbf16>,
    %67 = vector.extract_strided_slice %30 {offsets = [0, 12, 0], sizes = [8, 1, 32], strides = [1, 1, 1]} : vector<8x16x32xbf16> to vector<8x1x32xbf16>
    %68 = vector.shape_cast %67 : vector<8x1x32xbf16> to vector<8x32xbf16>
    %69 = vector.extract_strided_slice %30 {offsets = [0, 13, 0], sizes = [8, 1, 32], strides = [1, 1, 1]} : vector<8x16x32xbf16> to vector<8x1x32xbf16>
    %70 = vector.shape_cast %69 : vector<8x1x32xbf16> to vector<8x32xbf16>
    %71 = arith.maximumf %68, %70 : vector<8x32xbf16>
    %c0_28 = arith.constant 0 : index
    %c192 = arith.constant 192 : index
    %72 = vector.load %arg12[%c0_28, %c192] : memref<8x224xbf16, #tpu.memory_space<vmem>>, vector<8x32xbf16>
    tpu.vector_store %arg12[%c0_28, %c192], %71 {strides = array<i32>} : memref<8x224xbf16, #tpu.memory_space<vmem>>, vector<8x32xbf16>,
    %c0_29 = arith.constant 0 : index
    %c0_30 = arith.constant 0 : index
    %73 = vector.load %arg12[%c0_29, %c0_30] : memref<8x224xbf16, #tpu.memory_space<vmem>>, vector<8x224xbf16>
    %c0_31 = arith.constant 0 : index
    %c0_32 = arith.constant 0 : index
    %74 = vector.load %arg6[%c0_31, %c0_32] : memref<224x2048xbf16, #tpu.memory_space<vmem>>, vector<224x2048xbf16>
    %cst_33 = arith.constant dense<0.000000e+00> : vector<8x2048xf32>
    %75 = tpu.matmul %73, %74, %cst_33 {dimension_numbers = #tpu.dot_dimension_numbers<[1], [0], [0], [1], [0, 0, 1, 1], [], []>} : vector<8x224xbf16>, vector<224x2048xbf16>, vector<8x2048xf32> -> vector<8x2048xf32>
    %c0_34 = arith.constant 0 : index
    %c0_35 = arith.constant 0 : index
    %76 = vector.load %arg7[%c0_34, %c0_35] : memref<1x2048xf32, #tpu.memory_space<vmem>>, vector<1x2048xf32>
    %77 = vector.broadcast %76 : vector<1x2048xf32> to vector<8x2048xf32>
    %78 = arith.addf %75, %77 : vector<8x2048xf32>
    %cst_36 = arith.constant 0.000000e+00 : f32
    %79 = vector.broadcast %cst_36 : f32 to vector<8x2048xf32>
    %80 = arith.maximumf %78, %79 : vector<8x2048xf32>
    %81 = arith.truncf %80 : vector<8x2048xf32> to vector<8x2048xbf16>
    %c0_37 = arith.constant 0 : index
    %c0_38 = arith.constant 0 : index
    %82 = vector.load %arg8[%c0_37, %c0_38] : memref<2048x12xbf16, #tpu.memory_space<vmem>>, vector<2048x12xbf16>
    %cst_39 = arith.constant dense<0.000000e+00> : vector<8x12xf32>
    %83 = tpu.matmul %81, %82, %cst_39 {dimension_numbers = #tpu.dot_dimension_numbers<[1], [0], [0], [1], [0, 0, 1, 1], [], []>} : vector<8x2048xbf16>, vector<2048x12xbf16>, vector<8x12xf32> -> vector<8x12xf32>
    %c0_40 = arith.constant 0 : index
    %c0_41 = arith.constant 0 : index
    %84 = vector.load %arg9[%c0_40, %c0_41] : memref<1x12xf32, #tpu.memory_space<vmem>>, vector<1x12xf32>
    %85 = vector.broadcast %84 : vector<1x12xf32> to vector<8x12xf32>
    %86 = arith.addf %83, %85 : vector<8x12xf32>
    %cst_42 = arith.constant dense<0xFF800000> : vector<8xf32>
    %87 = vector.multi_reduction <maximumf>, %86, %cst_42 [1] : vector<8x12xf32> to vector<8xf32>
    %88 = vector.shape_cast %87 : vector<8xf32> to vector<8x1xf32>
    %89 = vector.broadcast %88 : vector<8x1xf32> to vector<8x12xf32>
    %90 = arith.subf %86, %89 : vector<8x12xf32>
    %91 = math.exp %90 : vector<8x12xf32>
    %cst_43 = arith.constant dense<0.000000e+00> : vector<8xf32>
    %92 = vector.multi_reduction <add>, %91, %cst_43 [1] : vector<8x12xf32> to vector<8xf32>
    %93 = vector.shape_cast %92 : vector<8xf32> to vector<8x1xf32>
    %94 = math.log %93 : vector<8x1xf32>
    %95 = vector.broadcast %94 : vector<8x1xf32> to vector<8x12xf32>
    %96 = arith.subf %90, %95 : vector<8x12xf32>
    %c0_44 = arith.constant 0 : index
    %c0_45 = arith.constant 0 : index
    %97 = vector.load %arg10[%c0_44, %c0_45] : memref<8x12xf32, #tpu.memory_space<vmem>>, vector<8x12xf32>
    tpu.vector_store %arg10[%c0_44, %c0_45], %96 {strides = array<i32>} : memref<8x12xf32, #tpu.memory_space<vmem>>, vector<8x12xf32>,
    return
  }
  func.func @transform_0(%arg0: i32) -> (i32, i32, i32) {
    %c0_i32 = arith.constant 0 : i32
    %c0_i32_0 = arith.constant 0 : i32
    %c0_i32_1 = arith.constant 0 : i32
    return %arg0, %c0_i32, %c0_i32_0 : i32, i32, i32
  }
  func.func @transform_1(%arg0: i32) -> (i32, i32) {
    %c0_i32 = arith.constant 0 : i32
    %c0_i32_0 = arith.constant 0 : i32
    %c0_i32_1 = arith.constant 0 : i32
    return %c0_i32, %c0_i32_0 : i32, i32
  }
  func.func @transform_2(%arg0: i32) -> (i32, i32) {
    %c0_i32 = arith.constant 0 : i32
    %c0_i32_0 = arith.constant 0 : i32
    %c0_i32_1 = arith.constant 0 : i32
    return %c0_i32, %c0_i32_0 : i32, i32
  }
  func.func @transform_3(%arg0: i32) -> (i32, i32) {
    %c0_i32 = arith.constant 0 : i32
    %c0_i32_0 = arith.constant 0 : i32
    %c0_i32_1 = arith.constant 0 : i32
    return %c0_i32, %c0_i32_0 : i32, i32
  }
  func.func @transform_4(%arg0: i32) -> (i32, i32) {
    %c0_i32 = arith.constant 0 : i32
    %c0_i32_0 = arith.constant 0 : i32
    %c0_i32_1 = arith.constant 0 : i32
    return %c0_i32, %c0_i32_0 : i32, i32
  }
  func.func @transform_5(%arg0: i32) -> (i32, i32) {
    %c0_i32 = arith.constant 0 : i32
    %c0_i32_0 = arith.constant 0 : i32
    %c0_i32_1 = arith.constant 0 : i32
    return %c0_i32, %c0_i32_0 : i32, i32
  }
  func.func @transform_6(%arg0: i32) -> (i32, i32) {
    %c0_i32 = arith.constant 0 : i32
    %c0_i32_0 = arith.constant 0 : i32
    %c0_i32_1 = arith.constant 0 : i32
    return %c0_i32, %c0_i32_0 : i32, i32
  }
  func.func @transform_7(%arg0: i32) -> (i32, i32) {
    %c0_i32 = arith.constant 0 : i32
    %c0_i32_0 = arith.constant 0 : i32
    %c0_i32_1 = arith.constant 0 : i32
    return %c0_i32, %c0_i32_0 : i32, i32
  }
  func.func @transform_8(%arg0: i32) -> (i32, i32) {
    %c0_i32 = arith.constant 0 : i32
    %c0_i32_0 = arith.constant 0 : i32
    %c0_i32_1 = arith.constant 0 : i32
    return %c0_i32, %c0_i32_0 : i32, i32
  }
  func.func @transform_9(%arg0: i32) -> (i32, i32) {
    %c0_i32 = arith.constant 0 : i32
    %c0_i32_0 = arith.constant 0 : i32
    return %arg0, %c0_i32 : i32, i32
  }
}

</mosaic_0001>

<bundles_post_ra>
// kernel: mov1dcnn_forward.1
= control target key start
LH: loop header
LB: loop body
LE: loop exit
PB: predicated region body
PF: predicated region fallthrough
CT: control target
= control target key end

     0   :  { %vm161_vm0 = vcmask 457728   ;;  %v9536_v0 = vld [vmem:[#allocation2 + $0x8] sm:$0xff]  ;;  %vm164_vm1 = vsmask.f32 7424  ;;  %s9481_s23 = smov 56   ;;  %vm365_vm3 = vcmask 916928   ;;  %s12377_s0 = inlined_call_operand.vmem [shape: bf16[8,32,56], index: 0, kind: input, shape index: {}]   ;;  %s12378_s1 = inlined_call_operand.vmem [shape: bf16[112,128], index: 1, kind: input, shape index: {}]   ;;  %s12379_s3 = inlined_call_operand.vmem [shape: bf16[128,32], index: 3, kind: input, shape index: {}]   ;;  %s12380_s2 = inlined_call_operand.vmem [shape: f32[1,128], index: 2, kind: input, shape index: {}]   ;;  %s12381_s4 = inlined_call_operand.vmem [shape: f32[1,32], index: 4, kind: input, shape index: {}]   ;;  %s12382_s5 = inlined_call_operand.vmem [shape: bf16[224,2048], index: 5, kind: input, shape index: {}]   ;;  %s12383_s7 = inlined_call_operand.vmem [shape: bf16[2048,12], index: 7, kind: input, shape index: {}]   ;;  %s12384_s6 = inlined_call_operand.vmem [shape: f32[1,2048], index: 6, kind: input, shape index: {}]   ;;  %s12385_s8 = inlined_call_operand.vmem [shape: f32[1,12], index: 8, kind: input, shape index: {}]   ;;  %s12386_s9 = inlined_call_operand.vmem [shape: f32[8,12], index: 9, kind: output, shape index: {}]  }
   0x1   :  { %v9315_v1 = vld [vmem:[%s12377_s0] sm:$0xff]   ;;  %v9544_v2 = vld [vmem:[%s12377_s0 + $0x8] sm:$0xff]   ;;  %vm9550_vm2 = vmand %vm161_vm0, %vm164_vm1  ;;  %vm479_vm5 = vcmask 916480   ;;  %vm4633_vm6 = vcmask 1041409   ;;  %vm4636_vm7 = vcmask 1042434   ;;  %vm4639_vm8 = vcmask 1043459  }
   0x2   :  { %v198_v3 = vshrl.u32 %v9315_v1, 16  ;;  %v200_v4 = vshll.u32 %v9315_v1, 16  ;;  %v205_v5 = vshll.u32 %v9544_v2, 16  ;;  %162 = vst.msk [vmem:[#allocation2] sm:$0xff] %vm161_vm0, %v9315_v1  ;;  %v9317_v7 = vld [vmem:[%s12377_s0 + $0x10] sm:$0xff]   ;;  %v9560_v8 = vld [vmem:[%s12377_s0 + $0x18] sm:$0xff]   ;;  %v167_v9 = vsel %vm9550_vm2, %v9544_v2, %v9536_v0  ;;  %vm9717_vm4 = vmand %vm365_vm3, %vm164_vm1 }
   0x3   :  { %v9569_v12 = vld [vmem:[%s12377_s0 + $0x28] sm:$0xff]   ;;  %v9320_v13 = vld [vmem:[%s12377_s0 + $0x20] sm:$0xff]   ;;  %v209_v14 = vshrl.u32 %v9544_v2, 16  ;;  %v213_v15 = vshrl.u32 %v9317_v7, 16  ;;  %v215_v16 = vshll.u32 %v9317_v7, 16  ;;  %v220_v17 = vshll.u32 %v9560_v8, 16 }
   0x4   :  { %v202_v10 = vrot.slane %v200_v4, 1  ;;  %v207_v11 = vrot.slane %v205_v5, 1  ;;  %169 = vst.msk [vmem:[#allocation2 + $0x10] sm:$0xff] %vm161_vm0, %v9317_v7  ;;  %v224_v19 = vshrl.u32 %v9560_v8, 16  ;;  %v235_v20 = vshll.u32 %v9569_v12, 16  ;;  %173 = vst.msk [vmem:[#allocation2 + $0x20] sm:$0xff] %vm161_vm0, %v9320_v13 }
   0x5   :  { %v217_v21 = vrot.slane %v215_v16, 1  ;;  %v222_v22 = vrot.slane %v220_v17, 1  ;;  %v228_v23 = vshrl.u32 %v9320_v13, 16  ;;  %v230_v24 = vshll.u32 %v9320_v13, 16  ;;  %v9585_v27 = vld [vmem:[%s12377_s0 + $0x38] sm:$0xff]   ;;  %v9322_v31 = vld [vmem:[%s12377_s0 + $0x30] sm:$0xff]  }
   0x6   :  { %v203_v18 = vor.u32 %v202_v10, %v198_v3  ;;  %v239_v26 = vshrl.u32 %v9569_v12, 16  ;;  %v211_v28 = vor.u32 %v209_v14, %v207_v11  ;;  %v237_v32 = vrot.slane %v235_v20, 1  ;;  %v9595_v34 = vld [vmem:[%s12377_s0 + $0x48] sm:$0xff]   ;;  %v9324_v35 = vld [vmem:[%s12377_s0 + $0x40] sm:$0xff]   ;;  %177 = vst.msk [vmem:[#allocation2 + $0x30] sm:$0xff] %vm161_vm0, %v9322_v31  ;;  %v9609_v44 = vld [vmem:[%s12377_s0 + $0x58] sm:$0xff]  }
   0x7   :  { %v218_v29 = vor.u32 %v217_v21, %v213_v15  ;;  %v232_v30 = vrot.slane %v230_v24, 1  ;;  %v250_v33 = vshll.u32 %v9585_v27, 16  ;;  %v243_v38 = vshrl.u32 %v9322_v31, 16  ;;  %181 = vst.msk [vmem:[#allocation2 + $0x40] sm:$0xff] %vm161_vm0, %v9324_v35  ;;  %v9326_v45 = vld [vmem:[%s12377_s0 + $0x50] sm:$0xff]   ;;  %v9618_v52 = vld [vmem:[%s12377_s0 + $0x68] sm:$0xff]  }
   0x8   :  { %v208_v25 = vsel %vm164_vm1, %v203_v18, %v207_v11  ;;  %v245_v39 = vshll.u32 %v9322_v31, 16  ;;  %v226_v40 = vor.u32 %v224_v19, %v222_v22  ;;  %v265_v41 = vshll.u32 %v9595_v34, 16  ;;  %v9328_v53 = vld [vmem:[%s12377_s0 + $0x60] sm:$0xff]   ;;  %185 = vst.msk [vmem:[#allocation2 + $0x50] sm:$0xff] %vm161_vm0, %v9326_v45  ;;  %v9635_v3 = vld [vmem:[%s12377_s0 + $0x78] sm:$0xff]   ;;  %v9330_v7 = vld [vmem:[%s12377_s0 + $0x70] sm:$0xff]  }
   0x9   :  { %317 = vrot.lane.b32.xlu0 %v208_v25, %s9481_s23  ;;  %v223_v36 = vsel %vm164_vm1, %v218_v29, %v222_v22  ;;  %v233_v37 = vor.u32 %v232_v30, %v228_v23  ;;  %v260_v43 = vshll.u32 %v9324_v35, 16  ;;  %v252_v47 = vrot.slane %v250_v33, 1  ;;  %189 = vst.msk [vmem:[#allocation2 + $0x60] sm:$0xff] %vm161_vm0, %v9328_v53  ;;  %v9331_v11 = vld [vmem:[%s12378_s1] sm:$0xff]   ;;  %v9332_v17 = vld [vmem:[%s12378_s1 + $0x8] sm:$0xff]   ;;  %193 = vst.msk [vmem:[#allocation2 + $0x70] sm:$0xff] %vm161_vm0, %v9330_v7 }
   0xa   :  { %321 = vrot.lane.b32.xlu1 %v223_v36, %s9481_s23  ;;  %v247_v42 = vrot.slane %v245_v39, 1  ;;  %v258_v48 = vshrl.u32 %v9324_v35, 16  ;;  %v241_v49 = vor.u32 %v239_v26, %v237_v32  ;;  %v254_v54 = vshrl.u32 %v9585_v27, 16  ;;  %9232 = vmatprep.subr.bf16.mxu0 %v9331_v11  ;;  %v9333_v22 = vld [vmem:[%s12378_s1 + $0x10] sm:$0xff]   ;;  %v9658_v29 = vld [vmem:[#allocation2 + $0x28] sm:$0xff]  ;;  %v9669_v35 = vld [vmem:[#allocation2 + $0x38] sm:$0xff] }
   0xb   :  { %v238_v46 = vsel %vm164_vm1, %v233_v37, %v237_v32  ;;  %v262_v51 = vrot.slane %v260_v43, 1  ;;  %v269_v55 = vshrl.u32 %v9595_v34, 16  ;;  %v280_v56 = vshll.u32 %v9609_v44, 16  ;;  %9233 = vmatpush3.bf16.msra.mxu0 %v9331_v11  ;;  %v9671_v36 = vld [vmem:[#allocation2 + $0x48] sm:$0xff]  ;;  %v9334_v37 = vld [vmem:[%s12378_s1 + $0x18] sm:$0xff]   ;;  %s9484_s11 = smov 32  }
   0xc   :  { %v248_v50 = vor.u32 %v247_v42, %v243_v38  ;;  %v275_v57 = vshll.u32 %v9326_v45, 16  ;;  %v267_v58 = vrot.slane %v265_v41, 1  ;;  %v273_v59 = vshrl.u32 %v9326_v45, 16  ;;  %9234 = vmatprep.subr.bf16.mxu0 %v9332_v17  ;;  %v9685_v38 = vld [vmem:[#allocation2 + $0x58] sm:$0xff]  ;;  %v9335_v45 = vld [vmem:[%s12378_s1 + $0x20] sm:$0xff]   ;;  %s9485_s18 = smov 96  }
   0xd   :  { %319 = vrot.lane.b32.xlu0 %v211_v28, %s9481_s23  ;;  %v263_v61 = vor.u32 %v262_v51, %v258_v48  ;;  %v290_v63 = vshll.u32 %v9328_v53, 16  ;;  %v295_v1 = vshll.u32 %v9618_v52, 16  ;;  %v256_v4 = vor.u32 %v254_v54, %v252_v47  ;;  %v170_v28 = vld [vmem:[#allocation2 + $0x18] sm:$0xff]  ;;  %v9336_v48 = vld [vmem:[%s12378_s1 + $0x28] sm:$0xff]   ;;  %v9337_v51 = vld [vmem:[%s12378_s1 + $0x30] sm:$0xff]  }
   0xe   :  { %323 = vrot.lane.b32.xlu1 %v226_v40, %s9481_s23  ;;  %v253_v60 = vsel %vm164_vm1, %v248_v50, %v252_v47  ;;  %v277_v62 = vrot.slane %v275_v57, 1  ;;  %v282_v5 = vrot.slane %v280_v56, 1  ;;  %v288_v10 = vshrl.u32 %v9328_v53, 16  ;;  %v194_v53 = vld [vmem:[#allocation2 + $0x78] sm:$0xff] }
   0xf   :  { %v268_v13 = vsel %vm164_vm1, %v263_v61, %v267_v58  ;;  %v292_v15 = vrot.slane %v290_v63, 1  ;;  %v305_v16 = vshll.u32 %v9330_v7, 16  ;;  %v271_v18 = vor.u32 %v269_v55, %v267_v58  ;;  %9235 = vmatpush3.bf16.msra.mxu0 %v9332_v17 }
  0x10   :  { %v278_v14 = vor.u32 %v277_v62, %v273_v59  ;;  %v284_v19 = vshrl.u32 %v9609_v44, 16  ;;  %v297_v20 = vrot.slane %v295_v1, 1  ;;  %v310_v21 = vshll.u32 %v9635_v3, 16  ;;  %9236 = vmatprep.subr.bf16.mxu0 %v9333_v22 }
  0x11   :  { %325 = vrot.lane.b32.xlu0 %v238_v46, %s9481_s23  ;;  %v293_v24 = vor.u32 %v292_v15, %v288_v10  ;;  %v303_v25 = vshrl.u32 %v9330_v7, 16  ;;  %v307_v26 = vrot.slane %v305_v16, 1  ;;  %v299_v31 = vshrl.u32 %v9618_v52, 16 }
  0x12   :  { %327 = vrot.lane.b32.xlu1 %v241_v49, %s9481_s23  ;;  %v283_v23 = vsel %vm164_vm1, %v278_v14, %v282_v5  ;;  %v286_v30 = vor.u32 %v284_v19, %v282_v5  ;;  %v171_v32 = vsel %vm9550_vm2, %v9560_v8, %v170_v28  ;;  %v175_v33 = vsel %vm9550_vm2, %v9569_v12, %v9658_v29  ;;  %v190_v49 = vld [vmem:[#allocation2 + $0x68] sm:$0xff]  ;;  %v9342_v28 = vld [vmem:[%s12379_s3 + $0x20] sm:$0xff]  }
  0x13   :  { %v179_v8 = vsel %vm9550_vm2, %v9585_v27, %v9669_v35  ;;  %v183_v12 = vsel %vm9550_vm2, %v9595_v34, %v9671_v36  ;;  %v298_v39 = vsel %vm164_vm1, %v293_v24, %v297_v20  ;;  %v312_v40 = vrot.slane %v310_v21, 1  ;;  %9237 = vmatpush3.bf16.msra.mxu0 %v9333_v22  ;;  %v9339_v24 = vld [vmem:[%s12379_s3 + $0x8] sm:$0xff]   ;;  %v9799_v35 = vld [vmem:[%s12380_s2] ss:$0 sm:$0xff] }
  0x14   :  { %v308_v41 = vor.u32 %v307_v26, %v303_v25  ;;  %v187_v42 = vsel %vm9550_vm2, %v9609_v44, %v9685_v38  ;;  %v301_v43 = vor.u32 %v299_v31, %v297_v20  ;;  %v314_v27 = vshrl.u32 %v9635_v3, 16  ;;  %9238 = vmatprep.subr.bf16.mxu0 %v9334_v37  ;;  %v9340_v25 = vld [vmem:[%s12379_s3 + $0x10] sm:$0xff]   ;;  %v9341_v26 = vld [vmem:[%s12379_s3 + $0x18] sm:$0xff]   ;;  %v9343_v29 = vld [vmem:[%s12379_s3 + $0x28] sm:$0xff]  }
  0x15   :  { %329 = vrot.lane.b32.xlu0 %v253_v60, %s9481_s23  ;;  %v191_v50 = vsel %vm9550_vm2, %v9618_v52, %v190_v49  ;;  %v195_v54 = vsel %vm9550_vm2, %v9635_v3, %v194_v53  ;;  %v9482_v31 = vmov 1966171168   ;;  %vm4642_vm9 = vcmask 1044484  }
  0x16   :  { %331 = vrot.lane.b32.xlu1 %v256_v4, %s9481_s23  ;;  %v313_v46 = vsel %vm164_vm1, %v308_v41, %v312_v40  ;;  %v316_v47 = vor.u32 %v314_v27, %v312_v40  ;;  %vm4645_vm10 = vcmask 1045509   ;;  %vm4648_vm11 = vcmask 1046534  }
  0x17   :  { %9239 = vmatpush3.bf16.msra.mxu0 %v9334_v37  ;;  %vm4651_vm12 = vcmask 1047559   ;;  %vm5136_vm13 = vcmask 257024   ;;  %vm5156_vm14 = vcmask 519424   ;;  %vm5176_vm15 = vcmask 781824  }
  0x18   :  { %9240 = vmatprep.subr.bf16.mxu0 %v9335_v45  ;;  %vm5196_vm0 = vcmask 1044224   ;;  %vm6712_vm1 = vcmask 785408   ;;  %vm8427_vm2 = vcmask 97280  }
  0x19   :  { %333 = vrot.lane.b32.xlu0 %v268_v13, %s9481_s23 }
  0x1a   :  { %335 = vrot.lane.b32.xlu1 %v271_v18, %s9481_s23 }
  0x1b   :  { %9241 = vmatpush3.bf16.msra.mxu0 %v9335_v45 }
  0x1c   :  { %9242 = vmatprep.subr.bf16.mxu0 %v9336_v48 }
  0x1d   :  { %337 = vrot.lane.b32.xlu0 %v283_v23, %s9481_s23  ;;  %v9338_v23 = vld [vmem:[%s12379_s3] sm:$0xff]  }
  0x1e   :  { %339 = vrot.lane.b32.xlu1 %v286_v30, %s9481_s23  ;;  %9278 = vmatprep.subr.bf16.mxu1 %v9338_v23  ;;  %v9344_v30 = vld [vmem:[%s12379_s3 + $0x30] sm:$0xff]  }
  0x1f   :  { %9243 = vmatpush3.bf16.msra.mxu0 %v9336_v48  ;;  %9279 = vmatpush3.bf16.msra.mxu1 %v9338_v23 }
  0x20   :  { %9244 = vmatprep.subr.bf16.mxu0 %v9337_v51  ;;  %9280 = vmatprep.subr.bf16.mxu1 %v9339_v24 }
  0x21   :  { %341 = vrot.lane.b32.xlu0 %v298_v39, %s9481_s23 }
  0x22   :  { %343 = vrot.lane.b32.xlu1 %v301_v43, %s9481_s23 }
  0x23   :  { %9245 = vmatpush3.bf16.msra.mxu0 %v9337_v51  ;;  %9281 = vmatpush3.bf16.msra.mxu1 %v9339_v24 }
  0x24   :  { %9282 = vmatprep.subr.bf16.mxu1 %v9340_v25 }
  0x25   :  { %345 = vrot.lane.b32.xlu0 %v313_v46, %s9481_s23 }
  0x26   :  { %347 = vrot.lane.b32.xlu1 %v316_v47, %s9481_s23 }
  0x27   :  { %9283 = vmatpush3.bf16.msra.mxu1 %v9340_v25 }
  0x28   :  { %9284 = vmatprep.subr.bf16.mxu1 %v9341_v26 }
  0x2b   :  { %9285 = vmatpush3.bf16.msra.mxu1 %v9341_v26 }
  0x2c   :  { %9286 = vmatprep.subr.bf16.mxu1 %v9342_v28 }
  0x2f   :  { %9287 = vmatpush3.bf16.msra.mxu1 %v9342_v28 }
  0x30   :  { %9288 = vmatprep.subr.bf16.mxu1 %v9343_v29 }
  0x33   :  { %9289 = vmatpush3.bf16.msra.mxu1 %v9343_v29 }
  0x34   :  { %9290 = vmatprep.subr.bf16.mxu1 %v9344_v30 }
  0x37   :  { %9291 = vmatpush3.bf16.msra.mxu1 %v9344_v30 }
  0x7b   :  { %v318_v55 = vpop.permute.xlu0 %317 }
  0x7c   :  { %366 = vst.msk [vmem:[#allocation2] sm:$0xff] %vm365_vm3, %v318_v55  ;;  %v322_v56 = vpop.permute.xlu1 %321 }
  0x7d   :  { %372 = vst.msk [vmem:[#allocation2 + $0x10] sm:$0xff] %vm365_vm3, %v322_v56 }
  0x7f   :  { %v320_v57 = vpop.permute.xlu0 %319 }
  0x80   :  { %v370_v58 = vsel %vm9717_vm4, %v320_v57, %v167_v9  ;;  %v324_v59 = vpop.permute.xlu1 %323 }
  0x81   :  { %371 = vst [vmem:[#allocation2 + $0x8] sm:$0xff] %v370_v58  ;;  %v374_v61 = vsel %vm9717_vm4, %v324_v59, %v171_v32  ;;  %v755_v32 = vunpack.c.l.s4 %v9482_v31 }
  0x82   :  { %375 = vst [vmem:[#allocation2 + $0x18] sm:$0xff] %v374_v61 }
  0x83   :  { %v400_v60 = vld [vmem:[#allocation2] sm:$0xff]  ;;  %v326_v62 = vpop.permute.xlu0 %325 }
  0x84   :  { %9246 = vmatprep.mubr.msk.bf16.mxu0 %vm479_vm5, %v400_v60  ;;  %376 = vst.msk [vmem:[#allocation2 + $0x20] sm:$0xff] %vm365_vm3, %v326_v62  ;;  %v402_v63 = vld [vmem:[#allocation2 + $0x10] sm:$0xff]  ;;  %v328_v0 = vpop.permute.xlu1 %327 }
  0x85   :  { %9247 = vmatmul.mubr.msk.bf16.vlgmr.msra.gmra.mrb[0].mxu0 %vm479_vm5, %v370_v58  ;;  %v378_v2 = vsel %vm9717_vm4, %v328_v0, %v175_v33  ;;  %v757_v33 = vlaneseq }
  0x86   :  { %9250 = vmatprep.mubr.msk.bf16.mxu0 %vm479_vm5, %v402_v63  ;;  %379 = vst [vmem:[#allocation2 + $0x28] sm:$0xff] %v378_v2 }
  0x87   :  { %v330_v9 = vpop.permute.xlu0 %329  ;;  %v9802_v38 = vshrl.u32 %v757_v33, 7  ;;  %v9345_v33 = vld [vmem:[%s12379_s3 + $0x38] sm:$0xff]  }
  0x88   :  { %380 = vst.msk [vmem:[#allocation2 + $0x30] sm:$0xff] %vm365_vm3, %v330_v9  ;;  %v332_v1 = vpop.permute.xlu1 %331  ;;  %9292 = vmatprep.subr.bf16.mxu1 %v9345_v33 }
  0x89   :  { %v382_v3 = vsel %vm9717_vm4, %v332_v1, %v179_v8  ;;  %12437 = vst [vmem:[#allocation4_spill] sm:$0xff] %v9802_v38  ;;  %9293 = vmatpush3.bf16.msra.mxu1 %v9345_v33 }
  0x8a   :  { %383 = vst [vmem:[#allocation2 + $0x38] sm:$0xff] %v382_v3 }
  0x8b   :  { %v404_v4 = vld [vmem:[#allocation2 + $0x20] sm:$0xff]  ;;  %v334_v5 = vpop.permute.xlu0 %333 }
  0x8c   :  { %384 = vst.msk [vmem:[#allocation2 + $0x40] sm:$0xff] %vm365_vm3, %v334_v5  ;;  %v336_v7 = vpop.permute.xlu1 %335 }
  0x8d   :  { %9251 = vmatmul.mubr.msk.bf16.gmra.mrb[4].mxu0 %vm479_vm5, %v374_v61  ;;  %v386_v10 = vsel %vm9717_vm4, %v336_v7, %v183_v12  ;;  %v756_v12 = vunpack.c.0.s8 %v755_v32 }
  0x8e   :  { %9254 = vmatprep.mubr.msk.bf16.mxu0 %vm479_vm5, %v404_v4  ;;  %387 = vst [vmem:[#allocation2 + $0x48] sm:$0xff] %v386_v10 }
  0x8f   :  { %v338_v11 = vpop.permute.xlu0 %337  ;;  %v406_v14 = vld [vmem:[#allocation2 + $0x30] sm:$0xff]  ;;  %v9808_v46 = vsub.s32 %v756_v12, %v9802_v38 }
  0x90   :  { %388 = vst.msk [vmem:[#allocation2 + $0x50] sm:$0xff] %vm365_vm3, %v338_v11  ;;  %v340_v13 = vpop.permute.xlu1 %339 }
  0x91   :  { %v390_v15 = vsel %vm9717_vm4, %v340_v13, %v187_v42 }
  0x92   :  { %391 = vst [vmem:[#allocation2 + $0x58] sm:$0xff] %v390_v15 }
  0x93   :  { %v342_v16 = vpop.permute.xlu0 %341  ;;  %v408_v44 = vld [vmem:[#allocation2 + $0x40] sm:$0xff] }
  0x94   :  { %392 = vst.msk [vmem:[#allocation2 + $0x60] sm:$0xff] %vm365_vm3, %v342_v16  ;;  %v344_v34 = vpop.permute.xlu1 %343 }
  0x95   :  { %9255 = vmatmul.mubr.msk.bf16.gmra.mrb[8].mxu0 %vm479_vm5, %v378_v2  ;;  %v394_v17 = vsel %vm9717_vm4, %v344_v34, %v191_v50 }
  0x96   :  { %9258 = vmatprep.mubr.msk.bf16.mxu0 %vm479_vm5, %v406_v14  ;;  %395 = vst [vmem:[#allocation2 + $0x68] sm:$0xff] %v394_v17 }
  0x97   :  { %v346_v18 = vpop.permute.xlu0 %345  ;;  %v410_v20 = vld [vmem:[#allocation2 + $0x50] sm:$0xff] }
  0x98   :  { %396 = vst.msk [vmem:[#allocation2 + $0x70] sm:$0xff] %vm365_vm3, %v346_v18  ;;  %v348_v6 = vpop.permute.xlu1 %347 }
  0x99   :  { %v398_v19 = vsel %vm9717_vm4, %v348_v6, %v195_v54 }
  0x9a   :  { %399 = vst [vmem:[#allocation2 + $0x78] sm:$0xff] %v398_v19 }
  0x9b   :  { %v412_v21 = vld [vmem:[#allocation2 + $0x60] sm:$0xff] }
  0x9d   :  { %9259 = vmatmul.mubr.msk.bf16.gmra.mrb[12].mxu0 %vm479_vm5, %v382_v3 }
  0x9e   :  { %9262 = vmatprep.mubr.msk.bf16.mxu0 %vm479_vm5, %v408_v44 }
  0x9f   :  { %v414_v22 = vld [vmem:[#allocation2 + $0x70] sm:$0xff] }
  0xa5   :  { %9263 = vmatmul.mubr.msk.bf16.gmra.mrb[16].mxu0 %vm479_vm5, %v386_v10 }
  0xa6   :  { %9266 = vmatprep.mubr.msk.bf16.mxu0 %vm479_vm5, %v410_v20 }
  0xad   :  { %9267 = vmatmul.mubr.msk.bf16.gmra.mrb[20].mxu0 %vm479_vm5, %v390_v15 }
  0xae   :  { %9270 = vmatprep.mubr.msk.bf16.mxu0 %vm479_vm5, %v412_v21 }
  0xb5   :  { %9271 = vmatmul.mubr.msk.bf16.gmra.mrb[24].mxu0 %vm479_vm5, %v394_v17 }
  0xb6   :  { %9274 = vmatprep.mubr.msk.bf16.mxu0 %vm479_vm5, %v414_v22 }
  0xbd   :  { %9275 = vmatmul.mubr.msk.bf16.gmra.mrb[28].mxu0 %vm479_vm5, %v398_v19 }
 0x158   :  { %v9248_v36 = vpop.f32.mrb[0].mxu0 }
 0x159   :  { %v571_v37 = vadd.f32 %v9248_v36, %v9799_v35  ;;  %v562_v8 = vpop.f32.mrb[1].mxu0 }
 0x15a   :  { %v563_v39 = vadd.f32 %v9799_v35, %v562_v8  ;;  %v9249_v40 = vpop.f32.mrb[2].mxu0 }
 0x15b   :  { %v574_v41 = vadd.f32 %v9249_v40, %v9799_v35  ;;  %v565_v42 = vpop.f32.mrb[3].mxu0  ;;  %v691_v27 = vmax.f32 %v571_v37, 0.0 }
 0x15c   :  { %v566_v43 = vadd.f32 %v9799_v35, %v565_v42  ;;  %v689_v47 = vmax.f32 %v563_v39, 0.0 }
 0x15d   :  { %v692_v45 = vmax.f32 %v574_v41, 0.0 }
 0x15e   :  { %v690_v48 = vmax.f32 %v566_v43, 0.0 }
 0x15f   :  { %v722_v49 = vpack.c.bf16 %v692_v45, %v691_v27  ;;  %v8486_v50 = vpack.c.bf16 %v692_v45, %v692_v45 }
 0x160   :  { %v721_v51 = vpack.c.bf16 %v690_v48, %v689_v47  ;;  %v8485_v53 = vpack.c.bf16 %v690_v48, %v690_v48  ;;  %v9252_v54 = vpop.f32.mrb[4].mxu0 }
 0x161   :  { %v809_v55 = vrot.slane %v722_v49, %v9808_v46  ;;  %v816_v52 = vrot.slane %v8486_v50, %v9808_v46  ;;  %v578_v56 = vpop.f32.mrb[5].mxu0  ;;  %v9822_v3 = vadd.f32 %v9252_v54, %v9799_v35 }
 0x162   :  { %v760_v57 = vrot.slane %v721_v51, %v9808_v46  ;;  %v767_v58 = vrot.slane %v8485_v53, %v9808_v46  ;;  %v9814_v59 = vpop.f32.mrb[6].mxu0  ;;  %v9837_v20 = vadd.f32 %v9799_v35, %v578_v56 }
 0x163   :  { %v817_v60 = vcombine.high %v809_v55, %v809_v55  ;;  %v818_v61 = vcombine.high %v816_v52, %v816_v52  ;;  %v825_v62 = vrot.slane %v809_v55, %v9808_v46  ;;  %v832_v63 = vrot.slane %v816_v52, %v9808_v46  ;;  %v9818_v0 = vpop.f32.mrb[7].mxu0 }
 0x164   :  { %v768_v2 = vcombine.high %v760_v57, %v760_v57  ;;  %v769_v9 = vcombine.high %v767_v58, %v767_v58  ;;  %v776_v1 = vrot.slane %v760_v57, %v9808_v46  ;;  %v783_v14 = vrot.slane %v767_v58, %v9808_v46 }
 0x165   :  { %v839_v4 = vrot.slane %v817_v60, %v9808_v46  ;;  %v9826_v5 = vrot.slane %v818_v61, %v9808_v46  ;;  %v847_v7 = vcombine.high %v825_v62, %v825_v62  ;;  %v9828_v10 = vcombine.high %v832_v63, %v832_v63 }
 0x166   :  { %v1706_v11 = vshrl.u32 %v825_v62, 16  ;;  %v1726_v13 = vshrl.u32 %v832_v63, 16  ;;  %v790_v15 = vrot.slane %v768_v2, %v9808_v46  ;;  %v9834_v44 = vrot.slane %v769_v9, %v9808_v46 }
 0x167   :  { %v849_v16 = vcombine.high %v839_v4, %v839_v4  ;;  %v1711_v34 = vshrl.u32 %v839_v4, 16  ;;  %v1716_v17 = vshrl.u32 %v847_v7, 16  ;;  %v1731_v18 = vshrl.u32 %v9826_v5, 16 }
 0x168   :  { %v2441_v6 = vmax.bf16 %v1706_v11, %v825_v62  ;;  %v798_v19 = vcombine.high %v776_v1, %v776_v1  ;;  %v9256_v21 = vpop.f32.mrb[8].mxu0  ;;  %v9840_v25 = vmax.bf16 %v1726_v13, %v832_v63  ;;  %v800_v31 = vcombine.high %v790_v15, %v790_v15 }
 0x169   :  { %v2442_v23 = vmax.bf16 %v1711_v34, %v839_v4  ;;  %v2443_v24 = vmax.bf16 %v1716_v17, %v847_v7  ;;  %v594_v26 = vpop.f32.mrb[9].mxu0  ;;  %v1721_v28 = vshrl.u32 %v849_v16, 16  ;;  %v9843_v29 = vmax.bf16 %v1731_v18, %v9826_v5 }
 0x16a   :  { %v2830_v30 = vrot.slane %v2441_v6, %v9808_v46  ;;  %v9257_v32 = vpop.f32.mrb[10].mxu0  ;;  %v9851_v8 = vcombine.high %v783_v14, %v783_v14  ;;  %v1666_v12 = vshrl.u32 %v776_v1, 16  ;;  %v1671_v41 = vshrl.u32 %v790_v15, 16 }
 0x16b   :  { %v2844_v36 = vrot.slane %v2442_v23, %v9808_v46  ;;  %v2858_v37 = vrot.slane %v2443_v24, %v9808_v46  ;;  %v597_v39 = vpop.f32.mrb[11].mxu0  ;;  %v1676_v42 = vshrl.u32 %v798_v19, 16  ;;  %v1681_v43 = vshrl.u32 %v800_v31, 16 }
 0x16c   :  { %v9854_v40 = vrot.slane %v2830_v30, %v9808_v46  ;;  %v1686_v47 = vshrl.u32 %v783_v14, 16  ;;  %v1691_v48 = vshrl.u32 %v9834_v44, 16  ;;  %v9860_v49 = vmax.bf16 %v1721_v28, %v849_v16 }
 0x16d   :  { %v2851_v27 = vrot.slane %v2844_v36, %v9808_v46  ;;  %v9863_v50 = vrot.slane %v2858_v37, %v9808_v46  ;;  %v2433_v51 = vmax.bf16 %v1666_v12, %v776_v1  ;;  %v2434_v53 = vmax.bf16 %v1671_v41, %v790_v15 }
 0x16e   :  { %v2435_v52 = vmax.bf16 %v1676_v42, %v798_v19  ;;  %v9866_v56 = vmax.bf16 %v1686_v47, %v783_v14  ;;  %v9869_v58 = vmax.bf16 %v1681_v43, %v800_v31  ;;  %v9876_v2 = vmax.bf16 %v1691_v48, %v9834_v44 }
 0x16f   :  { %v4513_v55 = vunpack.c.l.b16 %v2851_v27  ;;  %v2718_v60 = vrot.slane %v2433_v51, %v9808_v46  ;;  %v2732_v61 = vrot.slane %v2434_v53, %v9808_v46  ;;  %v695_v1 = vmax.f32 %v9822_v3, 0.0 }
 0x170   :  { %v9260_v62 = vpop.f32.mrb[12].mxu0  ;;  %v2746_v9 = vrot.slane %v2435_v52, %v9808_v46  ;;  %v590_v13 = vadd.f32 %v9814_v59, %v9799_v35  ;;  %v582_v14 = vadd.f32 %v9799_v35, %v9818_v0  ;;  %v693_v16 = vmax.f32 %v9837_v20, 0.0 }
 0x171   :  { %v9873_v63 = vrot.slane %v4513_v55, 7  ;;  %v9880_v4 = vpop.f32.mrb[13].mxu0  ;;  %v2739_v7 = vrot.slane %v2732_v61, %v9808_v46  ;;  %v603_v34 = vadd.f32 %v9256_v21, %v9799_v35  ;;  %v595_v3 = vadd.f32 %v9799_v35, %v594_v26 }
 0x172   :  { %v9889_v15 = vpop.f32.mrb[14].mxu0  ;;  %v606_v17 = vadd.f32 %v9257_v32, %v9799_v35  ;;  %v9898_v6 = vrot.slane %v2718_v60, %v9808_v46  ;;  %v9901_v59 = vrot.slane %v2746_v9, %v9808_v46  ;;  %v696_v19 = vmax.f32 %v590_v13, 0.0 }
 0x173   :  { %v9895_v18 = vpop.f32.mrb[15].mxu0  ;;  %v694_v0 = vmax.f32 %v582_v14, 0.0  ;;  %v4505_v23 = vunpack.c.l.b16 %v2739_v7  ;;  %v699_v24 = vmax.f32 %v603_v34, 0.0  ;;  %v598_v20 = vadd.f32 %v9799_v35, %v597_v39 }
 0x174   :  { %v700_v28 = vmax.f32 %v606_v17, 0.0  ;;  %v724_v21 = vpack.c.bf16 %v696_v19, %v695_v1  ;;  %v8488_v30 = vpack.c.bf16 %v696_v19, %v696_v19  ;;  %v697_v31 = vmax.f32 %v595_v3, 0.0 }
 0x175   :  { %v723_v26 = vpack.c.bf16 %v694_v0, %v693_v16  ;;  %v8487_v32 = vpack.c.bf16 %v694_v0, %v694_v0  ;;  %v9904_v37 = vmax.f32 %v598_v20, 0.0  ;;  %v9912_v39 = vrot.slane %v4505_v23, 7 }
 0x176   :  { %v726_v33 = vpack.c.bf16 %v700_v28, %v699_v24  ;;  %v8490_v36 = vpack.c.bf16 %v700_v28, %v700_v28  ;;  %v907_v41 = vrot.slane %v724_v21, %v9808_v46  ;;  %v914_v42 = vrot.slane %v8488_v30, %v9808_v46 }
 0x177   :  { %v858_v43 = vrot.slane %v723_v26, %v9808_v46  ;;  %v865_v47 = vrot.slane %v8487_v32, %v9808_v46  ;;  %v9916_v48 = vpack.c.bf16 %v9904_v37, %v697_v31  ;;  %v9919_v51 = vadd.f32 %v9260_v62, %v9799_v35 }
 0x178   :  { %v9910_v27 = vpop.f32.mrb[16].mxu0  ;;  %v915_v55 = vcombine.high %v907_v41, %v907_v41  ;;  %v916_v52 = vcombine.high %v914_v42, %v914_v42  ;;  %v923_v60 = vrot.slane %v907_v41, %v9808_v46  ;;  %v930_v61 = vrot.slane %v914_v42, %v9808_v46 }
 0x179   :  { %v9921_v53 = vpop.f32.mrb[17].mxu0  ;;  %v866_v1 = vcombine.high %v858_v43, %v858_v43  ;;  %v867_v7 = vcombine.high %v865_v47, %v865_v47  ;;  %v9928_v13 = vrot.slane %v726_v33, %v9808_v46  ;;  %v9931_v14 = vrot.slane %v8490_v36, %v9808_v46 }
 0x17a   :  { %v9925_v9 = vpop.f32.mrb[18].mxu0  ;;  %v937_v16 = vrot.slane %v915_v55, %v9808_v46  ;;  %v944_v34 = vrot.slane %v916_v52, %v9808_v46  ;;  %v945_v3 = vcombine.high %v923_v60, %v923_v60  ;;  %v946_v17 = vcombine.high %v930_v61, %v930_v61 }
 0x17b   :  { %v9933_v62 = vpop.f32.mrb[19].mxu0  ;;  %v1786_v19 = vshrl.u32 %v923_v60, 16  ;;  %v1806_v0 = vshrl.u32 %v930_v61, 16  ;;  %v874_v23 = vrot.slane %v858_v43, %v9808_v46  ;;  %v881_v24 = vrot.slane %v865_v47, %v9808_v46 }
 0x17c   :  { %v947_v28 = vcombine.high %v937_v16, %v937_v16  ;;  %v9939_v20 = vcombine.high %v944_v34, %v944_v34  ;;  %v1791_v21 = vshrl.u32 %v937_v16, 16  ;;  %v1796_v30 = vshrl.u32 %v945_v3, 16 }
 0x17d   :  { %v1811_v26 = vshrl.u32 %v944_v34, 16  ;;  %v1816_v31 = vshrl.u32 %v946_v17, 16  ;;  %v2457_v32 = vmax.bf16 %v1786_v19, %v923_v60  ;;  %v2461_v33 = vmax.bf16 %v1806_v0, %v930_v61 }
 0x17e   :  { %12438 = vst [vmem:[#allocation5_spill] sm:$0xff] %v9939_v20  ;;  %v1801_v36 = vshrl.u32 %v947_v28, 16  ;;  %v2458_v41 = vmax.bf16 %v1791_v21, %v937_v16  ;;  %v2459_v42 = vmax.bf16 %v1796_v30, %v945_v3  ;;  %v888_v55 = vrot.slane %v866_v1, %v9808_v46 }
 0x17f   :  { %v9944_v54 = vmax.bf16 %v1811_v26, %v944_v34  ;;  %v3054_v43 = vrot.slane %v2457_v32, %v9808_v46  ;;  %v3110_v47 = vrot.slane %v2461_v33, %v9808_v46  ;;  %v895_v12 = vrot.slane %v867_v7, %v9808_v46 }
 0x180   :  { %v9942_v52 = vpop.f32.mrb[20].mxu0  ;;  %v9951_v11 = vmax.bf16 %v1801_v36, %v947_v28  ;;  %v3068_v60 = vrot.slane %v2458_v41, %v9808_v46  ;;  %v3082_v61 = vrot.slane %v2459_v42, %v9808_v46  ;;  %v896_v16 = vcombine.high %v874_v23, %v874_v23 }
 0x181   :  { %12439 = vst [vmem:[#allocation6_spill] sm:$0xff] %v9944_v54  ;;  %v9949_v45 = vpop.f32.mrb[21].mxu0  ;;  %v9958_v3 = vmax.bf16 %v1816_v31, %v946_v17  ;;  %v9961_v19 = vrot.slane %v3054_v43, %v9808_v46  ;;  %v9964_v7 = vrot.slane %v3110_v47, %v9808_v46  ;;  %v897_v30 = vcombine.high %v881_v24, %v881_v24 }
 0x182   :  { %12440 = vst [vmem:[#allocation7_spill] sm:$0xff] %v9951_v11  ;;  %v9955_v1 = vpop.f32.mrb[22].mxu0  ;;  %v3075_v28 = vrot.slane %v3068_v60, %v9808_v46  ;;  %v3089_v21 = vrot.slane %v3082_v61, %v9808_v46  ;;  %v898_v26 = vcombine.high %v888_v55, %v888_v55  ;;  %v9974_v31 = vcombine.high %v895_v12, %v895_v12 }
 0x183   :  { %12441 = vst [vmem:[#allocation8_spill] sm:$0xff] %v9958_v3  ;;  %12442 = vst [vmem:[#allocation9_spill] sm:$0xff] %v9961_v19  ;;  %v9966_v0 = vpop.f32.mrb[23].mxu0  ;;  %v1746_v33 = vshrl.u32 %v874_v23, 16  ;;  %v1751_v42 = vshrl.u32 %v888_v55, 16  ;;  %v1756_v43 = vshrl.u32 %v896_v16, 16  ;;  %v1013_v19 = vcombine.high %v9928_v13, %v9928_v13 }
 0x184   :  { %12443 = vst [vmem:[#allocation10_spill] sm:$0xff] %v9964_v7  ;;  %v4529_v36 = vunpack.c.l.b16 %v3075_v28  ;;  %v4530_v41 = vunpack.c.l.b16 %v3089_v21  ;;  %v1761_v60 = vshrl.u32 %v898_v26, 16  ;;  %v1766_v34 = vshrl.u32 %v881_v24, 16 }
 0x185   :  { %v1771_v61 = vshrl.u32 %v895_v12, 16  ;;  %v1776_v32 = vshrl.u32 %v897_v30, 16  ;;  %v2449_v38 = vmax.bf16 %v1746_v33, %v874_v23  ;;  %v2450_v17 = vmax.bf16 %v1751_v42, %v888_v55 }
 0x186   :  { %v9978_v57 = vrot.slane %v4529_v36, 7  ;;  %v9980_v3 = vrot.slane %v4530_v41, 6  ;;  %v2451_v54 = vmax.bf16 %v1756_v43, %v896_v16  ;;  %v2453_v11 = vmax.bf16 %v1766_v34, %v881_v24 }
 0x187   :  { %v9983_v21 = vmax.bf16 %v1761_v60, %v898_v26  ;;  %v2942_v47 = vrot.slane %v2449_v38, %v9808_v46  ;;  %v9988_v20 = vmax.bf16 %v1771_v61, %v895_v12  ;;  %v2956_v36 = vrot.slane %v2450_v17, %v9808_v46 }
 0x188   :  { %12444 = vst [vmem:[#allocation11_spill] sm:$0xff] %v9978_v57  ;;  %12445 = vst [vmem:[#allocation12_spill] sm:$0xff] %v9980_v3  ;;  %v2970_v23 = vrot.slane %v2451_v54, %v9808_v46  ;;  %v2998_v33 = vrot.slane %v2453_v11, %v9808_v46  ;;  %v9993_v55 = vmax.bf16 %v1776_v32, %v897_v30  ;;  %v10013_v41 = vpop.f32.mrb[24].mxu0 }
 0x189   :  { %v9996_v24 = vrot.slane %v2942_v47, %v9808_v46  ;;  %v1014_v16 = vcombine.high %v9931_v14, %v9931_v14  ;;  %v1021_v38 = vrot.slane %v9928_v13, %v9808_v46  ;;  %v2963_v12 = vrot.slane %v2956_v36, %v9808_v46  ;;  %12447 = vst [vmem:[#allocation14_spill] sm:$0xff] %v10013_v41  ;;  %v10018_v60 = vpop.f32.mrb[25].mxu0 }
 0x18a   :  { %v2977_v34 = vrot.slane %v2970_v23, %v9808_v46  ;;  %v10005_v26 = vrot.slane %v2998_v33, %v9808_v46  ;;  %v1028_v54 = vrot.slane %v9931_v14, %v9808_v46  ;;  %v1035_v30 = vrot.slane %v1013_v19, %v9808_v46  ;;  %12448 = vst [vmem:[#allocation15_spill] sm:$0xff] %v10018_v60  ;;  %v10020_v33 = vpop.f32.mrb[26].mxu0 }
 0x18b   :  { %v1042_v32 = vrot.slane %v1014_v16, %v9808_v46  ;;  %v1043_v17 = vcombine.high %v1021_v38, %v1021_v38  ;;  %v4521_v43 = vunpack.c.l.b16 %v2963_v12  ;;  %v1866_v36 = vshrl.u32 %v1021_v38, 16  ;;  %12449 = vst [vmem:[#allocation16_spill] sm:$0xff] %v10020_v33 }
 0x18c   :  { %12446 = vst [vmem:[#allocation13_spill] sm:$0xff] %v10005_v26  ;;  %v1044_v47 = vcombine.high %v1028_v54, %v1028_v54  ;;  %v4522_v14 = vunpack.c.l.b16 %v2977_v34  ;;  %v1045_v61 = vcombine.high %v1035_v30, %v1035_v30  ;;  %v1871_v23 = vshrl.u32 %v1035_v30, 16 }
 0x18d   :  { %v10023_v16 = vcombine.high %v1042_v32, %v1042_v32  ;;  %v1876_v22 = vshrl.u32 %v1043_v17, 16  ;;  %v1886_v11 = vshrl.u32 %v1028_v54, 16  ;;  %v10025_v28 = vrot.slane %v4521_v43, 7 }
 0x18e   :  { %v1881_v13 = vshrl.u32 %v1045_v61, 16  ;;  %v1891_v42 = vshrl.u32 %v1042_v32, 16  ;;  %v1896_v12 = vshrl.u32 %v1044_v47, 16  ;;  %v2473_v41 = vmax.bf16 %v1866_v36, %v1021_v38 }
 0x18f   :  { %12450 = vst [vmem:[#allocation17_spill] sm:$0xff] %v10023_v16  ;;  %12451 = vst [vmem:[#allocation18_spill] sm:$0xff] %v10025_v28  ;;  %v2474_v7 = vmax.bf16 %v1871_v23, %v1035_v30  ;;  %v2475_v60 = vmax.bf16 %v1876_v22, %v1043_v17  ;;  %v2477_v34 = vmax.bf16 %v1886_v11, %v1028_v54  ;;  %v10027_v3 = vrot.slane %v4522_v14, 6 }
 0x190   :  { %v10029_v57 = vmax.bf16 %v1881_v13, %v1045_v61  ;;  %v10031_v33 = vmax.bf16 %v1891_v42, %v1042_v32  ;;  %v8489_v19 = vpack.c.bf16 %v9904_v37, %v9904_v37  ;;  %v3278_v26 = vrot.slane %v2473_v41, %v9808_v46  ;;  %v10060_v61 = vpop.f32.mrb[27].mxu0 }
 0x191   :  { %v3292_v43 = vrot.slane %v2474_v7, %v9808_v46  ;;  %v3306_v28 = vrot.slane %v2475_v60, %v9808_v46  ;;  %v3334_v38 = vrot.slane %v2477_v34, %v9808_v46  ;;  %v10040_v54 = vmax.bf16 %v1896_v12, %v1044_v47  ;;  %12457 = vst [vmem:[#allocation24_spill] sm:$0xff] %v10060_v61 }
 0x192   :  { %12452 = vst [vmem:[#allocation19_spill] sm:$0xff] %v10029_v57  ;;  %12453 = vst [vmem:[#allocation20_spill] sm:$0xff] %v10031_v33  ;;  %v956_v11 = vrot.slane %v9916_v48, %v9808_v46  ;;  %v963_v30 = vrot.slane %v8489_v19, %v9808_v46  ;;  %v10046_v32 = vrot.slane %v3278_v26, %v9808_v46 }
 0x193   :  { %12454 = vst [vmem:[#allocation21_spill] sm:$0xff] %v10040_v54  ;;  %v3299_v37 = vrot.slane %v3292_v43, %v9808_v46  ;;  %v3313_v7 = vrot.slane %v3306_v28, %v9808_v46  ;;  %v10051_v17 = vrot.slane %v3334_v38, %v9808_v46 }
 0x194   :  { %12455 = vst [vmem:[#allocation22_spill] sm:$0xff] %v10046_v32  ;;  %v964_v41 = vcombine.high %v956_v11, %v956_v11  ;;  %v965_v13 = vcombine.high %v963_v30, %v963_v30  ;;  %v972_v42 = vrot.slane %v956_v11, %v9808_v46  ;;  %v979_v47 = vrot.slane %v963_v30, %v9808_v46 }
 0x195   :  { %12456 = vst [vmem:[#allocation23_spill] sm:$0xff] %v10051_v17  ;;  %v4545_v14 = vunpack.c.l.b16 %v3299_v37  ;;  %v4546_v12 = vunpack.c.l.b16 %v3313_v7 }
 0x196   :  { %v986_v28 = vrot.slane %v964_v41, %v9808_v46  ;;  %v993_v36 = vrot.slane %v965_v13, %v9808_v46  ;;  %v994_v23 = vcombine.high %v972_v42, %v972_v42  ;;  %v995_v19 = vcombine.high %v979_v47, %v979_v47 }
 0x197   :  { %v1826_v43 = vshrl.u32 %v972_v42, 16  ;;  %v1846_v38 = vshrl.u32 %v979_v47, 16  ;;  %v10067_v54 = vrot.slane %v4545_v14, 7  ;;  %v10069_v57 = vrot.slane %v4546_v12, 6 }
 0x198   :  { %v996_v11 = vcombine.high %v986_v28, %v986_v28  ;;  %v10065_v30 = vcombine.high %v993_v36, %v993_v36  ;;  %v1831_v26 = vshrl.u32 %v986_v28, 16  ;;  %v1836_v48 = vshrl.u32 %v994_v23, 16 }
 0x199   :  { %v1851_v60 = vshrl.u32 %v993_v36, 16  ;;  %v1856_v37 = vshrl.u32 %v995_v19, 16  ;;  %v2465_v22 = vmax.bf16 %v1826_v43, %v972_v42  ;;  %v2469_v32 = vmax.bf16 %v1846_v38, %v979_v47  ;;  %12458 = vst [vmem:[#allocation25_spill] sm:$0xff] %v10067_v54  ;;  %12459 = vst [vmem:[#allocation26_spill] sm:$0xff] %v10069_v57 }
 0x19a   :  { %v1841_v41 = vshrl.u32 %v996_v11, 16  ;;  %v2466_v13 = vmax.bf16 %v1831_v26, %v986_v28  ;;  %v2467_v33 = vmax.bf16 %v1836_v48, %v994_v23  ;;  %v703_v26 = vmax.f32 %v9919_v51, 0.0 }
 0x19b   :  { %v10071_v7 = vmax.bf16 %v1851_v60, %v993_v36  ;;  %v3166_v34 = vrot.slane %v2465_v22, %v9808_v46  ;;  %v3222_v17 = vrot.slane %v2469_v32, %v9808_v46  ;;  %v10080_v14 = vmax.bf16 %v1856_v37, %v995_v19 }
 0x19c   :  { %v10076_v61 = vmax.bf16 %v1841_v41, %v996_v11  ;;  %v3180_v42 = vrot.slane %v2466_v13, %v9808_v46  ;;  %v3194_v47 = vrot.slane %v2467_v33, %v9808_v46  ;;  %v611_v22 = vadd.f32 %v9799_v35, %v9880_v4 }
 0x19d   :  { %12460 = vst [vmem:[#allocation27_spill] sm:$0xff] %v10071_v7  ;;  %v10083_v48 = vrot.slane %v3166_v34, %v9808_v46  ;;  %v10091_v28 = vrot.slane %v3222_v17, %v9808_v46  ;;  %v622_v33 = vadd.f32 %v9889_v15, %v9799_v35  ;;  %v614_v4 = vadd.f32 %v9799_v35, %v9895_v18 }
 0x19e   :  { %v3187_v32 = vrot.slane %v3180_v42, %v9808_v46  ;;  %v3201_v60 = vrot.slane %v3194_v47, %v9808_v46  ;;  %v701_v51 = vmax.f32 %v611_v22, 0.0  ;;  %v10103_v17 = vadd.f32 %v9910_v27, %v9799_v35 }
 0x19f   :  { %12461 = vst [vmem:[#allocation28_spill] sm:$0xff] %v10083_v48  ;;  %12462 = vst [vmem:[#allocation29_spill] sm:$0xff] %v10091_v28  ;;  %v704_v34 = vmax.f32 %v622_v33, 0.0  ;;  %v702_v43 = vmax.f32 %v614_v4, 0.0  ;;  %v10107_v15 = vadd.f32 %v9799_v35, %v9921_v53  ;;  %v638_v38 = vadd.f32 %v9925_v9, %v9799_v35 }
 0x1a0   :  { %v4537_v19 = vunpack.c.l.b16 %v3187_v32  ;;  %v4538_v12 = vunpack.c.l.b16 %v3201_v60  ;;  %v630_v11 = vadd.f32 %v9799_v35, %v9933_v62 }
 0x1a1   :  { %v728_v41 = vpack.c.bf16 %v704_v34, %v703_v26  ;;  %v8492_v13 = vpack.c.bf16 %v704_v34, %v704_v34  ;;  %v727_v47 = vpack.c.bf16 %v702_v43, %v701_v51  ;;  %v8491_v22 = vpack.c.bf16 %v702_v43, %v702_v43 }
 0x1a2   :  { %v10115_v42 = vrot.slane %v4537_v19, 7  ;;  %v10117_v27 = vrot.slane %v4538_v12, 6  ;;  %v10125_v26 = vmax.f32 %v638_v38, 0.0  ;;  %v10127_v33 = vmax.f32 %v630_v11, 0.0 }
 0x1a3   :  { %v1103_v53 = vrot.slane %v728_v41, %v9808_v46  ;;  %v1110_v32 = vrot.slane %v8492_v13, %v9808_v46  ;;  %v1054_v62 = vrot.slane %v727_v47, %v9808_v46  ;;  %v1061_v60 = vrot.slane %v8491_v22, %v9808_v46 }
 0x1a4   :  { %12463 = vst [vmem:[#allocation30_spill] sm:$0xff] %v10115_v42  ;;  %12464 = vst [vmem:[#allocation31_spill] sm:$0xff] %v10117_v27  ;;  %v10133_v41 = vcombine.high %v9834_v44, %v9834_v44  ;;  %v10137_v13 = vcombine.high %v9826_v5, %v9826_v5 }
 0x1a5   :  { %v1111_v4 = vcombine.high %v1103_v53, %v1103_v53  ;;  %v1112_v19 = vcombine.high %v1110_v32, %v1110_v32  ;;  %v1119_v51 = vrot.slane %v1103_v53, %v9808_v46  ;;  %v1126_v12 = vrot.slane %v1110_v32, %v9808_v46 }
 0x1a6   :  { %v1062_v34 = vcombine.high %v1054_v62, %v1054_v62  ;;  %v1063_v43 = vcombine.high %v1061_v60, %v1061_v60  ;;  %v1070_v32 = vrot.slane %v1054_v62, %v9808_v46  ;;  %v1077_v18 = vrot.slane %v1061_v60, %v9808_v46 }
 0x1a7   :  { %v1133_v38 = vrot.slane %v1111_v4, %v9808_v46  ;;  %v1140_v11 = vrot.slane %v1112_v19, %v9808_v46  ;;  %v1141_v47 = vcombine.high %v1119_v51, %v1119_v51  ;;  %v1142_v22 = vcombine.high %v1126_v12, %v1126_v12 }
 0x1a8   :  { %v1946_v37 = vshrl.u32 %v1119_v51, 16  ;;  %v1966_v53 = vshrl.u32 %v1126_v12, 16  ;;  %v1084_v28 = vrot.slane %v1062_v34, %v9808_v46  ;;  %v1091_v42 = vrot.slane %v1063_v43, %v9808_v46 }
 0x1a9   :  { %v1143_v23 = vcombine.high %v1133_v38, %v1133_v38  ;;  %v10143_v36 = vcombine.high %v1140_v11, %v1140_v11  ;;  %v1951_v44 = vshrl.u32 %v1133_v38, 16  ;;  %v1956_v16 = vshrl.u32 %v1141_v47, 16 }
 0x1aa   :  { %v1971_v35 = vshrl.u32 %v1140_v11, 16  ;;  %v1976_v5 = vshrl.u32 %v1142_v22, 16  ;;  %v2489_v9 = vmax.bf16 %v1946_v37, %v1119_v51  ;;  %v2493_v57 = vmax.bf16 %v1966_v53, %v1126_v12  ;;  %v10155_v12 = vpop.f32.mrb[28].mxu0 }
 0x1ab   :  { %12465 = vst [vmem:[#allocation32_spill] sm:$0xff] %v10143_v36  ;;  %v1961_v4 = vshrl.u32 %v1143_v23, 16  ;;  %v2490_v54 = vmax.bf16 %v1951_v44, %v1133_v38  ;;  %v2491_v19 = vmax.bf16 %v1956_v16, %v1141_v47  ;;  %v1092_v51 = vcombine.high %v1070_v32, %v1070_v32  ;;  %12468 = vst [vmem:[#allocation35_spill] sm:$0xff] %v10155_v12 }
 0x1ac   :  { %v10146_v27 = vmax.bf16 %v1971_v35, %v1140_v11  ;;  %v3502_v62 = vrot.slane %v2489_v9, %v9808_v46  ;;  %v3558_v60 = vrot.slane %v2493_v57, %v9808_v46  ;;  %v10158_v34 = vmax.bf16 %v1976_v5, %v1142_v22  ;;  %v10166_v9 = vpop.f32.mrb[29].mxu0 }
 0x1ad   :  { %v10151_v48 = vmax.bf16 %v1961_v4, %v1143_v23  ;;  %v3516_v7 = vrot.slane %v2490_v54, %v9808_v46  ;;  %v3530_v37 = vrot.slane %v2491_v19, %v9808_v46  ;;  %12472 = vst [vmem:[#allocation39_spill] sm:$0xff] %v10166_v9  ;;  %v1093_v43 = vcombine.high %v1077_v18, %v1077_v18  ;;  %v10170_v11 = vpop.f32.mrb[30].mxu0 }
 0x1ae   :  { %12466 = vst [vmem:[#allocation33_spill] sm:$0xff] %v10146_v27  ;;  %12469 = vst [vmem:[#allocation36_spill] sm:$0xff] %v10158_v34  ;;  %v10161_v35 = vrot.slane %v3502_v62, %v9808_v46  ;;  %v10164_v57 = vrot.slane %v3558_v60, %v9808_v46  ;;  %v1094_v38 = vcombine.high %v1084_v28, %v1084_v28  ;;  %v1906_v44 = vshrl.u32 %v1070_v32, 16 }
 0x1af   :  { %12467 = vst [vmem:[#allocation34_spill] sm:$0xff] %v10151_v48  ;;  %v3523_v23 = vrot.slane %v3516_v7, %v9808_v46  ;;  %v3537_v54 = vrot.slane %v3530_v37, %v9808_v46  ;;  %12473 = vst [vmem:[#allocation40_spill] sm:$0xff] %v10170_v11  ;;  %v10176_v53 = vcombine.high %v1091_v42, %v1091_v42  ;;  %v1911_v19 = vshrl.u32 %v1084_v28, 16 }
 0x1b0   :  { %12470 = vst [vmem:[#allocation37_spill] sm:$0xff] %v10161_v35  ;;  %12471 = vst [vmem:[#allocation38_spill] sm:$0xff] %v10164_v57  ;;  %v1916_v62 = vshrl.u32 %v1092_v51, 16  ;;  %v1921_v60 = vshrl.u32 %v1094_v38, 16  ;;  %v1926_v37 = vshrl.u32 %v1077_v18, 16  ;;  %v1931_v16 = vshrl.u32 %v1091_v42, 16 }
 0x1b1   :  { %v4561_v5 = vunpack.c.l.b16 %v3523_v23  ;;  %v4562_v4 = vunpack.c.l.b16 %v3537_v54  ;;  %v1936_v47 = vshrl.u32 %v1093_v43, 16  ;;  %v2481_v48 = vmax.bf16 %v1906_v44, %v1070_v32 }
 0x1b2   :  { %v2482_v22 = vmax.bf16 %v1911_v19, %v1084_v28  ;;  %v2483_v27 = vmax.bf16 %v1916_v62, %v1092_v51  ;;  %v2485_v9 = vmax.bf16 %v1926_v37, %v1077_v18  ;;  %v10185_v54 = vmax.bf16 %v1921_v60, %v1094_v38 }
 0x1b3   :  { %v10180_v36 = vrot.slane %v4561_v5, 7  ;;  %v10182_v11 = vrot.slane %v4562_v4, 6  ;;  %v3390_v7 = vrot.slane %v2481_v48, %v9808_v46  ;;  %v12476_v35 = vmax.f32 %v10103_v17, 0.0 }
 0x1b4   :  { %v10191_v34 = vmax.bf16 %v1931_v16, %v1091_v42  ;;  %v3404_v5 = vrot.slane %v2482_v22, %v9808_v46  ;;  %v3418_v32 = vrot.slane %v2483_v27, %v9808_v46  ;;  %v3446_v28 = vrot.slane %v2485_v9, %v9808_v46 }
 0x1b5   :  { %12474 = vst [vmem:[#allocation41_spill] sm:$0xff] %v10180_v36  ;;  %12475 = vst [vmem:[#allocation42_spill] sm:$0xff] %v10182_v11  ;;  %v730_v12 = vpack.c.bf16 %v10125_v26, %v12476_v35  ;;  %v10196_v51 = vmax.bf16 %v1936_v47, %v1093_v43  ;;  %v10199_v18 = vrot.slane %v3390_v7, %v9808_v46  ;;  %v12479_v27 = vmax.f32 %v10107_v15, 0.0 }
 0x1b6   :  { %v8494_v48 = vpack.c.bf16 %v10125_v26, %v10125_v26  ;;  %v3411_v35 = vrot.slane %v3404_v5, %v9808_v46  ;;  %v3425_v42 = vrot.slane %v3418_v32, %v9808_v46  ;;  %v10207_v16 = vrot.slane %v3446_v28, %v9808_v46 }
 0x1b7   :  { %12477 = vst [vmem:[#allocation43_spill] sm:$0xff] %v10199_v18  ;;  %v1201_v17 = vrot.slane %v730_v12, %v9808_v46  ;;  %v729_v9 = vpack.c.bf16 %v10127_v33, %v12479_v27  ;;  %v10216_v12 = vpop.f32.mrb[31].mxu0  ;;  %v8493_v15 = vpack.c.bf16 %v10127_v33, %v10127_v33 }
 0x1b8   :  { %12478 = vst [vmem:[#allocation44_spill] sm:$0xff] %v10207_v16  ;;  %v1208_v38 = vrot.slane %v8494_v48, %v9808_v46  ;;  %v4553_v4 = vunpack.c.l.b16 %v3411_v35  ;;  %v4554_v37 = vunpack.c.l.b16 %v3425_v42 }
 0x1b9   :  { %v1209_v47 = vcombine.high %v1201_v17, %v1201_v17  ;;  %v1217_v26 = vrot.slane %v1201_v17, %v9808_v46  ;;  %v1152_v28 = vrot.slane %v729_v9, %v9808_v46  ;;  %v1159_v43 = vrot.slane %v8493_v15, %v9808_v46 }
 0x1ba   :  { %v1210_v19 = vcombine.high %v1208_v38, %v1208_v38  ;;  %v1224_v62 = vrot.slane %v1208_v38, %v9808_v46  ;;  %v10232_v36 = vrot.slane %v4553_v4, 7 }
 0x1bb   :  { %v1231_v7 = vrot.slane %v1209_v47, %v9808_v46  ;;  %v1239_v60 = vcombine.high %v1217_v26, %v1217_v26  ;;  %v2026_v32 = vshrl.u32 %v1217_v26, 16  ;;  %v1160_v4 = vcombine.high %v1152_v28, %v1152_v28 }
 0x1bc   :  { %v1238_v48 = vrot.slane %v1210_v19, %v9808_v46  ;;  %v1240_v17 = vcombine.high %v1224_v62, %v1224_v62  ;;  %v2046_v22 = vshrl.u32 %v1224_v62, 16  ;;  %12481 = vst [vmem:[#allocation46_spill] sm:$0xff] %v10232_v36  ;;  %v10234_v19 = vrot.slane %v4554_v37, 6 }
 0x1bd   :  { %v1241_v27 = vcombine.high %v1231_v7, %v1231_v7  ;;  %v2031_v35 = vshrl.u32 %v1231_v7, 16  ;;  %v2036_v44 = vshrl.u32 %v1239_v60, 16  ;;  %v2505_v33 = vmax.bf16 %v2026_v32, %v1217_v26 }
 0x1be   :  { %v10229_v38 = vcombine.high %v1238_v48, %v1238_v48  ;;  %v2051_v23 = vshrl.u32 %v1238_v48, 16  ;;  %v2056_v42 = vshrl.u32 %v1240_v17, 16  ;;  %v2509_v11 = vmax.bf16 %v2046_v22, %v1224_v62  ;;  %12482 = vst [vmem:[#allocation47_spill] sm:$0xff] %v10234_v19 }
 0x1bf   :  { %v2041_v47 = vshrl.u32 %v1241_v27, 16  ;;  %v2506_v57 = vmax.bf16 %v2031_v35, %v1231_v7  ;;  %v2507_v5 = vmax.bf16 %v2036_v44, %v1239_v60  ;;  %v3726_v9 = vrot.slane %v2505_v33, %v9808_v46 }
 0x1c0   :  { %12480 = vst [vmem:[#allocation45_spill] sm:$0xff] %v10229_v38  ;;  %v10238_v18 = vmax.bf16 %v2051_v23, %v1238_v48  ;;  %v3782_v44 = vrot.slane %v2509_v11, %v9808_v46  ;;  %v10247_v62 = vmax.bf16 %v2056_v42, %v1240_v17  ;;  %v1161_v7 = vcombine.high %v1159_v43, %v1159_v43 }
 0x1c1   :  { %v10236_v16 = vmax.bf16 %v2041_v47, %v1241_v27  ;;  %v10241_v26 = vrot.slane %v3726_v9, %v9808_v46  ;;  %v3740_v15 = vrot.slane %v2506_v57, %v9808_v46  ;;  %v3754_v32 = vrot.slane %v2507_v5, %v9808_v46 }
 0x1c2   :  { %12484 = vst [vmem:[#allocation49_spill] sm:$0xff] %v10238_v18  ;;  %12486 = vst [vmem:[#allocation51_spill] sm:$0xff] %v10247_v62  ;;  %v10254_v48 = vrot.slane %v3782_v44, %v9808_v46  ;;  %v1168_v57 = vrot.slane %v1152_v28, %v9808_v46  ;;  %v1175_v11 = vrot.slane %v1159_v43, %v9808_v46  ;;  %v1741_v36 = vshrl.u32 %v10137_v13, 16 }
 0x1c3   :  { %12483 = vst [vmem:[#allocation48_spill] sm:$0xff] %v10236_v16  ;;  %12485 = vst [vmem:[#allocation50_spill] sm:$0xff] %v10241_v26  ;;  %v3747_v60 = vrot.slane %v3740_v15, %v9808_v46  ;;  %v3761_v23 = vrot.slane %v3754_v32, %v9808_v46  ;;  %v1182_v5 = vrot.slane %v1160_v4, %v9808_v46  ;;  %v1701_v4 = vshrl.u32 %v10133_v41, 16 }
 0x1c4   :  { %12487 = vst [vmem:[#allocation52_spill] sm:$0xff] %v10254_v48  ;;  %v1189_v17 = vrot.slane %v1161_v7, %v9808_v46  ;;  %v1190_v9 = vcombine.high %v1168_v57, %v1168_v57  ;;  %v1191_v15 = vcombine.high %v1175_v11, %v1175_v11  ;;  %v1986_v28 = vshrl.u32 %v1168_v57, 16 }
 0x1c5   :  { %v4577_v33 = vunpack.c.l.b16 %v3747_v60  ;;  %v4578_v47 = vunpack.c.l.b16 %v3761_v23  ;;  %v1192_v32 = vcombine.high %v1182_v5, %v1182_v5  ;;  %v1991_v43 = vshrl.u32 %v1182_v5, 16 }
 0x1c6   :  { %v10264_v44 = vcombine.high %v1189_v17, %v1189_v17  ;;  %v1996_v37 = vshrl.u32 %v1190_v9, 16  ;;  %v2006_v22 = vshrl.u32 %v1175_v11, 16  ;;  %v2011_v62 = vshrl.u32 %v1189_v17, 16 }
 0x1c7   :  { %v2001_v7 = vshrl.u32 %v1192_v32, 16  ;;  %v10267_v27 = vrot.slane %v4577_v33, 7  ;;  %v2016_v35 = vshrl.u32 %v1191_v15, 16  ;;  %v2497_v60 = vmax.bf16 %v1986_v28, %v1168_v57 }
 0x1c8   :  { %v2498_v23 = vmax.bf16 %v1991_v43, %v1182_v5  ;;  %v2499_v26 = vmax.bf16 %v1996_v37, %v1190_v9  ;;  %v2501_v48 = vmax.bf16 %v2006_v22, %v1175_v11  ;;  %v10271_v18 = vmax.bf16 %v2011_v62, %v1189_v17 }
 0x1c9   :  { %12488 = vst [vmem:[#allocation53_spill] sm:$0xff] %v10267_v27  ;;  %v10269_v42 = vmax.bf16 %v2001_v7, %v1192_v32  ;;  %v10273_v16 = vrot.slane %v4578_v47, 6  ;;  %v3614_v38 = vrot.slane %v2497_v60, %v9808_v46  ;;  %v10279_v27 = vmax.bf16 %v2016_v35, %v1191_v15 }
 0x1ca   :  { %v3628_v19 = vrot.slane %v2498_v23, %v9808_v46  ;;  %v3642_v57 = vrot.slane %v2499_v26, %v9808_v46  ;;  %v3670_v37 = vrot.slane %v2501_v48, %v9808_v46  ;;  %v12489_v11 = vshrl.u32 %v9851_v8, 16 }
 0x1cb   :  { %v10284_v22 = vrot.slane %v3614_v38, %v9808_v46  ;;  %v2440_v17 = vmax.bf16 %v1701_v4, %v10133_v41  ;;  %v12490_v47 = vshrl.u32 %v9828_v10, 16  ;;  %v2448_v41 = vmax.bf16 %v1741_v36, %v10137_v13 }
 0x1cc   :  { %v10287_v62 = vrot.slane %v3628_v19, %v9808_v46  ;;  %v2439_v5 = vmax.bf16 %v12489_v11, %v9851_v8  ;;  %v10294_v35 = vrot.slane %v3642_v57, %v9808_v46  ;;  %v10299_v48 = vrot.slane %v3670_v37, %v9808_v46 }
 0x1cd   :  { %v2447_v8 = vmax.bf16 %v12490_v47, %v9828_v10  ;;  %v2760_v9 = vrot.slane %v9869_v58, %v9808_v46  ;;  %v12491_v32 = vrot.slane %v9866_v56, %v9808_v46  ;;  %v2788_v43 = vrot.slane %v9876_v2, %v9808_v46 }
 0x1ce   :  { %v4569_v15 = vunpack.c.l.b16 %v10287_v62  ;;  %v2802_v4 = vrot.slane %v2439_v5, %v9808_v46  ;;  %v4570_v10 = vunpack.c.l.b16 %v10294_v35  ;;  %v2816_v58 = vrot.slane %v2440_v17, %v9808_v46 }
 0x1cf   :  { %v2781_v28 = vrot.slane %v12491_v32, %v9808_v46  ;;  %v2767_v36 = vrot.slane %v2760_v9, %v9808_v46  ;;  %v2872_v13 = vrot.slane %v9860_v49, %v9808_v46  ;;  %v2795_v56 = vrot.slane %v2788_v43, %v9808_v46 }
 0x1d0   :  { %v2809_v60 = vrot.slane %v2802_v4, %v9808_v46  ;;  %v12492_v2 = vrot.slane %v9840_v25, %v9808_v46  ;;  %v2823_v57 = vrot.slane %v2816_v58, %v9808_v46  ;;  %v2900_v49 = vrot.slane %v9843_v29, %v9808_v46 }
 0x1d1   :  { %v2879_v37 = vrot.slane %v2872_v13, %v9808_v46  ;;  %v2914_v11 = vrot.slane %v2447_v8, %v9808_v46  ;;  %v2928_v5 = vrot.slane %v2448_v41, %v9808_v46  ;;  %v4506_v17 = vunpack.c.l.b16 %v9901_v59 }
 0x1d2   :  { %v2893_v23 = vrot.slane %v12492_v2, %v9808_v46  ;;  %v4507_v47 = vunpack.c.l.b16 %v2767_v36  ;;  %v4508_v9 = vunpack.c.l.b16 %v2781_v28  ;;  %v2907_v32 = vrot.slane %v2900_v49, %v9808_v46 }
 0x1d3   :  { %v2921_v25 = vrot.slane %v2914_v11, %v9808_v46  ;;  %v4509_v43 = vunpack.c.l.b16 %v2795_v56  ;;  %v4510_v4 = vunpack.c.l.b16 %v2809_v60  ;;  %v2935_v58 = vrot.slane %v2928_v5, %v9808_v46 }
 0x1d4   :  { %v4511_v13 = vunpack.c.l.b16 %v2823_v57  ;;  %v4514_v2 = vunpack.c.l.b16 %v9863_v50  ;;  %v4515_v29 = vunpack.c.l.b16 %v2879_v37  ;;  %v4516_v7 = vunpack.c.l.b16 %v2893_v23 }
 0x1d5   :  { %v4517_v8 = vunpack.c.l.b16 %v2907_v32  ;;  %v4518_v19 = vunpack.c.l.b16 %v2921_v25  ;;  %v12493_v41 = vunpack.c.l.b16 %v9898_v6  ;;  %v4519_v28 = vunpack.c.l.b16 %v2935_v58 }
 0x1d6   :  { %v4635_v36 = vrot.slane %v4506_v17, 6  ;;  %v4638_v49 = vrot.slane %v4507_v47, 5  ;;  %v4641_v11 = vrot.slane %v4508_v9, 4  ;;  %v4644_v56 = vrot.slane %v4509_v43, 3 }
 0x1d7   :  { %v4634_v59 = vsel %vm4633_vm6, %v9912_v39, %v12493_v41  ;;  %v4647_v60 = vrot.slane %v4510_v4, 2  ;;  %v4650_v5 = vrot.slane %v4511_v13, 1  ;;  %v12494_v50 = vunpack.c.l.b16 %v9854_v40  ;;  %v10358_v40 = vld [vmem:[%s12380_s2] ss:$0 sm:$0xff] }
 0x1d8   :  { %v4637_v57 = vsel %vm4636_vm7, %v4635_v36, %v4634_v59  ;;  %v4655_v6 = vrot.slane %v4514_v2, 6  ;;  %v4657_v39 = vrot.slane %v4515_v29, 5  ;;  %v4659_v32 = vrot.slane %v4516_v7, 4 }
 0x1d9   :  { %v4654_v23 = vsel %vm4633_vm6, %v9873_v63, %v12494_v50  ;;  %v4640_v37 = vsel %vm4639_vm8, %v4638_v49, %v4637_v57  ;;  %v4661_v17 = vrot.slane %v4517_v8, 3  ;;  %v4663_v25 = vrot.slane %v4518_v19, 2 }
 0x1da   :  { %v4643_v47 = vsel %vm4642_vm9, %v4641_v11, %v4640_v37  ;;  %v4656_v9 = vsel %vm4636_vm7, %v4655_v6, %v4654_v23  ;;  %v4665_v43 = vrot.slane %v4519_v28, 1  ;;  %v651_v63 = vadd.f32 %v10358_v40, %v9942_v52 }
 0x1db   :  { %v4646_v4 = vsel %vm4645_vm10, %v4644_v56, %v4643_v47  ;;  %v4658_v58 = vsel %vm4639_vm8, %v4657_v39, %v4656_v9  ;;  %v643_v7 = vadd.f32 %v10358_v40, %v9949_v45  ;;  %v654_v2 = vadd.f32 %v10358_v40, %v9955_v1 }
 0x1dc   :  { %v4649_v13 = vsel %vm4648_vm11, %v4647_v60, %v4646_v4  ;;  %v4660_v19 = vsel %vm4642_vm9, %v4659_v32, %v4658_v58  ;;  %v646_v29 = vadd.f32 %v10358_v40, %v9966_v0  ;;  %v711_v59 = vmax.f32 %v651_v63, 0.0  ;;  %v12496_v60 = vld [vmem:[#allocation5_spill] sm:$0xff]  ;;  %v12502_v58 = vld [vmem:[#allocation6_spill] sm:$0xff] }
 0x1dd   :  { %v4652_v8 = vsel %vm4651_vm12, %v4650_v5, %v4649_v13  ;;  %v4662_v41 = vsel %vm4645_vm10, %v4661_v17, %v4660_v19  ;;  %v709_v28 = vmax.f32 %v643_v7, 0.0  ;;  %v712_v36 = vmax.f32 %v654_v2, 0.0 }
 0x1de   :  { %v4664_v52 = vsel %vm4648_vm11, %v4663_v25, %v4662_v41  ;;  %v710_v45 = vmax.f32 %v646_v29, 0.0  ;;  %v12495_v49 = vshrl.u32 %v9974_v31, 16  ;;  %v10378_v1 = vrot.slane %v4569_v15, 7 }
 0x1df   :  { %v10382_v0 = vrot.slane %v4570_v10, 6  ;;  %v4666_v56 = vsel %vm4651_vm12, %v4665_v43, %v4664_v52  ;;  %v12497_v5 = vshrl.u32 %v12496_v60, 16  ;;  %v732_v23 = vpack.c.bf16 %v712_v36, %v711_v59  ;;  %v12504_v59 = vld [vmem:[#allocation8_spill] sm:$0xff] }
 0x1e0   :  { %v2456_v11 = vmax.bf16 %v12495_v49, %v9974_v31  ;;  %v4863_v50 = vpack.c.b16 %v4666_v56, %v4652_v8  ;;  %v8496_v6 = vpack.c.bf16 %v712_v36, %v712_v36  ;;  %v731_v37 = vpack.c.bf16 %v710_v45, %v709_v28 }
 0x1e1   :  { %v10388_v57 = vmax.bf16 %v12497_v5, %v12496_v60  ;;  %v8495_v31 = vpack.c.bf16 %v710_v45, %v710_v45  ;;  %v12498_v62 = vrot.slane %v9983_v21, %v9808_v46  ;;  %v3026_v35 = vrot.slane %v9993_v55, %v9808_v46  ;;  %v12500_v55 = vld [vmem:[#allocation7_spill] sm:$0xff] }
 0x1e2   :  { %v3040_v10 = vrot.slane %v2456_v11, %v9808_v46  ;;  %9294 = vmatprep.mubr.bf16.mxu1 %v4863_v50  ;;  %v1299_v39 = vrot.slane %v732_v23, %v9808_v46  ;;  %v1306_v32 = vrot.slane %v8496_v6, %v9808_v46  ;;  %v1250_v17 = vrot.slane %v731_v37, %v9808_v46 }
 0x1e3   :  { %v10394_v15 = vrot.slane %v12498_v62, %v9808_v46  ;;  %v12499_v47 = vrot.slane %v9988_v20, %v9808_v46  ;;  %v1257_v21 = vrot.slane %v8495_v31, %v9808_v46  ;;  %v10410_v25 = vrot.slane %v3026_v35, %v9808_v46 }
 0x1e4   :  { %v12501_v43 = vrot.slane %v12500_v55, %v9808_v46  ;;  %v12503_v63 = vrot.slane %v12502_v58, %v9808_v46  ;;  %v1307_v20 = vcombine.high %v1299_v39, %v1299_v39  ;;  %v1308_v13 = vcombine.high %v1306_v32, %v1306_v32 }
 0x1e5   :  { %v10406_v9 = vrot.slane %v12499_v47, %v9808_v46  ;;  %v1315_v19 = vrot.slane %v1299_v39, %v9808_v46  ;;  %v1322_v2 = vrot.slane %v1306_v32, %v9808_v46  ;;  %v1258_v29 = vcombine.high %v1250_v17, %v1250_v17 }
 0x1e6   :  { %v10416_v4 = vrot.slane %v12501_v43, %v9808_v46  ;;  %v10422_v7 = vrot.slane %v12503_v63, %v9808_v46  ;;  %v1259_v8 = vcombine.high %v1257_v21, %v1257_v21  ;;  %v10427_v41 = vrot.slane %v3040_v10, %v9808_v46 }
 0x1e7   :  { %v1329_v52 = vrot.slane %v1307_v20, %v9808_v46  ;;  %v1336_v36 = vrot.slane %v1308_v13, %v9808_v46  ;;  %v1337_v45 = vcombine.high %v1315_v19, %v1315_v19  ;;  %v1338_v49 = vcombine.high %v1322_v2, %v1322_v2 }
 0x1e8   :  { %v2106_v11 = vshrl.u32 %v1315_v19, 16  ;;  %v2126_v56 = vshrl.u32 %v1322_v2, 16  ;;  %v1266_v60 = vrot.slane %v1250_v17, %v9808_v46  ;;  %v1273_v5 = vrot.slane %v1257_v21, %v9808_v46 }
 0x1e9   :  { %v1339_v50 = vcombine.high %v1329_v52, %v1329_v52  ;;  %v10435_v23 = vcombine.high %v1336_v36, %v1336_v36  ;;  %v2111_v6 = vshrl.u32 %v1329_v52, 16  ;;  %v2116_v37 = vshrl.u32 %v1337_v45, 16 }
 0x1ea   :  { %v2131_v31 = vshrl.u32 %v1336_v36, 16  ;;  %v2136_v62 = vshrl.u32 %v1338_v49, 16  ;;  %v2521_v35 = vmax.bf16 %v2106_v11, %v1315_v19  ;;  %v2525_v10 = vmax.bf16 %v2126_v56, %v1322_v2 }
 0x1eb   :  { %v2121_v39 = vshrl.u32 %v1339_v50, 16  ;;  %v2522_v32 = vmax.bf16 %v2111_v6, %v1329_v52  ;;  %v2523_v47 = vmax.bf16 %v2116_v37, %v1337_v45  ;;  %v1280_v55 = vrot.slane %v1258_v29, %v9808_v46 }
 0x1ec   :  { %v10438_v43 = vmax.bf16 %v2131_v31, %v1336_v36  ;;  %v3950_v17 = vrot.slane %v2521_v35, %v9808_v46  ;;  %v4006_v21 = vrot.slane %v2525_v10, %v9808_v46  ;;  %v1287_v58 = vrot.slane %v1259_v8, %v9808_v46 }
 0x1ed   :  { %v10443_v63 = vmax.bf16 %v2121_v39, %v1339_v50  ;;  %v3964_v20 = vrot.slane %v2522_v32, %v9808_v46  ;;  %v3978_v13 = vrot.slane %v2523_v47, %v9808_v46  ;;  %v1288_v19 = vcombine.high %v1266_v60, %v1266_v60 }
 0x1ee   :  { %v10448_v52 = vmax.bf16 %v2136_v62, %v1338_v49  ;;  %v10451_v29 = vrot.slane %v3950_v17, %v9808_v46  ;;  %v1289_v36 = vcombine.high %v1273_v5, %v1273_v5  ;;  %v10456_v8 = vrot.slane %v4006_v21, %v9808_v46 }
 0x1ef   :  { %v3971_v45 = vrot.slane %v3964_v20, %v9808_v46  ;;  %v3985_v11 = vrot.slane %v3978_v13, %v9808_v46  ;;  %v1290_v56 = vcombine.high %v1280_v55, %v1280_v55  ;;  %v10462_v49 = vcombine.high %v1287_v58, %v1287_v58 }
 0x1f0   :  { %12505 = vst [vmem:[#allocation5_spill] sm:$0xff] %v10448_v52  ;;  %12506 = vst [vmem:[#allocation7_spill] sm:$0xff] %v10451_v29  ;;  %v2066_v37 = vshrl.u32 %v1266_v60, 16  ;;  %v2071_v35 = vshrl.u32 %v1280_v55, 16  ;;  %v2076_v10 = vshrl.u32 %v1288_v19, 16  ;;  %v2086_v32 = vshrl.u32 %v1273_v5, 16 }
 0x1f1   :  { %12507 = vst [vmem:[#allocation6_spill] sm:$0xff] %v10456_v8  ;;  %v4593_v31 = vunpack.c.l.b16 %v3971_v45  ;;  %v4594_v62 = vunpack.c.l.b16 %v3985_v11  ;;  %v2081_v39 = vshrl.u32 %v1290_v56, 16  ;;  %v2091_v47 = vshrl.u32 %v1287_v58, 16 }
 0x1f2   :  { %v2096_v17 = vshrl.u32 %v1289_v36, 16  ;;  %v2513_v50 = vmax.bf16 %v2066_v37, %v1266_v60  ;;  %v2514_v2 = vmax.bf16 %v2071_v35, %v1280_v55  ;;  %v2515_v6 = vmax.bf16 %v2076_v10, %v1288_v19 }
 0x1f3   :  { %v10466_v13 = vrot.slane %v4593_v31, 7  ;;  %v10468_v38 = vmax.bf16 %v2081_v39, %v1290_v56  ;;  %v2517_v26 = vmax.bf16 %v2086_v32, %v1273_v5  ;;  %v10470_v45 = vrot.slane %v4594_v62, 6 }
 0x1f4   :  { %v10473_v33 = vmax.bf16 %v2091_v47, %v1287_v58  ;;  %v3838_v28 = vrot.slane %v2513_v50, %v9808_v46  ;;  %v10476_v52 = vmax.bf16 %v2096_v17, %v1289_v36  ;;  %v3852_v20 = vrot.slane %v2514_v2, %v9808_v46  ;;  %v12513_v17 = vld [vmem:[#allocation18_spill] sm:$0xff] }
 0x1f5   :  { %12508 = vst [vmem:[#allocation8_spill] sm:$0xff] %v10466_v13  ;;  %12509 = vst [vmem:[#allocation54_spill] sm:$0xff] %v10470_v45  ;;  %v3866_v31 = vrot.slane %v2515_v6, %v9808_v46  ;;  %v3894_v60 = vrot.slane %v2517_v26, %v9808_v46  ;;  %v12510_v58 = vrot.slane %v12504_v59, %v9808_v46  ;;  %v4525_v59 = vunpack.c.l.b16 %v10406_v9 }
 0x1f6   :  { %v10482_v55 = vrot.slane %v3838_v28, %v9808_v46  ;;  %v3152_v36 = vrot.slane %v10388_v57, %v9808_v46  ;;  %v3859_v2 = vrot.slane %v3852_v20, %v9808_v46  ;;  %v4523_v28 = vunpack.c.l.b16 %v10394_v15  ;;  %v12518_v57 = vld [vmem:[#allocation11_spill] sm:$0xff] }
 0x1f7   :  { %v3145_v19 = vrot.slane %v12510_v58, %v9808_v46  ;;  %v3873_v56 = vrot.slane %v3866_v31, %v9808_v46  ;;  %v10495_v26 = vrot.slane %v3894_v60, %v9808_v46  ;;  %v4526_v37 = vunpack.c.l.b16 %v10410_v25 }
 0x1f8   :  { %v3159_v6 = vrot.slane %v3152_v36, %v9808_v46  ;;  %v4585_v62 = vunpack.c.l.b16 %v3859_v2  ;;  %v4527_v35 = vunpack.c.l.b16 %v10427_v41  ;;  %v4531_v10 = vunpack.c.l.b16 %v10416_v4  ;;  %v12514_v41 = vld [vmem:[#allocation13_spill] sm:$0xff] }
 0x1f9   :  { %12511 = vst [vmem:[#allocation55_spill] sm:$0xff] %v10495_v26  ;;  %v4586_v39 = vunpack.c.l.b16 %v3873_v56  ;;  %v4533_v15 = vunpack.c.l.b16 %v10422_v7  ;;  %v12512_v47 = vunpack.c.l.b16 %v9996_v24  ;;  %v4534_v9 = vunpack.c.l.b16 %v3145_v19  ;;  %v12516_v24 = vld [vmem:[#allocation9_spill] sm:$0xff] }
 0x1fa   :  { %v4535_v31 = vunpack.c.l.b16 %v3159_v6  ;;  %v4671_v60 = vrot.slane %v4523_v28, 5  ;;  %v10514_v58 = vrot.slane %v4585_v62, 7  ;;  %v12515_v4 = vunpack.c.l.b16 %v12514_v41  ;;  %v12520_v62 = vld [vmem:[#allocation10_spill] sm:$0xff] }
 0x1fb   :  { %v4668_v20 = vsel %vm4633_vm6, %v12513_v17, %v12512_v47  ;;  %v4675_v2 = vrot.slane %v4525_v59, 3  ;;  %v4677_v56 = vrot.slane %v4526_v37, 2  ;;  %v4679_v21 = vrot.slane %v4527_v35, 1 }
 0x1fc   :  { %v4670_v25 = vsel %vm4636_vm7, %v10027_v3, %v4668_v20  ;;  %v4673_v36 = vrot.slane %v12515_v4, 4  ;;  %v12517_v32 = vunpack.c.l.b16 %v12516_v24  ;;  %v4685_v6 = vrot.slane %v4531_v10, 5  ;;  %v12519_v3 = vld [vmem:[#allocation12_spill] sm:$0xff] }
 0x1fd   :  { %v4672_v7 = vsel %vm4639_vm8, %v4671_v60, %v4670_v25  ;;  %v12521_v17 = vunpack.c.l.b16 %v12520_v62  ;;  %v4689_v41 = vrot.slane %v4533_v15, 3  ;;  %v4691_v35 = vrot.slane %v4534_v9, 2  ;;  %v12522_v25 = vld [vmem:[#allocation14_spill] sm:$0xff] }
 0x1fe   :  { %v4682_v19 = vsel %vm4633_vm6, %v12518_v57, %v12517_v32  ;;  %v4674_v47 = vsel %vm4642_vm9, %v4673_v36, %v4672_v7  ;;  %v667_v60 = vadd.f32 %v10358_v40, %v12522_v25  ;;  %v12523_v32 = vld [vmem:[#allocation15_spill] sm:$0xff]  ;;  %v12524_v36 = vld [vmem:[#allocation16_spill] sm:$0xff]  ;;  %v4693_v24 = vrot.slane %v4535_v31, 1 }
 0x1ff   :  { %v4684_v28 = vsel %vm4636_vm7, %v12519_v3, %v4682_v19  ;;  %v4687_v20 = vrot.slane %v12521_v17, 4  ;;  %v4676_v59 = vsel %vm4645_vm10, %v4675_v2, %v4674_v47  ;;  %v659_v4 = vadd.f32 %v10358_v40, %v12523_v32  ;;  %v12525_v19 = vld [vmem:[#allocation24_spill] sm:$0xff] }
 0x200   :  { %v4686_v37 = vsel %vm4639_vm8, %v4685_v6, %v4684_v28  ;;  %v4678_v57 = vsel %vm4648_vm11, %v4677_v56, %v4676_v59  ;;  %v670_v7 = vadd.f32 %v10358_v40, %v12524_v36  ;;  %v662_v9 = vadd.f32 %v10358_v40, %v12525_v19  ;;  %v12532_v19 = vld [vmem:[#allocation19_spill] sm:$0xff] }
 0x201   :  { %v4688_v10 = vsel %vm4642_vm9, %v4687_v20, %v4686_v37  ;;  %v4680_v15 = vsel %vm4651_vm12, %v4679_v21, %v4678_v57  ;;  %v715_v47 = vmax.f32 %v667_v60, 0.0  ;;  %v12526_v3 = vshrl.u32 %v10065_v30, 16  ;;  %v12527_v37 = vld [vmem:[#allocation17_spill] sm:$0xff] }
 0x202   :  { %v4690_v2 = vsel %vm4645_vm10, %v4689_v41, %v4688_v10  ;;  %v716_v56 = vmax.f32 %v670_v7, 0.0  ;;  %v10546_v62 = vrot.slane %v4586_v39, 6  ;;  %v713_v20 = vmax.f32 %v659_v4, 0.0  ;;  %v12530_v7 = vld [vmem:[#allocation27_spill] sm:$0xff] }
 0x203   :  { %v4692_v6 = vsel %vm4648_vm11, %v4691_v35, %v4690_v2  ;;  %v2472_v28 = vmax.bf16 %v12526_v3, %v10065_v30  ;;  %v714_v21 = vmax.f32 %v662_v9, 0.0  ;;  %v12528_v25 = vshrl.u32 %v12527_v37, 16 }
 0x204   :  { %v4694_v17 = vsel %vm4651_vm12, %v4693_v24, %v4692_v6  ;;  %v734_v41 = vpack.c.bf16 %v716_v56, %v715_v47  ;;  %v8498_v31 = vpack.c.bf16 %v716_v56, %v716_v56  ;;  %v3250_v10 = vrot.slane %v10080_v14, %v9808_v46 }
 0x205   :  { %v4864_v59 = vpack.c.b16 %v4694_v17, %v4680_v15  ;;  %v10552_v57 = vmax.bf16 %v12528_v25, %v12527_v37  ;;  %v733_v35 = vpack.c.bf16 %v714_v21, %v713_v20  ;;  %v8497_v60 = vpack.c.bf16 %v714_v21, %v714_v21 }
 0x206   :  { %v3264_v30 = vrot.slane %v2472_v28, %v9808_v46  ;;  %v1397_v39 = vrot.slane %v734_v41, %v9808_v46  ;;  %v1404_v32 = vrot.slane %v8498_v31, %v9808_v46  ;;  %v12529_v4 = vrot.slane %v10076_v61, %v9808_v46  ;;  %v12534_v61 = vld [vmem:[#allocation20_spill] sm:$0xff] }
 0x207   :  { %9295 = vmatmul.mubr.bf16.vlgmr.msra.gmra.mrb[0].mxu1 %v4864_v59  ;;  %v12531_v15 = vrot.slane %v12530_v7, %v9808_v46  ;;  %v1348_v14 = vrot.slane %v733_v35, %v9808_v46  ;;  %v1355_v24 = vrot.slane %v8497_v60, %v9808_v46  ;;  %v12533_v9 = vrot.slane %v12532_v19, %v9808_v46 }
 0x208   :  { %v10563_v36 = vrot.slane %v12529_v4, %v9808_v46  ;;  %v12535_v47 = vrot.slane %v12534_v61, %v9808_v46  ;;  %v1405_v3 = vcombine.high %v1397_v39, %v1397_v39  ;;  %v1406_v28 = vcombine.high %v1404_v32, %v1404_v32 }
 0x209   :  { %v10569_v2 = vrot.slane %v12531_v15, %v9808_v46  ;;  %v10577_v6 = vrot.slane %v12533_v9, %v9808_v46  ;;  %v1413_v17 = vrot.slane %v1397_v39, %v9808_v46  ;;  %v1420_v20 = vrot.slane %v1404_v32, %v9808_v46 }
 0x20a   :  { %v10583_v56 = vrot.slane %v12535_v47, %v9808_v46  ;;  %v1356_v21 = vcombine.high %v1348_v14, %v1348_v14  ;;  %v1357_v59 = vcombine.high %v1355_v24, %v1355_v24  ;;  %v10588_v41 = vrot.slane %v3250_v10, %v9808_v46 }
 0x20b   :  { %v10591_v31 = vrot.slane %v3264_v30, %v9808_v46  ;;  %v1427_v37 = vrot.slane %v1405_v3, %v9808_v46  ;;  %v1434_v25 = vrot.slane %v1406_v28, %v9808_v46  ;;  %v1435_v35 = vcombine.high %v1413_v17, %v1413_v17 }
 0x20c   :  { %v1436_v60 = vcombine.high %v1420_v20, %v1420_v20  ;;  %v2186_v4 = vshrl.u32 %v1413_v17, 16  ;;  %v2206_v7 = vshrl.u32 %v1420_v20, 16  ;;  %v1364_v39 = vrot.slane %v1348_v14, %v9808_v46 }
 0x20d   :  { %v1371_v32 = vrot.slane %v1355_v24, %v9808_v46  ;;  %v1437_v15 = vcombine.high %v1427_v37, %v1427_v37  ;;  %v10597_v19 = vcombine.high %v1434_v25, %v1434_v25  ;;  %v2191_v10 = vshrl.u32 %v1427_v37, 16 }
 0x20e   :  { %v2196_v9 = vshrl.u32 %v1435_v35, 16  ;;  %v2211_v61 = vshrl.u32 %v1434_v25, 16  ;;  %v2216_v30 = vshrl.u32 %v1436_v60, 16  ;;  %v2537_v47 = vmax.bf16 %v2186_v4, %v1413_v17 }
 0x20f   :  { %12536 = vst [vmem:[#allocation18_spill] sm:$0xff] %v10597_v19  ;;  %v2541_v50 = vmax.bf16 %v2206_v7, %v1420_v20  ;;  %v2201_v3 = vshrl.u32 %v1437_v15, 16  ;;  %v2538_v5 = vmax.bf16 %v2191_v10, %v1427_v37  ;;  %v1378_v11 = vrot.slane %v1356_v21, %v9808_v46 }
 0x210   :  { %v2539_v28 = vmax.bf16 %v2196_v9, %v1435_v35  ;;  %v10600_v45 = vmax.bf16 %v2211_v61, %v1434_v25  ;;  %v4174_v14 = vrot.slane %v2537_v47, %v9808_v46  ;;  %v1385_v8 = vrot.slane %v1357_v59, %v9808_v46 }
 0x211   :  { %v4230_v24 = vrot.slane %v2541_v50, %v9808_v46  ;;  %v10605_v13 = vmax.bf16 %v2201_v3, %v1437_v15  ;;  %v4188_v29 = vrot.slane %v2538_v5, %v9808_v46  ;;  %v1386_v20 = vcombine.high %v1364_v39, %v1364_v39 }
 0x212   :  { %12537 = vst [vmem:[#allocation13_spill] sm:$0xff] %v10600_v45  ;;  %v4202_v17 = vrot.slane %v2539_v28, %v9808_v46  ;;  %v10610_v35 = vmax.bf16 %v2216_v30, %v1436_v60  ;;  %v10613_v21 = vrot.slane %v4174_v14, %v9808_v46  ;;  %v1387_v4 = vcombine.high %v1371_v32, %v1371_v32 }
 0x213   :  { %12538 = vst [vmem:[#allocation9_spill] sm:$0xff] %v10605_v13  ;;  %v10616_v25 = vrot.slane %v4230_v24, %v9808_v46  ;;  %v4195_v50 = vrot.slane %v4188_v29, %v9808_v46  ;;  %v1388_v7 = vcombine.high %v1378_v11, %v1378_v11  ;;  %v10624_v60 = vcombine.high %v1385_v8, %v1385_v8  ;;  %v12550_v24 = vld [vmem:[#allocation29_spill] sm:$0xff] }
 0x214   :  { %12539 = vst [vmem:[#allocation11_spill] sm:$0xff] %v10610_v35  ;;  %12540 = vst [vmem:[#allocation12_spill] sm:$0xff] %v10613_v21  ;;  %v4209_v59 = vrot.slane %v4202_v17, %v9808_v46  ;;  %v2146_v10 = vshrl.u32 %v1364_v39, 16  ;;  %v2151_v30 = vshrl.u32 %v1378_v11, 16  ;;  %v2156_v47 = vshrl.u32 %v1386_v20, 16  ;;  %v12544_v21 = vld [vmem:[#allocation21_spill] sm:$0xff] }
 0x215   :  { %12541 = vst [vmem:[#allocation10_spill] sm:$0xff] %v10616_v25  ;;  %v4609_v9 = vunpack.c.l.b16 %v4195_v50  ;;  %v2161_v29 = vshrl.u32 %v1388_v7, 16  ;;  %v2166_v28 = vshrl.u32 %v1371_v32, 16  ;;  %v2171_v14 = vshrl.u32 %v1385_v8, 16 }
 0x216   :  { %v4610_v61 = vunpack.c.l.b16 %v4209_v59  ;;  %v2176_v5 = vshrl.u32 %v1387_v4, 16  ;;  %v2529_v37 = vmax.bf16 %v2146_v10, %v1364_v39  ;;  %v2530_v15 = vmax.bf16 %v2151_v30, %v1378_v11 }
 0x217   :  { %v10628_v17 = vrot.slane %v4609_v9, 7  ;;  %v2531_v45 = vmax.bf16 %v2156_v47, %v1386_v20  ;;  %v2533_v13 = vmax.bf16 %v2166_v28, %v1371_v32  ;;  %v10633_v59 = vmax.bf16 %v2161_v29, %v1388_v7 }
 0x218   :  { %v10630_v35 = vrot.slane %v4610_v61, 6  ;;  %v4062_v3 = vrot.slane %v2529_v37, %v9808_v46  ;;  %v3362_v19 = vrot.slane %v12544_v21, %v9808_v46  ;;  %v10638_v26 = vmax.bf16 %v2171_v14, %v1385_v8 }
 0x219   :  { %12542 = vst [vmem:[#allocation14_spill] sm:$0xff] %v10628_v17  ;;  %v4076_v9 = vrot.slane %v2530_v15, %v9808_v46  ;;  %v4090_v39 = vrot.slane %v2531_v45, %v9808_v46  ;;  %v4118_v10 = vrot.slane %v2533_v13, %v9808_v46  ;;  %v10643_v11 = vmax.bf16 %v2176_v5, %v1387_v4 }
 0x21a   :  { %12543 = vst [vmem:[#allocation15_spill] sm:$0xff] %v10630_v35  ;;  %v10646_v32 = vrot.slane %v4062_v3, %v9808_v46  ;;  %v3369_v20 = vrot.slane %v3362_v19, %v9808_v46  ;;  %v3376_v37 = vrot.slane %v10552_v57, %v9808_v46  ;;  %v4539_v45 = vunpack.c.l.b16 %v10563_v36 }
 0x21b   :  { %v4083_v21 = vrot.slane %v4076_v9, %v9808_v46  ;;  %v4097_v8 = vrot.slane %v4090_v39, %v9808_v46  ;;  %v10654_v7 = vrot.slane %v4118_v10, %v9808_v46  ;;  %v4541_v5 = vunpack.c.l.b16 %v10569_v2  ;;  %v12546_v2 = vld [vmem:[#allocation28_spill] sm:$0xff] }
 0x21c   :  { %v3383_v4 = vrot.slane %v3376_v37, %v9808_v46  ;;  %v4542_v19 = vunpack.c.l.b16 %v10588_v41  ;;  %v4543_v30 = vunpack.c.l.b16 %v10591_v31  ;;  %v4547_v3 = vunpack.c.l.b16 %v10577_v6  ;;  %v12548_v41 = vld [vmem:[#allocation30_spill] sm:$0xff]  ;;  %v12549_v37 = vld [vmem:[#allocation31_spill] sm:$0xff] }
 0x21d   :  { %12545 = vst [vmem:[#allocation16_spill] sm:$0xff] %v10654_v7  ;;  %v4601_v61 = vunpack.c.l.b16 %v4083_v21  ;;  %v4602_v47 = vunpack.c.l.b16 %v4097_v8  ;;  %v4549_v29 = vunpack.c.l.b16 %v10583_v56  ;;  %v4550_v28 = vunpack.c.l.b16 %v3369_v20  ;;  %v12552_v56 = vld [vmem:[#allocation22_spill] sm:$0xff] }
 0x21e   :  { %v4551_v14 = vunpack.c.l.b16 %v3383_v4  ;;  %v12547_v9 = vunpack.c.l.b16 %v12546_v2  ;;  %v4699_v10 = vrot.slane %v4539_v45, 5  ;;  %v12551_v31 = vunpack.c.l.b16 %v12550_v24  ;;  %v12554_v4 = vld [vmem:[#allocation25_spill] sm:$0xff]  ;;  %v12555_v45 = vld [vmem:[#allocation26_spill] sm:$0xff] }
 0x21f   :  { %v4703_v15 = vrot.slane %v4541_v5, 3  ;;  %v4705_v36 = vrot.slane %v4542_v19, 2  ;;  %v4707_v57 = vrot.slane %v4543_v30, 1  ;;  %v12553_v20 = vunpack.c.l.b16 %v12552_v56 }
 0x220   :  { %v4696_v39 = vsel %vm4633_vm6, %v12548_v41, %v12547_v9  ;;  %v4701_v8 = vrot.slane %v12551_v31, 4  ;;  %v4713_v13 = vrot.slane %v4547_v3, 5  ;;  %v4717_v31 = vrot.slane %v4549_v29, 3  ;;  %v12558_v3 = vld [vmem:[#allocation35_spill] sm:$0xff] }
 0x221   :  { %v4698_v21 = vsel %vm4636_vm7, %v12549_v37, %v4696_v39  ;;  %v4710_v2 = vsel %vm4633_vm6, %v12554_v4, %v12553_v20  ;;  %v12556_v39 = vld [vmem:[#allocation23_spill] sm:$0xff]  ;;  %v4719_v30 = vrot.slane %v4550_v28, 2  ;;  %v10701_v28 = vrot.slane %v4601_v61, 7 }
 0x222   :  { %v4700_v6 = vsel %vm4639_vm8, %v4699_v10, %v4698_v21  ;;  %v4712_v41 = vsel %vm4636_vm7, %v12555_v45, %v4710_v2  ;;  %v12557_v37 = vunpack.c.l.b16 %v12556_v39  ;;  %v4721_v10 = vrot.slane %v4551_v14, 1  ;;  %v12560_v2 = vld [vmem:[#allocation40_spill] sm:$0xff] }
 0x223   :  { %v4702_v9 = vsel %vm4642_vm9, %v4701_v8, %v4700_v6  ;;  %v4714_v19 = vsel %vm4639_vm8, %v4713_v13, %v4712_v41  ;;  %v683_v8 = vadd.f32 %v10358_v40, %v12558_v3  ;;  %v12559_v6 = vld [vmem:[#allocation39_spill] sm:$0xff]  ;;  %v678_v13 = vadd.f32 %v10358_v40, %v10216_v12 }
 0x224   :  { %v4715_v24 = vrot.slane %v12557_v37, 4  ;;  %v4704_v5 = vsel %vm4645_vm10, %v4703_v15, %v4702_v9  ;;  %v675_v20 = vadd.f32 %v10358_v40, %v12559_v6  ;;  %v686_v15 = vadd.f32 %v10358_v40, %v12560_v2 }
 0x225   :  { %v4706_v21 = vsel %vm4648_vm11, %v4705_v36, %v4704_v5  ;;  %v719_v14 = vmax.f32 %v683_v8, 0.0  ;;  %v12561_v9 = vshrl.u32 %v10176_v53, 16  ;;  %v718_v37 = vmax.f32 %v678_v13, 0.0  ;;  %v12563_v5 = vld [vmem:[#allocation32_spill] sm:$0xff]  ;;  %v12569_v13 = vld [vmem:[#allocation33_spill] sm:$0xff] }
 0x226   :  { %v4716_v56 = vsel %vm4642_vm9, %v4715_v24, %v4714_v19  ;;  %v4708_v4 = vsel %vm4651_vm12, %v4707_v57, %v4706_v21  ;;  %v717_v57 = vmax.f32 %v675_v20, 0.0  ;;  %v720_v39 = vmax.f32 %v686_v15, 0.0 }
 0x227   :  { %v4718_v29 = vsel %vm4645_vm10, %v4717_v31, %v4716_v56  ;;  %v2488_v45 = vmax.bf16 %v12561_v9, %v10176_v53  ;;  %v10708_v24 = vrot.slane %v4602_v47, 6  ;;  %v12564_v12 = vshrl.u32 %v12563_v5, 16  ;;  %v12571_v9 = vld [vmem:[#allocation36_spill] sm:$0xff] }
 0x228   :  { %v4720_v36 = vsel %vm4648_vm11, %v4719_v30, %v4718_v29  ;;  %v3474_v61 = vrot.slane %v10196_v51, %v9808_v46  ;;  %v736_v19 = vpack.c.bf16 %v720_v39, %v719_v14  ;;  %v8500_v30 = vpack.c.bf16 %v720_v39, %v720_v39 }
 0x229   :  { %v4722_v41 = vsel %vm4651_vm12, %v4721_v10, %v4720_v36  ;;  %12562 = vst [vmem:[#allocation24_spill] sm:$0xff] %v10708_v24  ;;  %v10713_v40 = vmax.bf16 %v12564_v12, %v12563_v5  ;;  %v735_v21 = vpack.c.bf16 %v718_v37, %v717_v57  ;;  %v8499_v53 = vpack.c.bf16 %v718_v37, %v718_v37 }
 0x22a   :  { %v4865_v31 = vpack.c.b16 %v4722_v41, %v4708_v4  ;;  %v12565_v10 = vrot.slane %v10185_v54, %v9808_v46  ;;  %v12566_v56 = vrot.slane %v10191_v34, %v9808_v46  ;;  %v10730_v8 = vrot.slane %v3474_v61, %v9808_v46  ;;  %v12567_v34 = vld [vmem:[#allocation34_spill] sm:$0xff] }
 0x22b   :  { %v3488_v51 = vrot.slane %v2488_v45, %v9808_v46  ;;  %v1495_v6 = vrot.slane %v736_v19, %v9808_v46  ;;  %v1502_v20 = vrot.slane %v8500_v30, %v9808_v46  ;;  %v1446_v4 = vrot.slane %v735_v21, %v9808_v46 }
 0x22c   :  { %9298 = vmatprep.mubr.bf16.mxu1 %v4865_v31  ;;  %v10721_v47 = vrot.slane %v12565_v10, %v9808_v46  ;;  %v10727_v3 = vrot.slane %v12566_v56, %v9808_v46  ;;  %v1453_v54 = vrot.slane %v8499_v53, %v9808_v46  ;;  %v12568_v2 = vrot.slane %v12567_v34, %v9808_v46 }
 0x22d   :  { %v10738_v29 = vrot.slane %v3488_v51, %v9808_v46  ;;  %v12570_v36 = vrot.slane %v12569_v13, %v9808_v46  ;;  %v1503_v41 = vcombine.high %v1495_v6, %v1495_v6  ;;  %v1504_v57 = vcombine.high %v1502_v20, %v1502_v20 }
 0x22e   :  { %v10744_v15 = vrot.slane %v12568_v2, %v9808_v46  ;;  %v1511_v39 = vrot.slane %v1495_v6, %v9808_v46  ;;  %v1518_v37 = vrot.slane %v1502_v20, %v9808_v46  ;;  %v1454_v31 = vcombine.high %v1446_v4, %v1446_v4 }
 0x22f   :  { %v10750_v14 = vrot.slane %v12570_v36, %v9808_v46  ;;  %v1455_v5 = vcombine.high %v1453_v54, %v1453_v54  ;;  %v1525_v19 = vrot.slane %v1503_v41, %v9808_v46  ;;  %v1532_v30 = vrot.slane %v1504_v57, %v9808_v46 }
 0x230   :  { %v1533_v21 = vcombine.high %v1511_v39, %v1511_v39  ;;  %v1534_v53 = vcombine.high %v1518_v37, %v1518_v37  ;;  %v2266_v10 = vshrl.u32 %v1511_v39, 16  ;;  %v2286_v56 = vshrl.u32 %v1518_v37, 16 }
 0x231   :  { %v1462_v51 = vrot.slane %v1446_v4, %v9808_v46  ;;  %v1469_v6 = vrot.slane %v1453_v54, %v9808_v46  ;;  %v1535_v20 = vcombine.high %v1525_v19, %v1525_v19  ;;  %v10763_v34 = vcombine.high %v1532_v30, %v1532_v30 }
 0x232   :  { %v2271_v2 = vshrl.u32 %v1525_v19, 16  ;;  %v2276_v13 = vshrl.u32 %v1533_v21, 16  ;;  %v2291_v36 = vshrl.u32 %v1532_v30, 16  ;;  %v2296_v50 = vshrl.u32 %v1534_v53, 16 }
 0x233   :  { %v2553_v61 = vmax.bf16 %v2266_v10, %v1511_v39  ;;  %v2557_v12 = vmax.bf16 %v2286_v56, %v1518_v37  ;;  %v2281_v41 = vshrl.u32 %v1535_v20, 16  ;;  %v1476_v35 = vrot.slane %v1454_v31, %v9808_v46 }
 0x234   :  { %v2554_v45 = vmax.bf16 %v2271_v2, %v1525_v19  ;;  %v2555_v57 = vmax.bf16 %v2276_v13, %v1533_v21  ;;  %v10766_v25 = vmax.bf16 %v2291_v36, %v1532_v30  ;;  %v1483_v17 = vrot.slane %v1455_v5, %v9808_v46 }
 0x235   :  { %v4398_v4 = vrot.slane %v2553_v61, %v9808_v46  ;;  %v4454_v54 = vrot.slane %v2557_v12, %v9808_v46  ;;  %v10771_v7 = vmax.bf16 %v2281_v41, %v1535_v20  ;;  %v1484_v37 = vcombine.high %v1462_v51, %v1462_v51 }
 0x236   :  { %12572 = vst [vmem:[#allocation17_spill] sm:$0xff] %v10766_v25  ;;  %v4412_v24 = vrot.slane %v2554_v45, %v9808_v46  ;;  %v4426_v39 = vrot.slane %v2555_v57, %v9808_v46  ;;  %v10776_v21 = vmax.bf16 %v2296_v50, %v1534_v53  ;;  %v1485_v30 = vcombine.high %v1469_v6, %v1469_v6 }
 0x237   :  { %v10779_v31 = vrot.slane %v4398_v4, %v9808_v46  ;;  %v10786_v5 = vrot.slane %v4454_v54, %v9808_v46  ;;  %v1486_v45 = vcombine.high %v1476_v35, %v1476_v35  ;;  %v10792_v53 = vcombine.high %v1483_v17, %v1483_v17 }
 0x238   :  { %12573 = vst [vmem:[#allocation27_spill] sm:$0xff] %v10776_v21  ;;  %v4419_v61 = vrot.slane %v4412_v24, %v9808_v46  ;;  %v10783_v12 = vrot.slane %v4426_v39, %v9808_v46  ;;  %v2226_v56 = vshrl.u32 %v1462_v51, 16  ;;  %v2231_v24 = vshrl.u32 %v1476_v35, 16 }
 0x239   :  { %12574 = vst [vmem:[#allocation19_spill] sm:$0xff] %v10779_v31  ;;  %12575 = vst [vmem:[#allocation20_spill] sm:$0xff] %v10786_v5  ;;  %v2236_v13 = vshrl.u32 %v1484_v37, 16  ;;  %v2241_v36 = vshrl.u32 %v1486_v45, 16  ;;  %v2246_v41 = vshrl.u32 %v1469_v6, 16  ;;  %v2251_v57 = vshrl.u32 %v1483_v17, 16 }
 0x23a   :  { %v4625_v2 = vunpack.c.l.b16 %v4419_v61  ;;  %v2256_v4 = vshrl.u32 %v1485_v30, 16  ;;  %v2545_v19 = vmax.bf16 %v2226_v56, %v1462_v51  ;;  %v2546_v50 = vmax.bf16 %v2231_v24, %v1476_v35 }
 0x23b   :  { %v2547_v5 = vmax.bf16 %v2236_v13, %v1484_v37  ;;  %v10799_v21 = vmax.bf16 %v2241_v36, %v1486_v45  ;;  %v2549_v25 = vmax.bf16 %v2246_v41, %v1469_v6  ;;  %v10801_v20 = vmax.bf16 %v2251_v57, %v1483_v17  ;;  %v12586_v37 = vld [vmem:[#allocation37_spill] sm:$0xff] }
 0x23c   :  { %v10796_v39 = vrot.slane %v4625_v2, 7  ;;  %v10803_v61 = vmax.bf16 %v2256_v4, %v1485_v30  ;;  %v4286_v31 = vrot.slane %v2545_v19, %v9808_v46  ;;  %v12577_v54 = vrot.slane %v12571_v9, %v9808_v46  ;;  %v12579_v4 = vld [vmem:[#allocation43_spill] sm:$0xff] }
 0x23d   :  { %v4314_v51 = vrot.slane %v2547_v5, %v9808_v46  ;;  %v4342_v6 = vrot.slane %v2549_v25, %v9808_v46  ;;  %v12578_v9 = vrot.slane %v10713_v40, %v9808_v46  ;;  %v4557_v30 = vunpack.c.l.b16 %v10727_v3 }
 0x23e   :  { %12576 = vst [vmem:[#allocation21_spill] sm:$0xff] %v10796_v39  ;;  %v3593_v2 = vrot.slane %v12577_v54, %v9808_v46  ;;  %v4300_v39 = vrot.slane %v2546_v50, %v9808_v46  ;;  %v10816_v17 = vrot.slane %v4286_v31, %v9808_v46  ;;  %v4558_v25 = vunpack.c.l.b16 %v10730_v8 }
 0x23f   :  { %v3607_v19 = vrot.slane %v12578_v9, %v9808_v46  ;;  %v4321_v45 = vrot.slane %v4314_v51, %v9808_v46  ;;  %v10828_v50 = vrot.slane %v4342_v6, %v9808_v46  ;;  %v4559_v56 = vunpack.c.l.b16 %v10738_v29  ;;  %v12583_v9 = vld [vmem:[#allocation44_spill] sm:$0xff] }
 0x240   :  { %v4307_v5 = vrot.slane %v4300_v39, %v9808_v46  ;;  %v4563_v24 = vunpack.c.l.b16 %v10744_v15  ;;  %v4565_v40 = vunpack.c.l.b16 %v10750_v14  ;;  %v4566_v41 = vunpack.c.l.b16 %v3593_v2  ;;  %v12581_v39 = vld [vmem:[#allocation46_spill] sm:$0xff] }
 0x241   :  { %v4618_v36 = vunpack.c.l.b16 %v4321_v45  ;;  %v4567_v57 = vunpack.c.l.b16 %v3607_v19  ;;  %v12580_v54 = vunpack.c.l.b16 %v12579_v4  ;;  %v12582_v8 = vunpack.c.l.b16 %v10721_v47 }
 0x242   :  { %v4617_v13 = vunpack.c.l.b16 %v4307_v5  ;;  %v12584_v29 = vunpack.c.l.b16 %v12583_v9  ;;  %v12585_v5 = vld [vmem:[#allocation47_spill] sm:$0xff]  ;;  %v4731_v2 = vrot.slane %v4557_v30, 3  ;;  %v4733_v4 = vrot.slane %v4558_v25, 2  ;;  %v12589_v9 = vld [vmem:[#allocation42_spill] sm:$0xff] }
 0x243   :  { %v4724_v51 = vsel %vm4633_vm6, %v12581_v39, %v12580_v54  ;;  %v4727_v6 = vrot.slane %v12582_v8, 5  ;;  %v10846_v14 = vrot.slane %v4618_v36, 6  ;;  %v4735_v3 = vrot.slane %v4559_v56, 1  ;;  %v12588_v39 = vld [vmem:[#allocation41_spill] sm:$0xff] }
 0x244   :  { %v4729_v31 = vrot.slane %v12584_v29, 4  ;;  %v10844_v15 = vrot.slane %v4617_v13, 7  ;;  %v4726_v45 = vsel %vm4636_vm7, %v12585_v5, %v4724_v51  ;;  %v12587_v54 = vunpack.c.l.b16 %v12586_v37  ;;  %v12590_v29 = vld [vmem:[#allocation38_spill] sm:$0xff] }
 0x245   :  { %v4728_v19 = vsel %vm4639_vm8, %v4727_v6, %v4726_v45  ;;  %v4741_v36 = vrot.slane %v4563_v24, 5  ;;  %v12591_v35 = vunpack.c.l.b16 %v12590_v29  ;;  %v4745_v51 = vrot.slane %v4565_v40, 3  ;;  %v12593_v45 = vld [vmem:[#allocation45_spill] sm:$0xff] }
 0x246   :  { %v4738_v47 = vsel %vm4633_vm6, %v12588_v39, %v12587_v54  ;;  %v4730_v8 = vsel %vm4642_vm9, %v4729_v31, %v4728_v19  ;;  %v4747_v6 = vrot.slane %v4566_v41, 2  ;;  %v4749_v25 = vrot.slane %v4567_v57, 1 }
 0x247   :  { %v4740_v13 = vsel %vm4636_vm7, %v12589_v9, %v4738_v47  ;;  %v4743_v10 = vrot.slane %v12591_v35, 4  ;;  %v4732_v30 = vsel %vm4645_vm10, %v4731_v2, %v4730_v8  ;;  %v12592_v5 = vshrl.u32 %v10264_v44, 16  ;;  %v12599_v8 = vld [vmem:[#allocation49_spill] sm:$0xff] }
 0x248   :  { %v4734_v56 = vsel %vm4648_vm11, %v4733_v4, %v4732_v30  ;;  %v4742_v37 = vsel %vm4639_vm8, %v4741_v36, %v4740_v13  ;;  %v12594_v19 = vshrl.u32 %v12593_v45, 16  ;;  %v12595_v40 = vrot.slane %v10269_v42, %v9808_v46  ;;  %v12601_v13 = vld [vmem:[#allocation51_spill] sm:$0xff] }
 0x249   :  { %v2504_v31 = vmax.bf16 %v12592_v5, %v10264_v44  ;;  %v4736_v54 = vsel %vm4651_vm12, %v4735_v3, %v4734_v56  ;;  %v4744_v35 = vsel %vm4642_vm9, %v4743_v10, %v4742_v37  ;;  %v12596_v57 = vrot.slane %v10271_v18, %v9808_v46  ;;  %v12597_v3 = vld [vmem:[#allocation48_spill] sm:$0xff] }
 0x24a   :  { %v2512_v24 = vmax.bf16 %v12594_v19, %v12593_v45  ;;  %v3663_v41 = vrot.slane %v12595_v40, %v9808_v46  ;;  %v4746_v44 = vsel %vm4645_vm10, %v4745_v51, %v4744_v35  ;;  %v3698_v4 = vrot.slane %v10279_v27, %v9808_v46 }
 0x24b   :  { %v3691_v2 = vrot.slane %v12596_v57, %v9808_v46  ;;  %v3712_v39 = vrot.slane %v2504_v31, %v9808_v46  ;;  %v12598_v10 = vrot.slane %v12597_v3, %v9808_v46  ;;  %v4748_v42 = vsel %vm4648_vm11, %v4747_v6, %v4746_v44 }
 0x24c   :  { %v12600_v9 = vrot.slane %v12599_v8, %v9808_v46  ;;  %v3810_v36 = vrot.slane %v12601_v13, %v9808_v46  ;;  %v3824_v29 = vrot.slane %v2512_v24, %v9808_v46  ;;  %v4750_v27 = vsel %vm4651_vm12, %v4749_v25, %v4748_v42  ;;  %v12604_v42 = vld [vmem:[#allocation50_spill] sm:$0xff] }
 0x24d   :  { %v3775_v47 = vrot.slane %v12598_v10, %v9808_v46  ;;  %v3705_v30 = vrot.slane %v3698_v4, %v9808_v46  ;;  %v3719_v51 = vrot.slane %v3712_v39, %v9808_v46  ;;  %v4571_v56 = vunpack.c.l.b16 %v3663_v41 }
 0x24e   :  { %v3803_v18 = vrot.slane %v12600_v9, %v9808_v46  ;;  %v4866_v37 = vpack.c.b16 %v4750_v27, %v4736_v54  ;;  %v3817_v6 = vrot.slane %v3810_v36, %v9808_v46  ;;  %v3831_v5 = vrot.slane %v3824_v29, %v9808_v46  ;;  %v12606_v9 = vld [vmem:[#allocation53_spill] sm:$0xff] }
 0x24f   :  { %v4573_v31 = vunpack.c.l.b16 %v3691_v2  ;;  %v4574_v45 = vunpack.c.l.b16 %v3705_v30  ;;  %v4575_v19 = vunpack.c.l.b16 %v3719_v51  ;;  %v4579_v35 = vunpack.c.l.b16 %v3775_v47 }
 0x250   :  { %v4581_v40 = vunpack.c.l.b16 %v3803_v18  ;;  %9299 = vmatmul.mubr.bf16.gmra.mrb[4].mxu1 %v4866_v37  ;;  %v4582_v57 = vunpack.c.l.b16 %v3817_v6  ;;  %v4583_v24 = vunpack.c.l.b16 %v3831_v5  ;;  %v12602_v25 = vunpack.c.l.b16 %v10284_v22 }
 0x251   :  { %v4755_v4 = vrot.slane %v4571_v56, 5  ;;  %v12603_v41 = vunpack.c.l.b16 %v10299_v48  ;;  %v4759_v2 = vrot.slane %v4573_v31, 3  ;;  %v4761_v3 = vrot.slane %v4574_v45, 2 }
 0x252   :  { %v4752_v44 = vsel %vm4633_vm6, %v10378_v1, %v12602_v25  ;;  %v4763_v47 = vrot.slane %v4575_v19, 1  ;;  %v12605_v8 = vunpack.c.l.b16 %v12604_v42  ;;  %v4769_v18 = vrot.slane %v4579_v35, 5 }
 0x253   :  { %v4754_v54 = vsel %vm4636_vm7, %v10382_v0, %v4752_v44  ;;  %v4757_v39 = vrot.slane %v12603_v41, 4  ;;  %v12607_v0 = vld [vmem:[#allocation52_spill] sm:$0xff]  ;;  %v4773_v29 = vrot.slane %v4581_v40, 3  ;;  %v4775_v51 = vrot.slane %v4582_v57, 2 }
 0x254   :  { %v4756_v10 = vsel %vm4639_vm8, %v4755_v4, %v4754_v54  ;;  %v4766_v22 = vsel %vm4633_vm6, %v12606_v9, %v12605_v8  ;;  %v12608_v36 = vunpack.c.l.b16 %v12607_v0  ;;  %v4777_v56 = vrot.slane %v4583_v24, 1 }
 0x255   :  { %v4758_v1 = vsel %vm4642_vm9, %v4757_v39, %v4756_v10  ;;  %v4768_v13 = vsel %vm4636_vm7, %v10273_v16, %v4766_v22  ;;  %v12609_v5 = vshrl.u32 %v10462_v49, 16  ;;  %v12610_v16 = vshrl.u32 %v10435_v23, 16  ;;  %v12615_v39 = vld [vmem:[#allocation5_spill] sm:$0xff] }
 0x256   :  { %v4771_v48 = vrot.slane %v12608_v36, 4  ;;  %v4760_v27 = vsel %vm4645_vm10, %v4759_v2, %v4758_v1  ;;  %v4770_v30 = vsel %vm4639_vm8, %v4769_v18, %v4768_v13  ;;  %v12611_v40 = vrot.slane %v10468_v38, %v9808_v46 }
 0x257   :  { %v4762_v37 = vsel %vm4648_vm11, %v4761_v3, %v4760_v27  ;;  %v2520_v31 = vmax.bf16 %v12609_v5, %v10462_v49  ;;  %v2528_v45 = vmax.bf16 %v12610_v16, %v10435_v23  ;;  %v12612_v24 = vrot.slane %v10473_v33, %v9808_v46  ;;  %v12619_v16 = vld [vmem:[#allocation7_spill] sm:$0xff] }
 0x258   :  { %v4772_v6 = vsel %vm4642_vm9, %v4771_v48, %v4770_v30  ;;  %v4764_v19 = vsel %vm4651_vm12, %v4763_v47, %v4762_v37  ;;  %v3887_v57 = vrot.slane %v12611_v40, %v9808_v46  ;;  %v3922_v44 = vrot.slane %v10476_v52, %v9808_v46  ;;  %v12617_v30 = vld [vmem:[#allocation55_spill] sm:$0xff] }
 0x259   :  { %v4774_v35 = vsel %vm4645_vm10, %v4773_v29, %v4772_v6  ;;  %v3915_v25 = vrot.slane %v12612_v24, %v9808_v46  ;;  %v3936_v23 = vrot.slane %v2520_v31, %v9808_v46  ;;  %v12613_v4 = vrot.slane %v10443_v63, %v9808_v46  ;;  %v12624_v24 = vld [vmem:[#allocation54_spill] sm:$0xff] }
 0x25a   :  { %v4776_v49 = vsel %vm4648_vm11, %v4775_v51, %v4774_v35  ;;  %v12614_v41 = vrot.slane %v10438_v43, %v9808_v46  ;;  %v4034_v2 = vrot.slane %v12615_v39, %v9808_v46  ;;  %v4048_v3 = vrot.slane %v2528_v45, %v9808_v46  ;;  %v12622_v35 = vld [vmem:[#allocation6_spill] sm:$0xff] }
 0x25b   :  { %v3999_v54 = vrot.slane %v12613_v4, %v9808_v46  ;;  %v4778_v38 = vsel %vm4651_vm12, %v4777_v56, %v4776_v49  ;;  %v3929_v10 = vrot.slane %v3922_v44, %v9808_v46  ;;  %v3943_v47 = vrot.slane %v3936_v23, %v9808_v46 }
 0x25c   :  { %v4027_v33 = vrot.slane %v12614_v41, %v9808_v46  ;;  %v4867_v52 = vpack.c.b16 %v4778_v38, %v4764_v19  ;;  %v4587_v42 = vunpack.c.l.b16 %v3887_v57  ;;  %v4041_v63 = vrot.slane %v4034_v2, %v9808_v46  ;;  %v12626_v2 = vld [vmem:[#allocation18_spill] sm:$0xff] }
 0x25d   :  { %v4055_v8 = vrot.slane %v4048_v3, %v9808_v46  ;;  %v4589_v9 = vunpack.c.l.b16 %v3915_v25  ;;  %v4595_v22 = vunpack.c.l.b16 %v3999_v54  ;;  %v4590_v43 = vunpack.c.l.b16 %v3929_v10 }
 0x25e   :  { %9302 = vmatprep.mubr.bf16.mxu1 %v4867_v52  ;;  %v4591_v18 = vunpack.c.l.b16 %v3943_v47  ;;  %v4597_v1 = vunpack.c.l.b16 %v4027_v33  ;;  %v12616_v13 = vunpack.c.l.b16 %v10482_v55  ;;  %v4598_v36 = vunpack.c.l.b16 %v4041_v63  ;;  %v12621_v55 = vld [vmem:[#allocation8_spill] sm:$0xff] }
 0x25f   :  { %v4599_v48 = vunpack.c.l.b16 %v4055_v8  ;;  %v4783_v27 = vrot.slane %v4587_v42, 5  ;;  %v12618_v51 = vunpack.c.l.b16 %v12617_v30  ;;  %v4787_v37 = vrot.slane %v4589_v9, 3 }
 0x260   :  { %v4780_v0 = vsel %vm4633_vm6, %v10514_v58, %v12616_v13  ;;  %v4789_v6 = vrot.slane %v4590_v43, 2  ;;  %v4791_v5 = vrot.slane %v4591_v18, 1  ;;  %v12620_v45 = vunpack.c.l.b16 %v12619_v16  ;;  %v12630_v18 = vld [vmem:[#allocation9_spill] sm:$0xff] }
 0x261   :  { %v4782_v29 = vsel %vm4636_vm7, %v10546_v62, %v4780_v0  ;;  %v4785_v56 = vrot.slane %v12618_v51, 4  ;;  %v4797_v58 = vrot.slane %v4595_v22, 5  ;;  %v12623_v40 = vunpack.c.l.b16 %v12622_v35  ;;  %v12632_v13 = vld [vmem:[#allocation13_spill] sm:$0xff] }
 0x262   :  { %v4784_v31 = vsel %vm4639_vm8, %v4783_v27, %v4782_v29  ;;  %v4794_v19 = vsel %vm4633_vm6, %v12621_v55, %v12620_v45  ;;  %v4801_v49 = vrot.slane %v4597_v1, 3  ;;  %v4803_v44 = vrot.slane %v4598_v36, 2 }
 0x263   :  { %v4799_v57 = vrot.slane %v12623_v40, 4  ;;  %v4786_v62 = vsel %vm4642_vm9, %v4785_v56, %v4784_v31  ;;  %v4796_v25 = vsel %vm4636_vm7, %v12624_v24, %v4794_v19  ;;  %v4805_v54 = vrot.slane %v4599_v48, 1 }
 0x264   :  { %v4788_v23 = vsel %vm4645_vm10, %v4787_v37, %v4786_v62  ;;  %v4798_v4 = vsel %vm4639_vm8, %v4797_v58, %v4796_v25  ;;  %v12625_v38 = vshrl.u32 %v10624_v60, 16  ;;  %v12627_v3 = vshrl.u32 %v12626_v2, 16  ;;  %v12636_v62 = vld [vmem:[#allocation24_spill] sm:$0xff] }
 0x265   :  { %v4790_v33 = vsel %vm4648_vm11, %v4789_v6, %v4788_v23  ;;  %v4800_v39 = vsel %vm4642_vm9, %v4799_v57, %v4798_v4  ;;  %v12628_v10 = vrot.slane %v10633_v59, %v9808_v46  ;;  %v4146_v9 = vrot.slane %v10643_v11, %v9808_v46  ;;  %v12634_v11 = vld [vmem:[#allocation11_spill] sm:$0xff]  ;;  %v12637_v25 = vld [vmem:[#allocation16_spill] sm:$0xff] }
 0x266   :  { %v2536_v41 = vmax.bf16 %v12625_v38, %v10624_v60  ;;  %v2544_v52 = vmax.bf16 %v12627_v3, %v12626_v2  ;;  %v4792_v42 = vsel %vm4651_vm12, %v4791_v5, %v4790_v33  ;;  %v4802_v63 = vsel %vm4645_vm10, %v4801_v49, %v4800_v39  ;;  %v12641_v39 = vld [vmem:[#allocation14_spill] sm:$0xff] }
 0x267   :  { %v4111_v47 = vrot.slane %v12628_v10, %v9808_v46  ;;  %v12629_v60 = vrot.slane %v10638_v26, %v9808_v46  ;;  %v4804_v22 = vsel %vm4648_vm11, %v4803_v44, %v4802_v63  ;;  %v12631_v59 = vrot.slane %v12630_v18, %v9808_v46  ;;  %v12642_v3 = vld [vmem:[#allocation10_spill] sm:$0xff] }
 0x268   :  { %v4160_v43 = vrot.slane %v2536_v41, %v9808_v46  ;;  %v12633_v0 = vrot.slane %v12632_v13, %v9808_v46  ;;  %v4806_v26 = vsel %vm4651_vm12, %v4805_v54, %v4804_v22  ;;  %v4153_v48 = vrot.slane %v4146_v9, %v9808_v46 }
 0x269   :  { %v4139_v8 = vrot.slane %v12629_v60, %v9808_v46  ;;  %v4223_v1 = vrot.slane %v12631_v59, %v9808_v46  ;;  %v4258_v29 = vrot.slane %v12634_v11, %v9808_v46  ;;  %v4272_v27 = vrot.slane %v2544_v52, %v9808_v46 }
 0x26a   :  { %v4251_v36 = vrot.slane %v12633_v0, %v9808_v46  ;;  %v4868_v30 = vpack.c.b16 %v4806_v26, %v4792_v42  ;;  %v4167_v51 = vrot.slane %v4160_v43, %v9808_v46  ;;  %v4603_v56 = vunpack.c.l.b16 %v4111_v47  ;;  %v12644_v42 = vld [vmem:[#allocation15_spill] sm:$0xff] }
 0x26b   :  { %v4605_v37 = vunpack.c.l.b16 %v4139_v8  ;;  %v4265_v6 = vrot.slane %v4258_v29, %v9808_v46  ;;  %v4279_v5 = vrot.slane %v4272_v27, %v9808_v46  ;;  %v4606_v31 = vunpack.c.l.b16 %v4153_v48 }
 0x26c   :  { %v4611_v16 = vunpack.c.l.b16 %v4223_v1  ;;  %9303 = vmatmul.mubr.bf16.gmra.mrb[8].mxu1 %v4868_v30  ;;  %v4607_v45 = vunpack.c.l.b16 %v4167_v51  ;;  %v4613_v55 = vunpack.c.l.b16 %v4251_v36  ;;  %v12635_v19 = vunpack.c.l.b16 %v10646_v32  ;;  %v12639_v32 = vld [vmem:[#allocation12_spill] sm:$0xff] }
 0x26d   :  { %v4811_v35 = vrot.slane %v4603_v56, 5  ;;  %v4614_v40 = vunpack.c.l.b16 %v4265_v6  ;;  %v4615_v57 = vunpack.c.l.b16 %v4279_v5  ;;  %v12638_v49 = vunpack.c.l.b16 %v12637_v25  ;;  %v12650_v56 = vld [vmem:[#allocation17_spill] sm:$0xff]  ;;  %v12654_v25 = vld [vmem:[#allocation20_spill] sm:$0xff] }
 0x26e   :  { %v4808_v58 = vsel %vm4633_vm6, %v10701_v28, %v12635_v19  ;;  %v4815_v4 = vrot.slane %v4605_v37, 3  ;;  %v4817_v54 = vrot.slane %v4606_v31, 2  ;;  %v4819_v38 = vrot.slane %v4607_v45, 1 }
 0x26f   :  { %v4810_v24 = vsel %vm4636_vm7, %v12636_v62, %v4808_v58  ;;  %v4813_v44 = vrot.slane %v12638_v49, 4  ;;  %v12640_v33 = vunpack.c.l.b16 %v12639_v32  ;;  %v4825_v2 = vrot.slane %v4611_v16, 5 }
 0x270   :  { %v4812_v23 = vsel %vm4639_vm8, %v4811_v35, %v4810_v24  ;;  %v12643_v52 = vunpack.c.l.b16 %v12642_v3  ;;  %v4829_v60 = vrot.slane %v4613_v55, 3  ;;  %v4831_v8 = vrot.slane %v4614_v40, 2 }
 0x271   :  { %v4814_v41 = vsel %vm4642_vm9, %v4813_v44, %v4812_v23  ;;  %v4822_v28 = vsel %vm4633_vm6, %v12641_v39, %v12640_v33  ;;  %v4833_v43 = vrot.slane %v4615_v57, 1  ;;  %v12645_v18 = vshrl.u32 %v10792_v53, 16 }
 0x272   :  { %v4827_v10 = vrot.slane %v12643_v52, 4  ;;  %v4816_v47 = vsel %vm4645_vm10, %v4815_v4, %v4814_v41  ;;  %v4824_v63 = vsel %vm4636_vm7, %v12644_v42, %v4822_v28  ;;  %v12646_v0 = vshrl.u32 %v10763_v34, 16  ;;  %v12659_v52 = vld [vmem:[#allocation21_spill] sm:$0xff] }
 0x273   :  { %v4818_v9 = vsel %vm4648_vm11, %v4817_v54, %v4816_v47  ;;  %v4826_v22 = vsel %vm4639_vm8, %v4825_v2, %v4824_v63  ;;  %v2552_v59 = vmax.bf16 %v12645_v18, %v10792_v53  ;;  %v12647_v26 = vrot.slane %v10799_v21, %v9808_v46  ;;  %v12657_v2 = vld [vmem:[#allocation19_spill] sm:$0xff] }
 0x274   :  { %v4820_v1 = vsel %vm4651_vm12, %v4819_v38, %v4818_v9  ;;  %v4828_v13 = vsel %vm4642_vm9, %v4827_v10, %v4826_v22  ;;  %v2560_v36 = vmax.bf16 %v12646_v0, %v10763_v34  ;;  %v12648_v29 = vrot.slane %v10801_v20, %v9808_v46  ;;  %v12652_v20 = vld [vmem:[#allocation27_spill] sm:$0xff] }
 0x275   :  { %v4335_v48 = vrot.slane %v12647_v26, %v9808_v46  ;;  %v4830_v11 = vsel %vm4645_vm10, %v4829_v60, %v4828_v13  ;;  %v4370_v27 = vrot.slane %v10803_v61, %v9808_v46  ;;  %v4384_v30 = vrot.slane %v2552_v59, %v9808_v46  ;;  %v11103_v26 = vld [vmem:[%s12381_s4] ss:$0 sm:$0xff]  ;;  %s9483_s4 = smov 64  }
 0x276   :  { %v4363_v53 = vrot.slane %v12648_v29, %v9808_v46  ;;  %v4832_v51 = vsel %vm4648_vm11, %v4831_v8, %v4830_v11  ;;  %v12649_v34 = vrot.slane %v10771_v7, %v9808_v46  ;;  %v12651_v37 = vrot.slane %v12650_v56, %v9808_v46 }
 0x277   :  { %v4482_v5 = vrot.slane %v12652_v20, %v9808_v46  ;;  %v4834_v31 = vsel %vm4651_vm12, %v4833_v43, %v4832_v51  ;;  %v4377_v61 = vrot.slane %v4370_v27, %v9808_v46  ;;  %v4391_v16 = vrot.slane %v4384_v30, %v9808_v46 }
 0x278   :  { %v4447_v21 = vrot.slane %v12649_v34, %v9808_v46  ;;  %v4475_v6 = vrot.slane %v12651_v37, %v9808_v46  ;;  %v4496_v45 = vrot.slane %v2560_v36, %v9808_v46  ;;  %v4869_v55 = vpack.c.b16 %v4834_v31, %v4820_v1 }
 0x279   :  { %v4489_v7 = vrot.slane %v4482_v5, %v9808_v46  ;;  %v4619_v19 = vunpack.c.l.b16 %v4335_v48  ;;  %v4621_v58 = vunpack.c.l.b16 %v4363_v53  ;;  %v12653_v35 = vunpack.c.l.b16 %v10783_v12 }
 0x27a   :  { %v4503_v57 = vrot.slane %v4496_v45, %v9808_v46  ;;  %v4622_v62 = vunpack.c.l.b16 %v4377_v61  ;;  %v4627_v24 = vunpack.c.l.b16 %v4447_v21  ;;  %v4628_v49 = vunpack.c.l.b16 %v12654_v25  ;;  %9306 = vmatprep.mubr.bf16.mxu1 %v4869_v55 }
 0x27b   :  { %v4851_v40 = vrot.slane %v12653_v35, 6  ;;  %v4623_v44 = vunpack.c.l.b16 %v4391_v16  ;;  %v12655_v23 = vunpack.c.l.b16 %v10816_v17  ;;  %v4839_v54 = vrot.slane %v4619_v19, 5 }
 0x27c   :  { %v4629_v38 = vunpack.c.l.b16 %v4475_v6  ;;  %v4630_v41 = vunpack.c.l.b16 %v4489_v7  ;;  %v12656_v32 = vunpack.c.l.b16 %v10828_v50  ;;  %v4631_v33 = vunpack.c.l.b16 %v4503_v57 }
 0x27d   :  { %v4836_v4 = vsel %vm4633_vm6, %v10844_v15, %v12655_v23  ;;  %v4843_v28 = vrot.slane %v4621_v58, 3  ;;  %v12658_v3 = vunpack.c.l.b16 %v12657_v2  ;;  %v4845_v10 = vrot.slane %v4622_v62, 2 }
 0x27e   :  { %v4838_v12 = vsel %vm4636_vm7, %v10846_v14, %v4836_v4  ;;  %v4841_v46 = vrot.slane %v12656_v32, 4  ;;  %v4853_v42 = vrot.slane %v4627_v24, 5  ;;  %v4847_v63 = vrot.slane %v4623_v44, 1 }
 0x27f   :  { %v4840_v39 = vsel %vm4639_vm8, %v4839_v54, %v4838_v12  ;;  %v4850_v17 = vsel %vm4633_vm6, %v12659_v52, %v12658_v3  ;;  %v4855_v50 = vrot.slane %v4628_v49, 4  ;;  %v4857_v9 = vrot.slane %v4629_v38, 3 }
 0x280   :  { %v4842_v15 = vsel %vm4642_vm9, %v4841_v46, %v4840_v39  ;;  %v4852_v47 = vsel %vm4636_vm7, %v4851_v40, %v4850_v17  ;;  %v4859_v18 = vrot.slane %v4630_v41, 2  ;;  %v4861_v1 = vrot.slane %v4631_v33, 1 }
 0x281   :  { %v4844_v14 = vsel %vm4645_vm10, %v4843_v28, %v4842_v15  ;;  %v4854_v8 = vsel %vm4639_vm8, %v4853_v42, %v4852_v47  ;;  %v5279_v15 = vld [vmem:[%s12382_s5 + $0x8] sm:$0xff] }
 0x282   :  { %v4846_v60 = vsel %vm4648_vm11, %v4845_v10, %v4844_v14  ;;  %v4856_v43 = vsel %vm4642_vm9, %v4855_v50, %v4854_v8  ;;  %v5287_v10 = vld [vmem:[%s12382_s5 + $0x48] sm:$0xff]  ;;  %v5278_v50 = vld [vmem:[%s12382_s5] sm:$0xff] }
 0x283   :  { %v4848_v22 = vsel %vm4651_vm12, %v4847_v63, %v4846_v60  ;;  %v4858_v59 = vsel %vm4645_vm10, %v4857_v9, %v4856_v43  ;;  %v5295_v47 = vld [vmem:[%s12382_s5 + $0x88] sm:$0xff]  ;;  %v8658_v42 = vcombine.low %v5279_v15, %v5287_v10  ;;  %v8659_v14 = vcombine.high %v5279_v15, %v5287_v10  ;;  %v5286_v60 = vld [vmem:[%s12382_s5 + $0x40] sm:$0xff] }
 0x284   :  { %v4860_v13 = vsel %vm4648_vm11, %v4859_v18, %v4858_v59  ;;  %v5303_v63 = vld [vmem:[%s12382_s5 + $0xc8] sm:$0xff]  ;;  %v8656_v9 = vcombine.low %v5278_v50, %v5286_v60  ;;  %v5294_v43 = vld [vmem:[%s12382_s5 + $0x80] sm:$0xff] }
 0x285   :  { %v4862_v0 = vsel %vm4651_vm12, %v4861_v1, %v4860_v13  ;;  %v8675_v8 = vcombine.high %v5295_v47, %v5303_v63  ;;  %v5302_v18 = vld [vmem:[%s12382_s5 + $0xc0] sm:$0xff]  ;;  %v5311_v59 = vld [vmem:[%s12382_s5 + $0x108] sm:$0xff]  ;;  %6757 = vmatprep.subr.bf16.mxu0 %v8659_v14 }
 0x286   :  { %v4870_v36 = vpack.c.b16 %v4862_v0, %v4848_v22  ;;  %v8657_v22 = vcombine.high %v5278_v50, %v5286_v60  ;;  %v8673_v1 = vcombine.high %v5294_v43, %v5302_v18  ;;  %v5319_v13 = vld [vmem:[%s12382_s5 + $0x148] sm:$0xff]  ;;  %v5310_v0 = vld [vmem:[%s12382_s5 + $0x100] sm:$0xff]  ;;  %6758 = vmatpush1.bf16.msra.mxu0 %v8658_v42 }
 0x287   :  { %6759 = vmatprep.subr.bf16.mxu0 %v8675_v8  ;;  %v5390_v15 = vld [vmem:[%s12382_s5 + $0x380] sm:$0xff]  ;;  %v5407_v50 = vld [vmem:[%s12382_s5 + $0x408] sm:$0xff] }
 0x288   :  { %9307 = vmatmul.mubr.bf16.gmra.mrb[12].mxu1 %v4870_v36  ;;  %v5318_v36 = vld [vmem:[%s12382_s5 + $0x140] sm:$0xff]  ;;  %6716 = vmatprep.subr.bf16.mxu1 %v8657_v22  ;;  %v5415_v60 = vld [vmem:[%s12382_s5 + $0x448] sm:$0xff] }
 0x289   :  { %6717 = vmatpush1.bf16.msra.mxu1 %v8656_v9  ;;  %v5398_v10 = vld [vmem:[%s12382_s5 + $0x3c0] sm:$0xff] }
 0x28a   :  { %6718 = vmatprep.subr.bf16.mxu1 %v8673_v1  ;;  %v5406_v8 = vld [vmem:[%s12382_s5 + $0x400] sm:$0xff]  ;;  %v5423_v1 = vld [vmem:[%s12382_s5 + $0x488] sm:$0xff] }
 0x28b   :  { %v5414_v9 = vld [vmem:[%s12382_s5 + $0x440] sm:$0xff] }
 0x2da   :  { %v9296_v48 = vpop.f32.mrb[0].mxu1 }
 0x2db   :  { %v4970_v11 = vadd.f32 %v9296_v48, %v11103_v26  ;;  %v4961_v29 = vpop.f32.mrb[1].mxu1  ;;  %v8674_v48 = vcombine.low %v5295_v47, %v5303_v63  ;;  %v8769_v63 = vcombine.high %v5390_v15, %v5398_v10 }
 0x2dc   :  { %v4962_v53 = vadd.f32 %v11103_v26, %v4961_v29  ;;  %v9297_v27 = vpop.f32.mrb[2].mxu1  ;;  %v8691_v29 = vcombine.high %v5311_v59, %v5319_v13 }
 0x2dd   :  { %v4973_v30 = vadd.f32 %v9297_v27, %v11103_v26  ;;  %v4964_v51 = vpop.f32.mrb[3].mxu1  ;;  %v5026_v21 = vmax.f32 %v4970_v11, 0.0  ;;  %v8672_v11 = vcombine.low %v5294_v43, %v5302_v18  ;;  %v5327_v27 = vld [vmem:[%s12382_s5 + $0x188] sm:$0xff]  ;;  %6760 = vmatpush1.bf16.msra.mxu0 %v8674_v48  ;;  %v8768_v43 = vcombine.low %v5390_v15, %v5398_v10 }
 0x2de   :  { %v4965_v34 = vadd.f32 %v11103_v26, %v4964_v51  ;;  %v5024_v37 = vmax.f32 %v4962_v53, 0.0  ;;  %v8689_v53 = vcombine.high %v5310_v0, %v5318_v36  ;;  %v5326_v51 = vld [vmem:[%s12382_s5 + $0x180] sm:$0xff]  ;;  %6761 = vmatprep.subr.bf16.mxu0 %v8691_v29  ;;  %v8787_v18 = vcombine.high %v5407_v50, %v5415_v60 }
 0x2df   :  { %v5027_v56 = vmax.f32 %v4973_v30, 0.0  ;;  %v5335_v30 = vld [vmem:[%s12382_s5 + $0x1c8] sm:$0xff]  ;;  %6719 = vmatpush1.bf16.msra.mxu1 %v8672_v11  ;;  %v8786_v48 = vcombine.low %v5407_v50, %v5415_v60  ;;  %v8784_v11 = vcombine.low %v5406_v8, %v5414_v9 }
 0x2e0   :  { %v5025_v6 = vmax.f32 %v4965_v34, 0.0  ;;  %v5334_v34 = vld [vmem:[%s12382_s5 + $0x1c0] sm:$0xff]  ;;  %6720 = vmatprep.subr.bf16.mxu1 %v8689_v53 }
 0x2e1   :  { %v5041_v20 = vpack.c.bf16 %v5027_v56, %v5026_v21  ;;  %v8690_v21 = vcombine.low %v5311_v59, %v5319_v13  ;;  %v8688_v56 = vcombine.low %v5310_v0, %v5318_v36  ;;  %v8785_v59 = vcombine.high %v5406_v8, %v5414_v9  ;;  %v5431_v13 = vld [vmem:[%s12382_s5 + $0x4c8] sm:$0xff]  ;;  %v5422_v0 = vld [vmem:[%s12382_s5 + $0x480] sm:$0xff] }
 0x2e2   :  { %v5040_v5 = vpack.c.bf16 %v5025_v6, %v5024_v37  ;;  %v8707_v37 = vcombine.high %v5327_v27, %v5335_v30  ;;  %v8705_v6 = vcombine.high %v5326_v51, %v5334_v34  ;;  %v5430_v36 = vld [vmem:[%s12382_s5 + $0x4c0] sm:$0xff]  ;;  %v8803_v29 = vcombine.high %v5423_v1, %v5431_v13 }
 0x2e3   :  { %v5052_v31 = vshrl.u32 %v5041_v20, 16  ;;  %6762 = vmatpush1.bf16.msra.mxu0 %v8690_v21  ;;  %6721 = vmatpush1.bf16.msra.mxu1 %v8688_v56  ;;  %v8801_v53 = vcombine.high %v5422_v0, %v5430_v36 }
 0x2e4   :  { %v5049_v61 = vshrl.u32 %v5040_v5, 16  ;;  %6763 = vmatprep.subr.bf16.mxu0 %v8707_v37  ;;  %6722 = vmatprep.subr.bf16.mxu1 %v8705_v6 }
 0x2e5   :  { %v5081_v16 = vmax.bf16 %v5052_v31, %v5041_v20  ;;  %v5343_v20 = vld [vmem:[%s12382_s5 + $0x208] sm:$0xff]  ;;  %v5342_v31 = vld [vmem:[%s12382_s5 + $0x200] sm:$0xff] }
 0x2e6   :  { %v5080_v45 = vmax.bf16 %v5049_v61, %v5040_v5  ;;  %v5351_v5 = vld [vmem:[%s12382_s5 + $0x248] sm:$0xff]  ;;  %v5350_v61 = vld [vmem:[%s12382_s5 + $0x240] sm:$0xff] }
 0x2e7   :  { %v8639_v55 = vcombine.low %v5081_v16, %v5081_v16  ;;  %v8647_v7 = vcombine.high %v5081_v16, %v5081_v16  ;;  %v8706_v16 = vcombine.low %v5327_v27, %v5335_v30  ;;  %v8802_v27 = vcombine.low %v5423_v1, %v5431_v13 }
 0x2e8   :  { %v8638_v19 = vcombine.low %v5080_v45, %v5080_v45  ;;  %v8646_v58 = vcombine.high %v5080_v45, %v5080_v45  ;;  %v8704_v45 = vcombine.low %v5326_v51, %v5334_v34  ;;  %v8800_v30 = vcombine.low %v5422_v0, %v5430_v36 }
 0x2e9   :  { %v5113_v35 = vunpack.c.l.b16 %v8639_v55  ;;  %v5215_v40 = vunpack.c.l.b16 %v8647_v7  ;;  %v8723_v55 = vcombine.high %v5343_v20, %v5351_v5  ;;  %v8721_v7 = vcombine.high %v5342_v31, %v5350_v61  ;;  %6764 = vmatpush1.bf16.msra.mxu0 %v8706_v16 }
 0x2ea   :  { %v5112_v57 = vunpack.c.l.b16 %v8638_v19  ;;  %v5214_v62 = vunpack.c.l.b16 %v8646_v58  ;;  %v5359_v19 = vld [vmem:[%s12382_s5 + $0x288] sm:$0xff]  ;;  %6723 = vmatpush1.bf16.msra.mxu1 %v8704_v45 }
 0x2eb   :  { %v5120_v24 = vrot.slane %v5113_v35, 7  ;;  %v5139_v25 = vrot.slane %v5113_v35, 1  ;;  %v5159_v49 = vrot.slane %v5113_v35, 3  ;;  %v5179_v44 = vrot.slane %v5113_v35, 5  ;;  %v5367_v58 = vld [vmem:[%s12382_s5 + $0x2c8] sm:$0xff]  ;;  %v5358_v35 = vld [vmem:[%s12382_s5 + $0x280] sm:$0xff]  ;;  %6765 = vmatprep.subr.bf16.mxu0 %v8723_v55  ;;  %6724 = vmatprep.subr.bf16.mxu1 %v8721_v7 }
 0x2ec   :  { %v5222_v23 = vrot.slane %v5215_v40, 7  ;;  %v5240_v4 = vrot.slane %v5215_v40, 1  ;;  %v5259_v54 = vrot.slane %v5215_v40, 3  ;;  %v5138_v38 = vrot.slane %v5112_v57, 2  ;;  %v5366_v40 = vld [vmem:[%s12382_s5 + $0x2c0] sm:$0xff] }
 0x2ed   :  { %v11110_v41 = vsel %vm4633_vm6, %v5120_v24, %v5112_v57  ;;  %v5158_v12 = vrot.slane %v5112_v57, 4  ;;  %v5178_v32 = vrot.slane %v5112_v57, 6  ;;  %v5239_v46 = vrot.slane %v5214_v62, 2 }
 0x2ee   :  { %v11113_v33 = vsel %vm4633_vm6, %v5222_v23, %v5214_v62  ;;  %v5258_v39 = vrot.slane %v5214_v62, 4  ;;  %v11116_v28 = vsel %vm4633_vm6, %v5139_v25, %v5138_v38  ;;  %v8722_v57 = vcombine.low %v5343_v20, %v5351_v5  ;;  %v5374_v23 = vld [vmem:[%s12382_s5 + $0x300] sm:$0xff] }
 0x2ef   :  { %v11119_v2 = vsel %vm4633_vm6, %v5240_v4, %v5239_v46  ;;  %v11122_v3 = vsel %vm4633_vm6, %v5159_v49, %v5158_v12  ;;  %v11125_v52 = vsel %vm4633_vm6, %v5179_v44, %v5178_v32  ;;  %v8720_v62 = vcombine.low %v5342_v31, %v5350_v61  ;;  %v5375_v49 = vld [vmem:[%s12382_s5 + $0x308] sm:$0xff]  ;;  %v5382_v4 = vld [vmem:[%s12382_s5 + $0x340] sm:$0xff] }
 0x2f0   :  { %v11128_v17 = vsel %vm4633_vm6, %v5259_v54, %v5258_v39  ;;  %v8739_v24 = vcombine.high %v5359_v19, %v5367_v58  ;;  %v8737_v25 = vcombine.high %v5358_v35, %v5366_v40  ;;  %v5383_v44 = vld [vmem:[%s12382_s5 + $0x348] sm:$0xff]  ;;  %6766 = vmatpush1.bf16.msra.mxu0 %v8722_v57  ;;  %v8738_v54 = vcombine.low %v5359_v19, %v5367_v58 }
 0x2f1   :  { %6725 = vmatpush1.bf16.msra.mxu1 %v8720_v62  ;;  %v8736_v38 = vcombine.low %v5358_v35, %v5366_v40  ;;  %v8755_v12 = vcombine.high %v5375_v49, %v5383_v44  ;;  %v8753_v32 = vcombine.high %v5374_v23, %v5382_v4  ;;  %v5391_v46 = vld [vmem:[%s12382_s5 + $0x388] sm:$0xff]  ;;  %v8754_v47 = vcombine.low %v5375_v49, %v5383_v44 }
 0x2f2   :  { %6767 = vmatprep.subr.bf16.mxu0 %v8739_v24  ;;  %6726 = vmatprep.subr.bf16.mxu1 %v8737_v25  ;;  %v5399_v39 = vld [vmem:[%s12382_s5 + $0x3c8] sm:$0xff]  ;;  %v8752_v42 = vcombine.low %v5374_v23, %v5382_v4 }
 0x2f3   :  { %v8771_v14 = vcombine.high %v5391_v46, %v5399_v39  ;;  %v8770_v22 = vcombine.low %v5391_v46, %v5399_v39 }
 0x2f4   :  { %6768 = vmatpush1.bf16.msra.mxu0 %v8738_v54 }
 0x2f5   :  { %6727 = vmatpush1.bf16.msra.mxu1 %v8736_v38  ;;  %6769 = vmatprep.subr.bf16.mxu0 %v8755_v12 }
 0x2f6   :  { %6728 = vmatprep.subr.bf16.mxu1 %v8753_v32 }
 0x2f8   :  { %6770 = vmatpush1.bf16.msra.mxu0 %v8754_v47 }
 0x2f9   :  { %6729 = vmatpush1.bf16.msra.mxu1 %v8752_v42  ;;  %6771 = vmatprep.subr.bf16.mxu0 %v8771_v14 }
 0x2fa   :  { %6730 = vmatprep.subr.bf16.mxu1 %v8769_v63 }
 0x2fc   :  { %6772 = vmatpush1.bf16.msra.mxu0 %v8770_v22 }
 0x2fd   :  { %6731 = vmatpush1.bf16.msra.mxu1 %v8768_v43  ;;  %6773 = vmatprep.subr.bf16.mxu0 %v8787_v18 }
 0x2fe   :  { %6732 = vmatprep.subr.bf16.mxu1 %v8785_v59 }
 0x300   :  { %6774 = vmatpush1.bf16.msra.mxu0 %v8786_v48 }
 0x301   :  { %6733 = vmatpush1.bf16.msra.mxu1 %v8784_v11  ;;  %6775 = vmatprep.subr.bf16.mxu0 %v8803_v29 }
 0x302   :  { %6734 = vmatprep.subr.bf16.mxu1 %v8801_v53 }
 0x304   :  { %6776 = vmatpush1.bf16.msra.mxu0 %v8802_v27 }
 0x305   :  { %6735 = vmatpush1.bf16.msra.mxu1 %v8800_v30 }
 0x323   :  { %v9300_v51 = vpop.f32.mrb[4].mxu1 }
 0x324   :  { %v4986_v34 = vadd.f32 %v9300_v51, %v11103_v26  ;;  %v4977_v21 = vpop.f32.mrb[5].mxu1 }
 0x325   :  { %v4978_v56 = vadd.f32 %v11103_v26, %v4977_v21  ;;  %v9301_v37 = vpop.f32.mrb[6].mxu1 }
 0x326   :  { %v4989_v6 = vadd.f32 %v9301_v37, %v11103_v26  ;;  %v4980_v20 = vpop.f32.mrb[7].mxu1  ;;  %v5030_v31 = vmax.f32 %v4986_v34, 0.0 }
 0x327   :  { %v4981_v5 = vadd.f32 %v11103_v26, %v4980_v20  ;;  %v5028_v16 = vmax.f32 %v4978_v56, 0.0 }
 0x328   :  { %v5031_v61 = vmax.f32 %v4989_v6, 0.0 }
 0x329   :  { %v5029_v45 = vmax.f32 %v4981_v5, 0.0 }
 0x32a   :  { %v5043_v55 = vpack.c.bf16 %v5031_v61, %v5030_v31 }
 0x32b   :  { %v5042_v7 = vpack.c.bf16 %v5029_v45, %v5028_v16 }
 0x32c   :  { %v5058_v19 = vshrl.u32 %v5043_v55, 16 }
 0x32d   :  { %v5055_v58 = vshrl.u32 %v5042_v7, 16 }
 0x32e   :  { %v5083_v35 = vmax.bf16 %v5058_v19, %v5043_v55 }
 0x32f   :  { %v5082_v40 = vmax.bf16 %v5055_v58, %v5042_v7 }
 0x330   :  { %v8641_v57 = vcombine.low %v5083_v35, %v5083_v35  ;;  %v8649_v62 = vcombine.high %v5083_v35, %v5083_v35 }
 0x331   :  { %v8640_v24 = vcombine.low %v5082_v40, %v5082_v40  ;;  %v8648_v25 = vcombine.high %v5082_v40, %v5082_v40 }
 0x332   :  { %v5115_v49 = vunpack.c.l.b16 %v8641_v57  ;;  %v5217_v44 = vunpack.c.l.b16 %v8649_v62 }
 0x333   :  { %v5114_v23 = vunpack.c.l.b16 %v8640_v24  ;;  %v5216_v4 = vunpack.c.l.b16 %v8648_v25 }
 0x334   :  { %v5124_v54 = vrot.slane %v5115_v49, 5  ;;  %v5142_v38 = vrot.slane %v5115_v49, 7  ;;  %v5163_v12 = vrot.slane %v5115_v49, 1  ;;  %v5183_v32 = vrot.slane %v5115_v49, 3 }
 0x335   :  { %v5226_v46 = vrot.slane %v5217_v44, 5  ;;  %v5243_v39 = vrot.slane %v5217_v44, 7  ;;  %v5263_v15 = vrot.slane %v5217_v44, 1  ;;  %v5122_v10 = vrot.slane %v5114_v23, 6 }
 0x336   :  { %v5161_v47 = vrot.slane %v5114_v23, 2  ;;  %v5181_v42 = vrot.slane %v5114_v23, 4  ;;  %v5224_v14 = vrot.slane %v5216_v4, 6  ;;  %v5242_v63 = vsel %vm4636_vm7, %v5216_v4, %v11119_v2 }
 0x337   :  { %v5261_v50 = vrot.slane %v5216_v4, 2  ;;  %v5141_v60 = vsel %vm4636_vm7, %v5114_v23, %v11116_v28  ;;  %v5244_v8 = vsel %vm4639_vm8, %v5243_v39, %v5242_v63  ;;  %v5123_v9 = vsel %vm4636_vm7, %v5122_v10, %v11110_v41 }
 0x338   :  { %v5225_v22 = vsel %vm4636_vm7, %v5224_v14, %v11113_v33  ;;  %v5162_v43 = vsel %vm4636_vm7, %v5161_v47, %v11122_v3  ;;  %v5143_v18 = vsel %vm4639_vm8, %v5142_v38, %v5141_v60  ;;  %v5182_v2 = vsel %vm4636_vm7, %v5181_v42, %v11125_v52 }
 0x339   :  { %v5164_v59 = vsel %vm4639_vm8, %v5163_v12, %v5162_v43  ;;  %v5184_v28 = vsel %vm4639_vm8, %v5183_v32, %v5182_v2  ;;  %v5262_v1 = vsel %vm4636_vm7, %v5261_v50, %v11128_v17  ;;  %v5125_v41 = vsel %vm4639_vm8, %v5124_v54, %v5123_v9 }
 0x33a   :  { %v5264_v33 = vsel %vm4639_vm8, %v5263_v15, %v5262_v1  ;;  %v5227_v0 = vsel %vm4639_vm8, %v5226_v46, %v5225_v22 }
 0x33f   :  { %v9304_v13 = vpop.f32.mrb[8].mxu1 }
 0x340   :  { %v5002_v3 = vadd.f32 %v9304_v13, %v11103_v26  ;;  %v4993_v36 = vpop.f32.mrb[9].mxu1 }
 0x341   :  { %v4994_v48 = vadd.f32 %v11103_v26, %v4993_v36  ;;  %v9305_v52 = vpop.f32.mrb[10].mxu1 }
 0x342   :  { %v5005_v11 = vadd.f32 %v9305_v52, %v11103_v26  ;;  %v4996_v29 = vpop.f32.mrb[11].mxu1  ;;  %v5034_v27 = vmax.f32 %v5002_v3, 0.0 }
 0x343   :  { %v4997_v53 = vadd.f32 %v11103_v26, %v4996_v29  ;;  %v5032_v30 = vmax.f32 %v4994_v48, 0.0  ;;  %v5438_v29 = vld [vmem:[%s12382_s5 + $0x500] sm:$0xff] }
 0x344   :  { %v5035_v17 = vmax.f32 %v5005_v11, 0.0 }
 0x345   :  { %v5033_v51 = vmax.f32 %v4997_v53, 0.0  ;;  %v5446_v53 = vld [vmem:[%s12382_s5 + $0x540] sm:$0xff] }
 0x346   :  { %v5045_v34 = vpack.c.bf16 %v5035_v17, %v5034_v27  ;;  %v8816_v17 = vcombine.low %v5438_v29, %v5446_v53 }
 0x347   :  { %v5044_v21 = vpack.c.bf16 %v5033_v51, %v5032_v30  ;;  %v8817_v30 = vcombine.high %v5438_v29, %v5446_v53  ;;  %v5447_v51 = vld [vmem:[%s12382_s5 + $0x548] sm:$0xff] }
 0x348   :  { %v5064_v56 = vshrl.u32 %v5045_v34, 16 }
 0x349   :  { %v5061_v37 = vshrl.u32 %v5044_v21, 16  ;;  %6736 = vmatprep.subr.bf16.mxu1 %v8817_v30 }
 0x34a   :  { %v5085_v6 = vmax.bf16 %v5064_v56, %v5045_v34  ;;  %6737 = vmatpush1.bf16.msra.mxu1 %v8816_v17 }
 0x34b   :  { %v5084_v20 = vmax.bf16 %v5061_v37, %v5044_v21 }
 0x34c   :  { %v8643_v5 = vcombine.low %v5085_v6, %v5085_v6  ;;  %v8651_v31 = vcombine.high %v5085_v6, %v5085_v6 }
 0x34d   :  { %v8642_v61 = vcombine.low %v5084_v20, %v5084_v20  ;;  %v8650_v16 = vcombine.high %v5084_v20, %v5084_v20 }
 0x34e   :  { %v5117_v45 = vunpack.c.l.b16 %v8643_v5  ;;  %v5219_v55 = vunpack.c.l.b16 %v8651_v31 }
 0x34f   :  { %v5116_v7 = vunpack.c.l.b16 %v8642_v61  ;;  %v5218_v19 = vunpack.c.l.b16 %v8650_v16  ;;  %v5454_v61 = vld [vmem:[%s12382_s5 + $0x580] sm:$0xff] }
 0x350   :  { %v5230_v58 = vrot.slane %v5219_v55, 3  ;;  %v5247_v35 = vrot.slane %v5219_v55, 5  ;;  %v5266_v40 = vrot.slane %v5219_v55, 7  ;;  %v5166_v57 = vrot.slane %v5117_v45, 7  ;;  %v5462_v16 = vld [vmem:[%s12382_s5 + $0x5c0] sm:$0xff] }
 0x351   :  { %v5126_v62 = vrot.slane %v5116_v7, 4  ;;  %v5228_v24 = vrot.slane %v5218_v19, 4  ;;  %v5245_v25 = vrot.slane %v5218_v19, 6  ;;  %v5165_v49 = vsel %vm4642_vm9, %v5116_v7, %v5164_v59 }
 0x352   :  { %v11281_v44 = vsel %vm4645_vm10, %v5166_v57, %v5165_v49  ;;  %v5144_v23 = vrot.slane %v5116_v7, 6  ;;  %v5146_v4 = vrot.slane %v5117_v45, 5  ;;  %v5185_v54 = vrot.slane %v5116_v7, 2 }
 0x353   :  { %v5187_v38 = vrot.slane %v5117_v45, 1  ;;  %v5246_v12 = vsel %vm4642_vm9, %v5245_v25, %v5244_v8  ;;  %v5265_v32 = vsel %vm4642_vm9, %v5218_v19, %v5264_v33  ;;  %v5128_v46 = vrot.slane %v5117_v45, 3 }
 0x354   :  { %v5145_v39 = vsel %vm4642_vm9, %v5144_v23, %v5143_v18  ;;  %v5186_v15 = vsel %vm4642_vm9, %v5185_v54, %v5184_v28  ;;  %v11288_v10 = vsel %vm4645_vm10, %v5247_v35, %v5246_v12  ;;  %v11291_v47 = vsel %vm4645_vm10, %v5266_v40, %v5265_v32 }
 0x355   :  { %v11294_v42 = vsel %vm4645_vm10, %v5146_v4, %v5145_v39  ;;  %v5188_v14 = vsel %vm4645_vm10, %v5187_v38, %v5186_v15  ;;  %v5127_v63 = vsel %vm4642_vm9, %v5126_v62, %v5125_v41  ;;  %v5229_v50 = vsel %vm4642_vm9, %v5228_v24, %v5227_v0 }
 0x356   :  { %v11300_v60 = vsel %vm4645_vm10, %v5128_v46, %v5127_v63  ;;  %v11303_v8 = vsel %vm4645_vm10, %v5230_v58, %v5229_v50  ;;  %v8832_v7 = vcombine.low %v5454_v61, %v5462_v16  ;;  %v8833_v19 = vcombine.high %v5454_v61, %v5462_v16  ;;  %v5289_v61 = vld [vmem:[%s12382_s5 + $0x58] sm:$0xff] }
 0x358   :  { %6738 = vmatprep.subr.bf16.mxu1 %v8833_v19 }
 0x359   :  { %6739 = vmatpush1.bf16.msra.mxu1 %v8832_v7 }
 0x35b   :  { %v9308_v9 = vpop.f32.mrb[12].mxu1 }
 0x35c   :  { %v5018_v22 = vadd.f32 %v9308_v9, %v11103_v26  ;;  %v5009_v43 = vpop.f32.mrb[13].mxu1 }
 0x35d   :  { %v5010_v18 = vadd.f32 %v11103_v26, %v5009_v43  ;;  %v9309_v2 = vpop.f32.mrb[14].mxu1 }
 0x35e   :  { %v5021_v59 = vadd.f32 %v9309_v2, %v11103_v26  ;;  %v5012_v28 = vpop.f32.mrb[15].mxu1  ;;  %v5038_v41 = vmax.f32 %v5018_v22, 0.0 }
 0x35f   :  { %v5013_v1 = vadd.f32 %v11103_v26, %v5012_v28  ;;  %v5036_v33 = vmax.f32 %v5010_v18, 0.0  ;;  %v5439_v26 = vld [vmem:[%s12382_s5 + $0x508] sm:$0xff] }
 0x360   :  { %v5039_v13 = vmax.f32 %v5021_v59, 0.0  ;;  %v8818_v56 = vcombine.low %v5439_v26, %v5447_v51  ;;  %v8819_v37 = vcombine.high %v5439_v26, %v5447_v51  ;;  %v5471_v59 = vld [vmem:[%s12382_s5 + $0x608] sm:$0xff] }
 0x361   :  { %v5037_v0 = vmax.f32 %v5013_v1, 0.0  ;;  %v5479_v28 = vld [vmem:[%s12382_s5 + $0x648] sm:$0xff] }
 0x362   :  { %v5047_v3 = vpack.c.bf16 %v5039_v13, %v5038_v41  ;;  %6777 = vmatprep.subr.bf16.mxu0 %v8819_v37  ;;  %v8850_v30 = vcombine.low %v5471_v59, %v5479_v28  ;;  %v5288_v37 = vld [vmem:[%s12382_s5 + $0x50] sm:$0xff] }
 0x363   :  { %v5046_v36 = vpack.c.bf16 %v5037_v0, %v5036_v33  ;;  %6778 = vmatpush1.bf16.msra.mxu0 %v8818_v56  ;;  %v5486_v33 = vld [vmem:[%s12382_s5 + $0x680] sm:$0xff]  ;;  %v5280_v56 = vld [vmem:[%s12382_s5 + $0x10] sm:$0xff] }
 0x364   :  { %v5070_v48 = vshrl.u32 %v5047_v3, 16  ;;  %v5494_v0 = vld [vmem:[%s12382_s5 + $0x6c0] sm:$0xff] }
 0x365   :  { %v5067_v52 = vshrl.u32 %v5046_v36, 16  ;;  %v8865_v51 = vcombine.high %v5486_v33, %v5494_v0 }
 0x366   :  { %v5087_v11 = vmax.bf16 %v5070_v48, %v5047_v3 }
 0x367   :  { %v5086_v27 = vmax.bf16 %v5067_v52, %v5046_v36 }
 0x368   :  { %v8645_v34 = vcombine.low %v5087_v11, %v5087_v11  ;;  %v8653_v21 = vcombine.high %v5087_v11, %v5087_v11  ;;  %v5495_v11 = vld [vmem:[%s12382_s5 + $0x6c8] sm:$0xff] }
 0x369   :  { %v8644_v6 = vcombine.low %v5086_v27, %v5086_v27  ;;  %v8652_v20 = vcombine.high %v5086_v27, %v5086_v27  ;;  %v8851_v27 = vcombine.high %v5471_v59, %v5479_v28  ;;  %v5352_v59 = vld [vmem:[%s12382_s5 + $0x250] sm:$0xff]  ;;  %v5345_v28 = vld [vmem:[%s12382_s5 + $0x218] sm:$0xff] }
 0x36a   :  { %v5119_v5 = vunpack.c.l.b16 %v8645_v34  ;;  %v11321_v31 = vunpack.c.l.b16 %v8653_v21  ;;  %v8864_v21 = vcombine.low %v5486_v33, %v5494_v0  ;;  %v5360_v0 = vld [vmem:[%s12382_s5 + $0x290] sm:$0xff] }
 0x36b   :  { %v5118_v45 = vunpack.c.l.b16 %v8644_v6  ;;  %v5220_v55 = vunpack.c.l.b16 %v8652_v20  ;;  %v5281_v6 = vld [vmem:[%s12382_s5 + $0x18] sm:$0xff] }
 0x36c   :  { %v5170_v58 = vrot.slane %v5119_v5, 5  ;;  %v5150_v35 = vrot.slane %v5119_v5, 3  ;;  %v5190_v40 = vrot.slane %v5119_v5, 7  ;;  %v5251_v25 = vrot.slane %v11321_v31, 3 }
 0x36d   :  { %v5168_v57 = vrot.slane %v5118_v45, 6  ;;  %v5148_v62 = vrot.slane %v5118_v45, 4  ;;  %v5189_v24 = vsel %vm4648_vm11, %v5118_v45, %v5188_v14  ;;  %v5232_v49 = vrot.slane %v5220_v55, 2 }
 0x36e   :  { %v5191_v23 = vsel %vm4651_vm12, %v5190_v40, %v5189_v24  ;;  %v5249_v4 = vrot.slane %v5220_v55, 4  ;;  %v5268_v54 = vrot.slane %v5220_v55, 6  ;;  %v5270_v32 = vrot.slane %v11321_v31, 5 }
 0x36f   :  { %v5169_v38 = vsel %vm4648_vm11, %v5168_v57, %v11281_v44  ;;  %v5149_v12 = vsel %vm4648_vm11, %v5148_v62, %v11294_v42  ;;  %v5130_v46 = vrot.slane %v5118_v45, 2  ;;  %v5455_v44 = vld [vmem:[%s12382_s5 + $0x588] sm:$0xff]  ;;  %v5132_v18 = vrot.slane %v5119_v5, 1  ;;  %v5296_v57 = vld [vmem:[%s12382_s5 + $0x90] sm:$0xff] }
 0x370   :  { %v5171_v39 = vsel %vm4651_vm12, %v5170_v58, %v5169_v38  ;;  %v5151_v15 = vsel %vm4651_vm12, %v5150_v35, %v5149_v12  ;;  %v5250_v14 = vsel %vm4648_vm11, %v5249_v4, %v11288_v10  ;;  %v5269_v63 = vsel %vm4648_vm11, %v5268_v54, %v11291_v47  ;;  %v5463_v42 = vld [vmem:[%s12382_s5 + $0x5c8] sm:$0xff]  ;;  %v5470_v10 = vld [vmem:[%s12382_s5 + $0x600] sm:$0xff]  ;;  %v5304_v62 = vld [vmem:[%s12382_s5 + $0xd0] sm:$0xff] }
 0x371   :  { %v5172_v50 = vpack.c.b16 %v5171_v39, %v5171_v39  ;;  %v5152_v9 = vpack.c.b16 %v5151_v15, %v5151_v15  ;;  %v5252_v22 = vsel %vm4651_vm12, %v5251_v25, %v5250_v14  ;;  %v5271_v43 = vsel %vm4651_vm12, %v5270_v32, %v5269_v63  ;;  %v5478_v47 = vld [vmem:[%s12382_s5 + $0x640] sm:$0xff]  ;;  %v5297_v25 = vld [vmem:[%s12382_s5 + $0x98] sm:$0xff]  ;;  %v5312_v54 = vld [vmem:[%s12382_s5 + $0x110] sm:$0xff] }
 0x372   :  { %v5131_v2 = vsel %vm4648_vm11, %v5130_v46, %v11300_v60  ;;  %v5233_v1 = vsel %vm4648_vm11, %v5232_v49, %v11303_v8  ;;  %v5234_v41 = vrot.slane %v11321_v31, 1  ;;  %v8834_v13 = vcombine.low %v5455_v44, %v5463_v42  ;;  %v5487_v8 = vld [vmem:[%s12382_s5 + $0x688] sm:$0xff]  ;;  %v5305_v49 = vld [vmem:[%s12382_s5 + $0xd8] sm:$0xff]  ;;  %v5320_v32 = vld [vmem:[%s12382_s5 + $0x150] sm:$0xff] }
 0x373   :  { %5173 = vrot.lane.b32.xlu1 %v5172_v50, %s9483_s4  ;;  %5153 = vrot.lane.b32.xlu0 %v5152_v9, %s9484_s11  ;;  %v8835_v60 = vcombine.high %v5455_v44, %v5463_v42  ;;  %v5192_v3 = vpack.c.b16 %v5191_v23, %v5191_v23  ;;  %v5133_v36 = vsel %vm4651_vm12, %v5132_v18, %v5131_v2  ;;  %v5313_v46 = vld [vmem:[%s12382_s5 + $0x118] sm:$0xff]  ;;  %v5328_v42 = vld [vmem:[%s12382_s5 + $0x190] sm:$0xff] }
 0x374   :  { %v8848_v48 = vcombine.low %v5470_v10, %v5478_v47  ;;  %v8849_v52 = vcombine.high %v5470_v10, %v5478_v47  ;;  %v5253_v29 = vpack.c.b16 %v5252_v22, %v5252_v22  ;;  %v5134_v53 = vpack.c.b16 %v5133_v36, %v5133_v36  ;;  %v5321_v39 = vld [vmem:[%s12382_s5 + $0x158] sm:$0xff]  ;;  %v5336_v50 = vld [vmem:[%s12382_s5 + $0x1d0] sm:$0xff] }
 0x375   :  { %v5235_v26 = vsel %vm4651_vm12, %v5234_v41, %v5233_v1  ;;  %6779 = vmatprep.subr.bf16.mxu0 %v8835_v60  ;;  %v8867_v34 = vcombine.high %v5487_v8, %v5495_v11  ;;  %v5272_v20 = vpack.c.b16 %v5271_v43, %v5271_v43  ;;  %v8660_v5 = vcombine.low %v5280_v56, %v5288_v37  ;;  %v5329_v9 = vld [vmem:[%s12382_s5 + $0x198] sm:$0xff]  ;;  %v5344_v2 = vld [vmem:[%s12382_s5 + $0x210] sm:$0xff] }
 0x376   :  { %v5236_v17 = vpack.c.b16 %v5235_v26, %v5235_v26  ;;  %6780 = vmatpush1.bf16.msra.mxu0 %v8834_v13  ;;  %6740 = vmatprep.subr.bf16.mxu1 %v8849_v52  ;;  %5137 = vst.msk [vmem:[#allocation3] sm:$0xf] %vm5136_vm13, %v5134_v53  ;;  %v8661_v31 = vcombine.high %v5280_v56, %v5288_v37  ;;  %v5337_v22 = vld [vmem:[%s12382_s5 + $0x1d8] sm:$0xff]  ;;  %v5376_v53 = vld [vmem:[%s12382_s5 + $0x310] sm:$0xff] }
 0x377   :  { %5193 = vrot.lane.b32.xlu1 %v5192_v3, %s9485_s18  ;;  %5254 = vrot.lane.b32.xlu0 %v5253_v29, %s9484_s11  ;;  %v8866_v16 = vcombine.low %v5487_v8, %v5495_v11  ;;  %v8662_v45 = vcombine.low %v5281_v6, %v5289_v61  ;;  %v8663_v55 = vcombine.high %v5281_v6, %v5289_v61  ;;  %v5353_v1 = vld [vmem:[%s12382_s5 + $0x258] sm:$0xff]  ;;  %v5368_v3 = vld [vmem:[%s12382_s5 + $0x2d0] sm:$0xff] }
 0x378   :  { %5238 = vst.msk [vmem:[#allocation3 + $0x4] sm:$0xf] %vm5136_vm13, %v5236_v17  ;;  %6781 = vmatprep.subr.bf16.mxu0 %v8851_v27  ;;  %6741 = vmatpush1.bf16.msra.mxu1 %v8848_v48  ;;  %v8677_v38 = vcombine.high %v5296_v57, %v5304_v62  ;;  %v8679_v12 = vcombine.high %v5297_v25, %v5305_v49  ;;  %v5361_v36 = vld [vmem:[%s12382_s5 + $0x298] sm:$0xff]  ;;  %v5384_v26 = vld [vmem:[%s12382_s5 + $0x350] sm:$0xff] }
 0x379   :  { %6742 = vmatprep.subr.bf16.mxu1 %v8865_v51  ;;  %v8676_v15 = vcombine.low %v5296_v57, %v5304_v62  ;;  %v8678_v14 = vcombine.low %v5297_v25, %v5305_v49  ;;  %v8693_v63 = vcombine.high %v5312_v54, %v5320_v32  ;;  %v8695_v44 = vcombine.high %v5313_v46, %v5321_v39  ;;  %v5369_v48 = vld [vmem:[%s12382_s5 + $0x2d8] sm:$0xff]  ;;  %v5392_v56 = vld [vmem:[%s12382_s5 + $0x390] sm:$0xff] }
 0x37a   :  { %6782 = vmatpush1.bf16.msra.mxu0 %v8850_v30  ;;  %v8692_v43 = vcombine.low %v5312_v54, %v5320_v32  ;;  %v8694_v10 = vcombine.low %v5313_v46, %v5321_v39  ;;  %v8709_v47 = vcombine.high %v5328_v42, %v5336_v50  ;;  %v8711_v18 = vcombine.high %v5329_v9, %v5337_v22  ;;  %v5377_v27 = vld [vmem:[%s12382_s5 + $0x318] sm:$0xff]  ;;  %v5400_v37 = vld [vmem:[%s12382_s5 + $0x3d0] sm:$0xff] }
 0x37b   :  { %5273 = vrot.lane.b32.xlu0 %v5272_v20, %s9483_s4  ;;  %6783 = vmatprep.subr.bf16.mxu0 %v8867_v34  ;;  %v8708_v41 = vcombine.low %v5328_v42, %v5336_v50  ;;  %v8710_v13 = vcombine.low %v5329_v9, %v5337_v22  ;;  %v8725_v60 = vcombine.high %v5344_v2, %v5352_v59  ;;  %v5385_v17 = vld [vmem:[%s12382_s5 + $0x358] sm:$0xff]  ;;  %v5424_v62 = vld [vmem:[%s12382_s5 + $0x490] sm:$0xff] }
 0x37c   :  { %6743 = vmatpush1.bf16.msra.mxu1 %v8864_v21  ;;  %v8727_v33 = vcombine.high %v5345_v28, %v5353_v1  ;;  %v8724_v52 = vcombine.low %v5344_v2, %v5352_v59  ;;  %v8726_v8 = vcombine.low %v5345_v28, %v5353_v1  ;;  %v8741_v11 = vcombine.high %v5360_v0, %v5368_v3  ;;  %v5393_v6 = vld [vmem:[%s12382_s5 + $0x398] sm:$0xff]  ;;  %v5440_v46 = vld [vmem:[%s12382_s5 + $0x510] sm:$0xff] }
 0x37d   :  { %6798 = vmatprep.subr.bf16.mxu1 %v8661_v31  ;;  %v8743_v29 = vcombine.high %v5361_v36, %v5369_v48  ;;  %v8740_v30 = vcombine.low %v5360_v0, %v5368_v3  ;;  %v8742_v51 = vcombine.low %v5361_v36, %v5369_v48  ;;  %v8757_v34 = vcombine.high %v5376_v53, %v5384_v26  ;;  %v5401_v20 = vld [vmem:[%s12382_s5 + $0x3d8] sm:$0xff]  ;;  %v5448_v39 = vld [vmem:[%s12382_s5 + $0x550] sm:$0xff] }
 0x37e   :  { %6784 = vmatpush1.bf16.msra.mxu0 %v8866_v16  ;;  %v8759_v21 = vcombine.high %v5377_v27, %v5385_v17  ;;  %v8758_v31 = vcombine.low %v5377_v27, %v5385_v17  ;;  %v8773_v61 = vcombine.high %v5392_v56, %v5400_v37  ;;  %v8775_v16 = vcombine.high %v5393_v6, %v5401_v20  ;;  %v5425_v25 = vld [vmem:[%s12382_s5 + $0x498] sm:$0xff]  ;;  %v5456_v9 = vld [vmem:[%s12382_s5 + $0x590] sm:$0xff] }
 0x37f   :  { %6839 = vmatprep.subr.bf16.mxu0 %v8663_v55  ;;  %v5416_v55 = vld [vmem:[%s12382_s5 + $0x450] sm:$0xff]  ;;  %v5433_v49 = vld [vmem:[%s12382_s5 + $0x4d8] sm:$0xff]  ;;  %v8821_v42 = vcombine.high %v5440_v46, %v5448_v39 }
 0x380   :  { %v8807_v32 = vcombine.high %v5425_v25, %v5433_v49  ;;  %v5464_v22 = vld [vmem:[%s12382_s5 + $0x5d0] sm:$0xff] }
 0x381   :  { %v8837_v2 = vcombine.high %v5456_v9, %v5464_v22  ;;  %v5472_v28 = vld [vmem:[%s12382_s5 + $0x610] sm:$0xff] }
 0x382   :  { %v5480_v1 = vld [vmem:[%s12382_s5 + $0x650] sm:$0xff] }
 0x383   :  { %v5488_v0 = vld [vmem:[%s12382_s5 + $0x690] sm:$0xff]  ;;  %v8853_v36 = vcombine.high %v5472_v28, %v5480_v1 }
 0x384   :  { %v5496_v3 = vld [vmem:[%s12382_s5 + $0x6d0] sm:$0xff] }
 0x385   :  { %v8869_v27 = vcombine.high %v5488_v0, %v5496_v3 }
 0x3e5   :  { %v5174_v7 = vpop.permute.xlu1 %5173  ;;  %v5154_v19 = vpop.permute.xlu0 %5153 }
 0x3e6   :  { %5157 = vst.msk [vmem:[#allocation3] sm:$0xf] %vm5156_vm14, %v5154_v19  ;;  %v5417_v19 = vld [vmem:[%s12382_s5 + $0x458] sm:$0xff] }
 0x3e7   :  { %5177 = vst.msk [vmem:[#allocation3] sm:$0xf] %vm5176_vm15, %v5174_v7  ;;  %v5409_v7 = vld [vmem:[%s12382_s5 + $0x418] sm:$0xff] }
 0x3e8   :  { %v8791_v57 = vcombine.high %v5409_v7, %v5417_v19 }
 0x3e9   :  { %v5194_v58 = vpop.permute.xlu1 %5193  ;;  %v5255_v35 = vpop.permute.xlu0 %5254 }
 0x3ea   :  { %5197 = vst.msk [vmem:[#allocation3] sm:$0xf] %vm5196_vm0, %v5194_v58  ;;  %v8772_v58 = vcombine.low %v5392_v56, %v5400_v37 }
 0x3eb   :  { %5257 = vst.msk [vmem:[#allocation3 + $0x4] sm:$0xf] %vm5156_vm14, %v5255_v35  ;;  %v8774_v35 = vcombine.low %v5393_v6, %v5401_v20  ;;  %v5298_v6 = vld [vmem:[%s12382_s5 + $0xa0] sm:$0xff] }
 0x3ec   :  { %v5306_v20 = vld [vmem:[%s12382_s5 + $0xe0] sm:$0xff] }
 0x3ed   :  { %v5274_v40 = vpop.permute.xlu0 %5273 }
 0x3ee   :  { %5276 = vst.msk [vmem:[#allocation3 + $0x4] sm:$0xf] %vm5176_vm15, %v5274_v40 }
 0x3f5   :  { %v5277_v24 = vld [vmem:[#allocation3] sm:$0xff] }
 0x3f6   :  { %v11410_v23 = vcombine.high %v5277_v24, %v5277_v24  ;;  %v11412_v4 = vcombine.low %v5277_v24, %v5277_v24  ;;  %v5432_v24 = vld [vmem:[%s12382_s5 + $0x4d0] sm:$0xff] }
 0x3f8   :  { %8880 = vmatprep.mubr.msk.bf16.mxu1 %vm6712_vm1, %v11410_v23  ;;  %8881 = vmatprep.mubr.msk.bf16.mxu0 %vm6712_vm1, %v11410_v23 }
 0x3f9   :  { %6749 = vmatmul.mubr.bf16.vlgmr.msra.gmra.mrb[16].mxu1 %v11412_v4  ;;  %6790 = vmatmul.mubr.bf16.vlgmr.msra.gmra.mrb[32].mxu0 %v11412_v4 }
 0x3fa   :  { %6799 = vmatpush1.bf16.msra.mxu1 %v8660_v5  ;;  %6840 = vmatpush1.bf16.msra.mxu0 %v8662_v45  ;;  %v8756_v5 = vcombine.low %v5376_v53, %v5384_v26  ;;  %v5408_v45 = vld [vmem:[%s12382_s5 + $0x410] sm:$0xff]  ;;  %v5282_v53 = vld [vmem:[%s12382_s5 + $0x20] sm:$0xff] }
 0x3fb   :  { %8882 = vmatprep.mubr.msk.bf16.mxu1 %vm6712_vm1, %v11410_v23  ;;  %8883 = vmatprep.mubr.msk.bf16.mxu0 %vm6712_vm1, %v11410_v23  ;;  %v8789_v40 = vcombine.high %v5408_v45, %v5416_v55  ;;  %v8788_v54 = vcombine.low %v5408_v45, %v5416_v55  ;;  %v5290_v26 = vld [vmem:[%s12382_s5 + $0x60] sm:$0xff] }
 0x3fc   :  { %6800 = vmatprep.subr.bf16.mxu1 %v8677_v38  ;;  %6841 = vmatprep.subr.bf16.mxu0 %v8679_v12  ;;  %v8790_v38 = vcombine.low %v5409_v7, %v5417_v19  ;;  %v8805_v12 = vcombine.high %v5424_v62, %v5432_v24  ;;  %v8665_v56 = vcombine.high %v5282_v53, %v5290_v26  ;;  %v5322_v55 = vld [vmem:[%s12382_s5 + $0x160] sm:$0xff] }
 0x3fd   :  { %v8681_v7 = vcombine.high %v5298_v6, %v5306_v20 }
 0x3fe   :  { %6801 = vmatpush1.bf16.msra.mxu1 %v8676_v15  ;;  %6842 = vmatpush1.bf16.msra.mxu0 %v8678_v14  ;;  %v5441_v15 = vld [vmem:[%s12382_s5 + $0x518] sm:$0xff] }
 0x3ff   :  { %6802 = vmatprep.subr.bf16.mxu1 %v8693_v63  ;;  %6843 = vmatprep.subr.bf16.mxu0 %v8695_v44  ;;  %v5449_v14 = vld [vmem:[%s12382_s5 + $0x558] sm:$0xff]  ;;  %v8804_v63 = vcombine.low %v5424_v62, %v5432_v24  ;;  %v8806_v44 = vcombine.low %v5425_v25, %v5433_v49  ;;  %v5338_v25 = vld [vmem:[%s12382_s5 + $0x1e0] sm:$0xff] }
 0x400   :  { %v8823_v50 = vcombine.high %v5441_v15, %v5449_v14 }
 0x402   :  { %6803 = vmatpush1.bf16.msra.mxu1 %v8692_v43  ;;  %6844 = vmatpush1.bf16.msra.mxu0 %v8694_v10  ;;  %v5457_v43 = vld [vmem:[%s12382_s5 + $0x598] sm:$0xff] }
 0x403   :  { %6804 = vmatprep.subr.bf16.mxu1 %v8709_v47  ;;  %6845 = vmatprep.subr.bf16.mxu0 %v8711_v18  ;;  %v5465_v10 = vld [vmem:[%s12382_s5 + $0x5d8] sm:$0xff]  ;;  %v8820_v47 = vcombine.low %v5440_v46, %v5448_v39  ;;  %v8822_v18 = vcombine.low %v5441_v15, %v5449_v14  ;;  %v5354_v15 = vld [vmem:[%s12382_s5 + $0x260] sm:$0xff] }
 0x404   :  { %v8839_v59 = vcombine.high %v5457_v43, %v5465_v10 }
 0x406   :  { %6805 = vmatpush1.bf16.msra.mxu1 %v8708_v41  ;;  %6846 = vmatpush1.bf16.msra.mxu0 %v8710_v13  ;;  %v5473_v41 = vld [vmem:[%s12382_s5 + $0x618] sm:$0xff] }
 0x407   :  { %6806 = vmatprep.subr.bf16.mxu1 %v8725_v60  ;;  %6847 = vmatprep.subr.bf16.mxu0 %v8727_v33  ;;  %v5481_v13 = vld [vmem:[%s12382_s5 + $0x658] sm:$0xff]  ;;  %v8836_v60 = vcombine.low %v5456_v9, %v5464_v22  ;;  %v8838_v33 = vcombine.low %v5457_v43, %v5465_v10  ;;  %v5370_v9 = vld [vmem:[%s12382_s5 + $0x2e0] sm:$0xff]  ;;  %v5363_v10 = vld [vmem:[%s12382_s5 + $0x2a8] sm:$0xff] }
 0x408   :  { %v8855_v48 = vcombine.high %v5473_v41, %v5481_v13 }
 0x40a   :  { %6807 = vmatpush1.bf16.msra.mxu1 %v8724_v52  ;;  %6848 = vmatpush1.bf16.msra.mxu0 %v8726_v8  ;;  %v5489_v52 = vld [vmem:[%s12382_s5 + $0x698] sm:$0xff] }
 0x40b   :  { %6808 = vmatprep.subr.bf16.mxu1 %v8741_v11  ;;  %6849 = vmatprep.subr.bf16.mxu0 %v8743_v29  ;;  %v5497_v8 = vld [vmem:[%s12382_s5 + $0x6d8] sm:$0xff]  ;;  %v8852_v11 = vcombine.low %v5472_v28, %v5480_v1  ;;  %v8854_v29 = vcombine.low %v5473_v41, %v5481_v13  ;;  %v5386_v28 = vld [vmem:[%s12382_s5 + $0x360] sm:$0xff]  ;;  %v5379_v13 = vld [vmem:[%s12382_s5 + $0x328] sm:$0xff] }
 0x40c   :  { %v8871_v17 = vcombine.high %v5489_v52, %v5497_v8 }
 0x40e   :  { %6809 = vmatpush1.bf16.msra.mxu1 %v8740_v30  ;;  %6850 = vmatpush1.bf16.msra.mxu0 %v8742_v51  ;;  %v5283_v30 = vld [vmem:[%s12382_s5 + $0x28] sm:$0xff] }
 0x40f   :  { %6810 = vmatprep.subr.bf16.mxu1 %v8757_v34  ;;  %6851 = vmatprep.subr.bf16.mxu0 %v8759_v21  ;;  %v5291_v51 = vld [vmem:[%s12382_s5 + $0x68] sm:$0xff]  ;;  %v8868_v34 = vcombine.low %v5488_v0, %v5496_v3  ;;  %v8870_v21 = vcombine.low %v5489_v52, %v5497_v8  ;;  %v5394_v3 = vld [vmem:[%s12382_s5 + $0x3a0] sm:$0xff] }
 0x410   :  { %v8667_v37 = vcombine.high %v5283_v30, %v5291_v51  ;;  %v8666_v45 = vcombine.low %v5283_v30, %v5291_v51  ;;  %v5395_v8 = vld [vmem:[%s12382_s5 + $0x3a8] sm:$0xff] }
 0x411   :  { %v5411_v51 = vld [vmem:[%s12382_s5 + $0x428] sm:$0xff] }
 0x412   :  { %6811 = vmatpush1.bf16.msra.mxu1 %v8756_v5  ;;  %6852 = vmatpush1.bf16.msra.mxu0 %v8758_v31  ;;  %v5299_v5 = vld [vmem:[%s12382_s5 + $0xa8] sm:$0xff] }
 0x413   :  { %6812 = vmatprep.subr.bf16.mxu1 %v8773_v61  ;;  %6853 = vmatprep.subr.bf16.mxu0 %v8775_v16  ;;  %v5307_v31 = vld [vmem:[%s12382_s5 + $0xe8] sm:$0xff]  ;;  %v8664_v61 = vcombine.low %v5282_v53, %v5290_v26  ;;  %v5314_v16 = vld [vmem:[%s12382_s5 + $0x120] sm:$0xff] }
 0x414   :  { %v8683_v19 = vcombine.high %v5299_v5, %v5307_v31  ;;  %v8682_v62 = vcombine.low %v5299_v5, %v5307_v31  ;;  %v8697_v24 = vcombine.high %v5314_v16, %v5322_v55  ;;  %v5410_v26 = vld [vmem:[%s12382_s5 + $0x420] sm:$0xff]  ;;  %v5427_v31 = vld [vmem:[%s12382_s5 + $0x4a8] sm:$0xff] }
 0x416   :  { %6813 = vmatpush1.bf16.msra.mxu1 %v8772_v58  ;;  %6854 = vmatpush1.bf16.msra.mxu0 %v8774_v35  ;;  %v5315_v58 = vld [vmem:[%s12382_s5 + $0x128] sm:$0xff] }
 0x417   :  { %6814 = vmatprep.subr.bf16.mxu1 %v8789_v40  ;;  %6855 = vmatprep.subr.bf16.mxu0 %v8791_v57  ;;  %v5323_v35 = vld [vmem:[%s12382_s5 + $0x168] sm:$0xff]  ;;  %v8680_v40 = vcombine.low %v5298_v6, %v5306_v20  ;;  %v5330_v57 = vld [vmem:[%s12382_s5 + $0x1a0] sm:$0xff] }
 0x418   :  { %v8699_v49 = vcombine.high %v5315_v58, %v5323_v35  ;;  %v8698_v46 = vcombine.low %v5315_v58, %v5323_v35  ;;  %v8713_v39 = vcombine.high %v5330_v57, %v5338_v25  ;;  %v5434_v6 = vld [vmem:[%s12382_s5 + $0x4e0] sm:$0xff] }
 0x41a   :  { %6815 = vmatpush1.bf16.msra.mxu1 %v8788_v54  ;;  %6856 = vmatpush1.bf16.msra.mxu0 %v8790_v38  ;;  %v5331_v54 = vld [vmem:[%s12382_s5 + $0x1a8] sm:$0xff] }
 0x41b   :  { %6816 = vmatprep.subr.bf16.mxu1 %v8805_v12  ;;  %6857 = vmatprep.subr.bf16.mxu0 %v8807_v32  ;;  %v5339_v38 = vld [vmem:[%s12382_s5 + $0x1e8] sm:$0xff]  ;;  %v8696_v12 = vcombine.low %v5314_v16, %v5322_v55  ;;  %v5346_v32 = vld [vmem:[%s12382_s5 + $0x220] sm:$0xff] }
 0x41c   :  { %v8715_v14 = vcombine.high %v5331_v54, %v5339_v38  ;;  %v8714_v22 = vcombine.low %v5331_v54, %v5339_v38  ;;  %v8729_v43 = vcombine.high %v5346_v32, %v5354_v15  ;;  %v5442_v55 = vld [vmem:[%s12382_s5 + $0x520] sm:$0xff] }
 0x41d   :  { %v5458_v54 = vld [vmem:[%s12382_s5 + $0x5a0] sm:$0xff] }
 0x41e   :  { %6817 = vmatpush1.bf16.msra.mxu1 %v8804_v63  ;;  %6858 = vmatpush1.bf16.msra.mxu0 %v8806_v44  ;;  %v5347_v63 = vld [vmem:[%s12382_s5 + $0x228] sm:$0xff]  ;;  %v5466_v38 = vld [vmem:[%s12382_s5 + $0x5e0] sm:$0xff] }
 0x41f   :  { %6818 = vmatprep.subr.bf16.mxu1 %v8821_v42  ;;  %6859 = vmatprep.subr.bf16.mxu0 %v8823_v50  ;;  %v5355_v44 = vld [vmem:[%s12382_s5 + $0x268] sm:$0xff]  ;;  %v8712_v42 = vcombine.low %v5330_v57, %v5338_v25  ;;  %v5362_v50 = vld [vmem:[%s12382_s5 + $0x2a0] sm:$0xff] }
 0x420   :  { %v8730_v1 = vcombine.low %v5347_v63, %v5355_v44  ;;  %v8745_v41 = vcombine.high %v5362_v50, %v5370_v9  ;;  %v8744_v0 = vcombine.low %v5362_v50, %v5370_v9  ;;  %v5451_v57 = vld [vmem:[%s12382_s5 + $0x568] sm:$0xff]  ;;  %v8840_v9 = vcombine.low %v5458_v54, %v5466_v38 }
 0x422   :  { %6819 = vmatpush1.bf16.msra.mxu1 %v8820_v47  ;;  %6860 = vmatpush1.bf16.msra.mxu0 %v8822_v18  ;;  %v5371_v47 = vld [vmem:[%s12382_s5 + $0x2e8] sm:$0xff]  ;;  %v8731_v18 = vcombine.high %v5347_v63, %v5355_v44  ;;  %v8841_v63 = vcombine.high %v5458_v54, %v5466_v38 }
 0x423   :  { %6820 = vmatprep.subr.bf16.mxu1 %v8837_v2  ;;  %6861 = vmatprep.subr.bf16.mxu0 %v8839_v59  ;;  %v8728_v2 = vcombine.low %v5346_v32, %v5354_v15  ;;  %v5378_v59 = vld [vmem:[%s12382_s5 + $0x320] sm:$0xff]  ;;  %v5467_v32 = vld [vmem:[%s12382_s5 + $0x5e8] sm:$0xff] }
 0x424   :  { %v8761_v52 = vcombine.high %v5378_v59, %v5386_v28  ;;  %v8760_v53 = vcombine.low %v5378_v59, %v5386_v28  ;;  %v5482_v15 = vld [vmem:[%s12382_s5 + $0x660] sm:$0xff]  ;;  %v5475_v44 = vld [vmem:[%s12382_s5 + $0x628] sm:$0xff] }
 0x426   :  { %6821 = vmatpush1.bf16.msra.mxu1 %v8836_v60  ;;  %6862 = vmatpush1.bf16.msra.mxu0 %v8838_v33  ;;  %v5387_v60 = vld [vmem:[%s12382_s5 + $0x368] sm:$0xff]  ;;  %v8747_v33 = vcombine.high %v5363_v10, %v5371_v47 }
 0x427   :  { %6822 = vmatprep.subr.bf16.mxu1 %v8853_v36  ;;  %6863 = vmatprep.subr.bf16.mxu0 %v8855_v48  ;;  %v5402_v36 = vld [vmem:[%s12382_s5 + $0x3e0] sm:$0xff]  ;;  %v8746_v48 = vcombine.low %v5363_v10, %v5371_v47 }
 0x428   :  { %v8777_v30 = vcombine.high %v5394_v3, %v5402_v36 }
 0x42a   :  { %6823 = vmatpush1.bf16.msra.mxu1 %v8852_v11  ;;  %6864 = vmatpush1.bf16.msra.mxu0 %v8854_v29  ;;  %v5403_v11 = vld [vmem:[%s12382_s5 + $0x3e8] sm:$0xff]  ;;  %v8763_v29 = vcombine.high %v5379_v13, %v5387_v60 }
 0x42b   :  { %6824 = vmatprep.subr.bf16.mxu1 %v8869_v27  ;;  %6865 = vmatprep.subr.bf16.mxu0 %v8871_v17  ;;  %v5418_v27 = vld [vmem:[%s12382_s5 + $0x460] sm:$0xff]  ;;  %v8762_v17 = vcombine.low %v5379_v13, %v5387_v60  ;;  %v8778_v20 = vcombine.low %v5395_v8, %v5403_v11 }
 0x42c   :  { %v8793_v5 = vcombine.high %v5410_v26, %v5418_v27 }
 0x42e   :  { %6825 = vmatpush1.bf16.msra.mxu1 %v8868_v34  ;;  %6866 = vmatpush1.bf16.msra.mxu0 %v8870_v21  ;;  %v5419_v34 = vld [vmem:[%s12382_s5 + $0x468] sm:$0xff]  ;;  %v8779_v21 = vcombine.high %v5395_v8, %v5403_v11  ;;  %v5300_v8 = vld [vmem:[%s12382_s5 + $0xb0] sm:$0xff] }
 0x42f   :  { %6880 = vmatprep.subr.bf16.mxu1 %v8665_v56  ;;  %6921 = vmatprep.subr.bf16.mxu0 %v8667_v37  ;;  %v8776_v56 = vcombine.low %v5394_v3, %v5402_v36  ;;  %v5426_v37 = vld [vmem:[%s12382_s5 + $0x4a0] sm:$0xff]  ;;  %v8795_v16 = vcombine.high %v5411_v51, %v5419_v34  ;;  %v5308_v11 = vld [vmem:[%s12382_s5 + $0xf0] sm:$0xff] }
 0x430   :  { %v8809_v58 = vcombine.high %v5426_v37, %v5434_v6 }
 0x431   :  { %6831 = vmatmul.mubr.bf16.vlgmr.msra.gmra.mrb[20].mxu1 %v11412_v4  ;;  %6872 = vmatmul.mubr.bf16.vlgmr.msra.gmra.mrb[36].mxu0 %v11412_v4 }
 0x432   :  { %6881 = vmatpush1.bf16.msra.mxu1 %v8664_v61  ;;  %8884 = vmatprep.mubr.msk.bf16.mxu1 %vm6712_vm1, %v11410_v23  ;;  %v5435_v61 = vld [vmem:[%s12382_s5 + $0x4e8] sm:$0xff] }
 0x433   :  { %6922 = vmatpush1.bf16.msra.mxu0 %v8666_v45  ;;  %8885 = vmatprep.mubr.msk.bf16.mxu0 %vm6712_vm1, %v11410_v23  ;;  %v8792_v45 = vcombine.low %v5410_v26, %v5418_v27  ;;  %v8811_v35 = vcombine.high %v5427_v31, %v5435_v61  ;;  %v5309_v26 = vld [vmem:[%s12382_s5 + $0xf8] sm:$0xff] }
 0x434   :  { %6882 = vmatprep.subr.bf16.mxu1 %v8681_v7  ;;  %6923 = vmatprep.subr.bf16.mxu0 %v8683_v19  ;;  %v5450_v7 = vld [vmem:[%s12382_s5 + $0x560] sm:$0xff]  ;;  %v8794_v19 = vcombine.low %v5411_v51, %v5419_v34  ;;  %v5317_v34 = vld [vmem:[%s12382_s5 + $0x138] sm:$0xff] }
 0x435   :  { %v8825_v25 = vcombine.high %v5442_v55, %v5450_v7 }
 0x436   :  { %6883 = vmatpush1.bf16.msra.mxu1 %v8680_v40  ;;  %v5443_v40 = vld [vmem:[%s12382_s5 + $0x528] sm:$0xff] }
 0x437   :  { %6924 = vmatpush1.bf16.msra.mxu0 %v8682_v62  ;;  %6884 = vmatprep.subr.bf16.mxu1 %v8697_v24  ;;  %v8808_v62 = vcombine.low %v5426_v37, %v5434_v6  ;;  %v8810_v24 = vcombine.low %v5427_v31, %v5435_v61  ;;  %v8684_v6 = vcombine.low %v5300_v8, %v5308_v11 }
 0x438   :  { %6925 = vmatprep.subr.bf16.mxu0 %v8699_v49  ;;  %v8827_v49 = vcombine.high %v5443_v40, %v5451_v57 }
 0x43a   :  { %6885 = vmatpush1.bf16.msra.mxu1 %v8696_v12  ;;  %v5459_v12 = vld [vmem:[%s12382_s5 + $0x5a8] sm:$0xff] }
 0x43b   :  { %6926 = vmatpush1.bf16.msra.mxu0 %v8698_v46  ;;  %6886 = vmatprep.subr.bf16.mxu1 %v8713_v39  ;;  %v8824_v46 = vcombine.low %v5442_v55, %v5450_v7  ;;  %v5474_v39 = vld [vmem:[%s12382_s5 + $0x620] sm:$0xff]  ;;  %v8843_v50 = vcombine.high %v5459_v12, %v5467_v32  ;;  %v8842_v10 = vcombine.low %v5459_v12, %v5467_v32  ;;  %v5365_v12 = vld [vmem:[%s12382_s5 + $0x2b8] sm:$0xff] }
 0x43c   :  { %6927 = vmatprep.subr.bf16.mxu0 %v8715_v14  ;;  %v8826_v14 = vcombine.low %v5443_v40, %v5451_v57  ;;  %v8857_v47 = vcombine.high %v5474_v39, %v5482_v15  ;;  %v8856_v28 = vcombine.low %v5474_v39, %v5482_v15  ;;  %v5357_v57 = vld [vmem:[%s12382_s5 + $0x278] sm:$0xff]  ;;  %v5380_v15 = vld [vmem:[%s12382_s5 + $0x330] sm:$0xff] }
 0x43d   :  { %v5373_v32 = vld [vmem:[%s12382_s5 + $0x2f8] sm:$0xff] }
 0x43e   :  { %6887 = vmatpush1.bf16.msra.mxu1 %v8712_v42  ;;  %v5483_v42 = vld [vmem:[%s12382_s5 + $0x668] sm:$0xff] }
 0x43f   :  { %6928 = vmatpush1.bf16.msra.mxu0 %v8714_v22  ;;  %6888 = vmatprep.subr.bf16.mxu1 %v8729_v43  ;;  %v5490_v22 = vld [vmem:[%s12382_s5 + $0x6a0] sm:$0xff]  ;;  %v8859_v59 = vcombine.high %v5475_v44, %v5483_v42  ;;  %v8858_v13 = vcombine.low %v5475_v44, %v5483_v42  ;;  %v5381_v42 = vld [vmem:[%s12382_s5 + $0x338] sm:$0xff] }
 0x440   :  { %6929 = vmatprep.subr.bf16.mxu0 %v8731_v18  ;;  %v5498_v43 = vld [vmem:[%s12382_s5 + $0x6e0] sm:$0xff]  ;;  %v5491_v18 = vld [vmem:[%s12382_s5 + $0x6a8] sm:$0xff] }
 0x441   :  { %v8873_v60 = vcombine.high %v5490_v22, %v5498_v43  ;;  %v8872_v36 = vcombine.low %v5490_v22, %v5498_v43  ;;  %v5396_v43 = vld [vmem:[%s12382_s5 + $0x3b0] sm:$0xff] }
 0x442   :  { %6889 = vmatpush1.bf16.msra.mxu1 %v8728_v2  ;;  %v5499_v2 = vld [vmem:[%s12382_s5 + $0x6e8] sm:$0xff] }
 0x443   :  { %6930 = vmatpush1.bf16.msra.mxu0 %v8730_v1  ;;  %6890 = vmatprep.subr.bf16.mxu1 %v8745_v41  ;;  %v5284_v1 = vld [vmem:[%s12382_s5 + $0x30] sm:$0xff]  ;;  %v8875_v3 = vcombine.high %v5491_v18, %v5499_v2 }
 0x444   :  { %6931 = vmatprep.subr.bf16.mxu0 %v8747_v33  ;;  %v5292_v41 = vld [vmem:[%s12382_s5 + $0x70] sm:$0xff]  ;;  %v5285_v33 = vld [vmem:[%s12382_s5 + $0x38] sm:$0xff] }
 0x445   :  { %v8668_v27 = vcombine.low %v5284_v1, %v5292_v41 }
 0x446   :  { %6891 = vmatpush1.bf16.msra.mxu1 %v8744_v0  ;;  %v5293_v0 = vld [vmem:[%s12382_s5 + $0x78] sm:$0xff] }
 0x447   :  { %6932 = vmatpush1.bf16.msra.mxu0 %v8746_v48  ;;  %6892 = vmatprep.subr.bf16.mxu1 %v8761_v52  ;;  %v8874_v48 = vcombine.low %v5491_v18, %v5499_v2  ;;  %v8669_v52 = vcombine.high %v5284_v1, %v5292_v41  ;;  %v8670_v51 = vcombine.low %v5285_v33, %v5293_v0  ;;  %v5397_v2 = vld [vmem:[%s12382_s5 + $0x3b8] sm:$0xff]  ;;  %v5412_v41 = vld [vmem:[%s12382_s5 + $0x430] sm:$0xff] }
 0x448   :  { %6933 = vmatprep.subr.bf16.mxu0 %v8763_v29  ;;  %v8671_v29 = vcombine.high %v5285_v33, %v5293_v0  ;;  %v5413_v0 = vld [vmem:[%s12382_s5 + $0x438] sm:$0xff] }
 0x44a   :  { %6893 = vmatpush1.bf16.msra.mxu1 %v8760_v53  ;;  %v5301_v53 = vld [vmem:[%s12382_s5 + $0xb8] sm:$0xff] }
 0x44b   :  { %6934 = vmatpush1.bf16.msra.mxu0 %v8762_v17  ;;  %6894 = vmatprep.subr.bf16.mxu1 %v8777_v30  ;;  %v5316_v17 = vld [vmem:[%s12382_s5 + $0x130] sm:$0xff]  ;;  %v8687_v37 = vcombine.high %v5301_v53, %v5309_v26  ;;  %v8686_v31 = vcombine.low %v5301_v53, %v5309_v26  ;;  %v5429_v53 = vld [vmem:[%s12382_s5 + $0x4b8] sm:$0xff] }
 0x44c   :  { %6935 = vmatprep.subr.bf16.mxu0 %v8779_v21  ;;  %v5324_v30 = vld [vmem:[%s12382_s5 + $0x170] sm:$0xff]  ;;  %v5325_v21 = vld [vmem:[%s12382_s5 + $0x178] sm:$0xff] }
 0x44d   :  { %v8701_v61 = vcombine.high %v5316_v17, %v5324_v30  ;;  %v8703_v55 = vcombine.high %v5317_v34, %v5325_v21  ;;  %v8700_v7 = vcombine.low %v5316_v17, %v5324_v30  ;;  %v5437_v26 = vld [vmem:[%s12382_s5 + $0x4f8] sm:$0xff] }
 0x44e   :  { %6895 = vmatpush1.bf16.msra.mxu1 %v8776_v56  ;;  %v8685_v56 = vcombine.high %v5300_v8, %v5308_v11  ;;  %v5436_v8 = vld [vmem:[%s12382_s5 + $0x4f0] sm:$0xff] }
 0x44f   :  { %6936 = vmatpush1.bf16.msra.mxu0 %v8778_v20  ;;  %6896 = vmatprep.subr.bf16.mxu1 %v8793_v5  ;;  %v5332_v20 = vld [vmem:[%s12382_s5 + $0x1b0] sm:$0xff] }
 0x450   :  { %6937 = vmatprep.subr.bf16.mxu0 %v8795_v16  ;;  %v5340_v5 = vld [vmem:[%s12382_s5 + $0x1f0] sm:$0xff]  ;;  %v5333_v16 = vld [vmem:[%s12382_s5 + $0x1b8] sm:$0xff] }
 0x451   :  { %v8717_v40 = vcombine.high %v5332_v20, %v5340_v5 }
 0x452   :  { %6897 = vmatpush1.bf16.msra.mxu1 %v8792_v45  ;;  %v5341_v45 = vld [vmem:[%s12382_s5 + $0x1f8] sm:$0xff] }
 0x453   :  { %6938 = vmatpush1.bf16.msra.mxu0 %v8794_v19  ;;  %6898 = vmatprep.subr.bf16.mxu1 %v8809_v58  ;;  %v5348_v19 = vld [vmem:[%s12382_s5 + $0x230] sm:$0xff]  ;;  %v8718_v54 = vcombine.low %v5333_v16, %v5341_v45 }
 0x454   :  { %6939 = vmatprep.subr.bf16.mxu0 %v8811_v35  ;;  %v5356_v58 = vld [vmem:[%s12382_s5 + $0x270] sm:$0xff]  ;;  %v8702_v35 = vcombine.low %v5317_v34, %v5325_v21  ;;  %v8815_v21 = vcombine.high %v5429_v53, %v5437_v26 }
 0x455   :  { %v8733_v38 = vcombine.high %v5348_v19, %v5356_v58  ;;  %v8732_v39 = vcombine.low %v5348_v19, %v5356_v58  ;;  %v5444_v34 = vld [vmem:[%s12382_s5 + $0x530] sm:$0xff] }
 0x456   :  { %6899 = vmatpush1.bf16.msra.mxu1 %v8808_v62  ;;  %v8719_v62 = vcombine.high %v5333_v16, %v5341_v45  ;;  %v5468_v16 = vld [vmem:[%s12382_s5 + $0x5f0] sm:$0xff] }
 0x457   :  { %6940 = vmatpush1.bf16.msra.mxu0 %v8810_v24  ;;  %6900 = vmatprep.subr.bf16.mxu1 %v8825_v25  ;;  %v8716_v24 = vcombine.low %v5332_v20, %v5340_v5  ;;  %v5364_v25 = vld [vmem:[%s12382_s5 + $0x2b0] sm:$0xff]  ;;  %v8814_v5 = vcombine.low %v5429_v53, %v5437_v26  ;;  %v9371_v53 = vld [vmem:[%s12383_s7 + $0xa8] sm:$0xff]  }
 0x458   :  { %6941 = vmatprep.subr.bf16.mxu0 %v8827_v49  ;;  %v5372_v49 = vld [vmem:[%s12382_s5 + $0x2f0] sm:$0xff] }
 0x459   :  { %v8749_v44 = vcombine.high %v5364_v25, %v5372_v49  ;;  %v8748_v22 = vcombine.low %v5364_v25, %v5372_v49  ;;  %v5476_v58 = vld [vmem:[%s12382_s5 + $0x630] sm:$0xff] }
 0x45a   :  { %6901 = vmatpush1.bf16.msra.mxu1 %v8824_v46  ;;  %v9372_v26 = vld [vmem:[%s12383_s7 + $0x70] sm:$0xff]  }
 0x45b   :  { %6942 = vmatpush1.bf16.msra.mxu0 %v8826_v14  ;;  %6902 = vmatprep.subr.bf16.mxu1 %v8841_v63  ;;  %v5388_v14 = vld [vmem:[%s12382_s5 + $0x370] sm:$0xff] }
 0x45c   :  { %6943 = vmatprep.subr.bf16.mxu0 %v8843_v50  ;;  %v5389_v50 = vld [vmem:[%s12382_s5 + $0x378] sm:$0xff]  ;;  %v8765_v18 = vcombine.high %v5380_v15, %v5388_v14  ;;  %v8764_v1 = vcombine.low %v5380_v15, %v5388_v14 }
 0x45e   :  { %6903 = vmatpush1.bf16.msra.mxu1 %v8840_v9  ;;  %v8751_v9 = vcombine.high %v5365_v12, %v5373_v32 }
 0x45f   :  { %6944 = vmatpush1.bf16.msra.mxu0 %v8842_v10  ;;  %6904 = vmatprep.subr.bf16.mxu1 %v8857_v47  ;;  %v5404_v10 = vld [vmem:[%s12382_s5 + $0x3f0] sm:$0xff]  ;;  %v8750_v47 = vcombine.low %v5365_v12, %v5373_v32 }
 0x460   :  { %6945 = vmatprep.subr.bf16.mxu0 %v8859_v59  ;;  %v5405_v59 = vld [vmem:[%s12382_s5 + $0x3f8] sm:$0xff]  ;;  %v8781_v33 = vcombine.high %v5396_v43, %v5404_v10  ;;  %v5492_v12 = vld [vmem:[%s12382_s5 + $0x6b0] sm:$0xff] }
 0x461   :  { %v8782_v11 = vcombine.low %v5397_v2, %v5405_v59  ;;  %v5500_v32 = vld [vmem:[%s12382_s5 + $0x6f0] sm:$0xff] }
 0x462   :  { %6905 = vmatpush1.bf16.msra.mxu1 %v8856_v28  ;;  %v8767_v28 = vcombine.high %v5381_v42, %v5389_v50 }
 0x463   :  { %6946 = vmatpush1.bf16.msra.mxu0 %v8858_v13  ;;  %6906 = vmatprep.subr.bf16.mxu1 %v8873_v60  ;;  %v5420_v13 = vld [vmem:[%s12382_s5 + $0x470] sm:$0xff]  ;;  %v8766_v60 = vcombine.low %v5381_v42, %v5389_v50  ;;  %v8876_v42 = vcombine.low %v5492_v12, %v5500_v32 }
 0x464   :  { %6947 = vmatprep.subr.bf16.mxu0 %v8875_v3  ;;  %v5421_v3 = vld [vmem:[%s12382_s5 + $0x478] sm:$0xff]  ;;  %v8796_v17 = vcombine.low %v5412_v41, %v5420_v13 }
 0x465   :  { %v8798_v30 = vcombine.low %v5413_v0, %v5421_v3 }
 0x466   :  { %6907 = vmatpush1.bf16.msra.mxu1 %v8872_v36  ;;  %v8783_v36 = vcombine.high %v5397_v2, %v5405_v59  ;;  %v9354_v2 = vld [vmem:[%s12383_s7 + $0x8] sm:$0xff]  }
 0x467   :  { %6948 = vmatpush1.bf16.msra.mxu0 %v8874_v48  ;;  %6962 = vmatprep.subr.bf16.mxu1 %v8669_v52  ;;  %v8780_v48 = vcombine.low %v5396_v43, %v5404_v10  ;;  %v5428_v52 = vld [vmem:[%s12382_s5 + $0x4b0] sm:$0xff]  ;;  %v9350_v43 = vld [vmem:[%s12383_s7] sm:$0xff]   ;;  %v9355_v59 = vld [vmem:[%s12383_s7 + $0x88] sm:$0xff]  }
 0x468   :  { %7003 = vmatprep.subr.bf16.mxu0 %v8671_v29  ;;  %v8797_v29 = vcombine.high %v5412_v41, %v5420_v13  ;;  %v8812_v20 = vcombine.low %v5428_v52, %v5436_v8  ;;  %v9351_v10 = vld [vmem:[%s12383_s7 + $0x80] sm:$0xff]   ;;  %v9359_v41 = vld [vmem:[%s12383_s7 + $0x90] sm:$0xff]   ;;  %v9360_v13 = vld [vmem:[%s12383_s7 + $0x58] sm:$0xff]  }
 0x469   :  { %6913 = vmatmul.mubr.bf16.vlgmr.msra.gmra.mrb[24].mxu1 %v11412_v4 }
 0x46a   :  { %6954 = vmatmul.mubr.bf16.vlgmr.msra.gmra.mrb[40].mxu0 %v11412_v4  ;;  %6963 = vmatpush1.bf16.msra.mxu1 %v8668_v27  ;;  %v8799_v27 = vcombine.high %v5413_v0, %v5421_v3  ;;  %v9363_v0 = vld [vmem:[%s12383_s7 + $0x98] sm:$0xff]   ;;  %v9364_v3 = vld [vmem:[%s12383_s7 + $0x60] sm:$0xff]  }
 0x46b   :  { %8886 = vmatprep.mubr.msk.bf16.mxu1 %vm6712_vm1, %v11410_v23  ;;  %7004 = vmatpush1.bf16.msra.mxu0 %v8670_v51  ;;  %v8813_v51 = vcombine.high %v5428_v52, %v5436_v8  ;;  %v9367_v52 = vld [vmem:[%s12383_s7 + $0xa0] sm:$0xff]   ;;  %v9368_v8 = vld [vmem:[%s12383_s7 + $0x68] sm:$0xff]  }
 0x46c   :  { %8887 = vmatprep.mubr.msk.bf16.mxu0 %vm6712_vm1, %v11410_v23  ;;  %6964 = vmatprep.subr.bf16.mxu1 %v8685_v56  ;;  %v5349_v23 = vld [vmem:[%s12382_s5 + $0x238] sm:$0xff]  ;;  %v5452_v56 = vld [vmem:[%s12382_s5 + $0x570] sm:$0xff] }
 0x46d   :  { %7005 = vmatprep.subr.bf16.mxu0 %v8687_v37  ;;  %v8735_v46 = vcombine.high %v5349_v23, %v5357_v57  ;;  %v8734_v63 = vcombine.low %v5349_v23, %v5357_v57  ;;  %v5445_v37 = vld [vmem:[%s12382_s5 + $0x538] sm:$0xff]  ;;  %v8828_v19 = vcombine.low %v5444_v34, %v5452_v56  ;;  %v5484_v23 = vld [vmem:[%s12382_s5 + $0x670] sm:$0xff] }
 0x46e   :  { %6965 = vmatpush1.bf16.msra.mxu1 %v8684_v6  ;;  %v5453_v6 = vld [vmem:[%s12382_s5 + $0x578] sm:$0xff]  ;;  %v8860_v15 = vcombine.low %v5476_v58, %v5484_v23 }
 0x46f   :  { %7006 = vmatpush1.bf16.msra.mxu0 %v8686_v31  ;;  %6966 = vmatprep.subr.bf16.mxu1 %v8701_v61  ;;  %v8829_v31 = vcombine.high %v5444_v34, %v5452_v56  ;;  %v5460_v61 = vld [vmem:[%s12382_s5 + $0x5b0] sm:$0xff]  ;;  %v8831_v45 = vcombine.high %v5445_v37, %v5453_v6  ;;  %v5477_v57 = vld [vmem:[%s12382_s5 + $0x638] sm:$0xff] }
 0x470   :  { %7007 = vmatprep.subr.bf16.mxu0 %v8703_v55  ;;  %v5461_v55 = vld [vmem:[%s12382_s5 + $0x5b8] sm:$0xff]  ;;  %v8844_v25 = vcombine.low %v5460_v61, %v5468_v16 }
 0x471   :  { %v9377_v34 = vld [vmem:[%s12383_s7 + $0xf8] sm:$0xff]  }
 0x472   :  { %6967 = vmatpush1.bf16.msra.mxu1 %v8700_v7  ;;  %v5469_v7 = vld [vmem:[%s12382_s5 + $0x5f8] sm:$0xff] }
 0x473   :  { %7008 = vmatpush1.bf16.msra.mxu0 %v8702_v35  ;;  %6968 = vmatprep.subr.bf16.mxu1 %v8717_v40  ;;  %v8830_v35 = vcombine.low %v5445_v37, %v5453_v6  ;;  %v8845_v40 = vcombine.high %v5460_v61, %v5468_v16  ;;  %v8846_v49 = vcombine.low %v5461_v55, %v5469_v7  ;;  %v9379_v56 = vld [vmem:[%s12383_s7 + $0xb8] sm:$0xff]   ;;  %v9380_v37 = vld [vmem:[%s12383_s7 + $0x140] sm:$0xff]  }
 0x474   :  { %7009 = vmatprep.subr.bf16.mxu0 %v8719_v62  ;;  %v8847_v62 = vcombine.high %v5461_v55, %v5469_v7  ;;  %v9381_v6 = vld [vmem:[%s12383_s7 + $0x1c0] sm:$0xff]  }
 0x475   :  { %v12025_v61 = vld [vmem:[%s12384_s6] sm:$0xff] }
 0x476   :  { %6969 = vmatpush1.bf16.msra.mxu1 %v8716_v24  ;;  %v5485_v24 = vld [vmem:[%s12382_s5 + $0x678] sm:$0xff] }
 0x477   :  { %7010 = vmatpush1.bf16.msra.mxu0 %v8718_v54  ;;  %6970 = vmatprep.subr.bf16.mxu1 %v8733_v38  ;;  %v8861_v54 = vcombine.high %v5476_v58, %v5484_v23  ;;  %v8863_v38 = vcombine.high %v5477_v57, %v5485_v24  ;;  %v8862_v14 = vcombine.low %v5477_v57, %v5485_v24 }
 0x478   :  { %7011 = vmatprep.subr.bf16.mxu0 %v8735_v46  ;;  %v5493_v46 = vld [vmem:[%s12382_s5 + $0x6b8] sm:$0xff] }
 0x47a   :  { %6971 = vmatpush1.bf16.msra.mxu1 %v8732_v39  ;;  %v5501_v39 = vld [vmem:[%s12382_s5 + $0x6f8] sm:$0xff] }
 0x47b   :  { %7012 = vmatpush1.bf16.msra.mxu0 %v8734_v63  ;;  %6972 = vmatprep.subr.bf16.mxu1 %v8749_v44  ;;  %v8877_v63 = vcombine.high %v5492_v12, %v5500_v32  ;;  %v8879_v44 = vcombine.high %v5493_v46, %v5501_v39  ;;  %v8878_v50 = vcombine.low %v5493_v46, %v5501_v39 }
 0x47c   :  { %7013 = vmatprep.subr.bf16.mxu0 %v8751_v9  ;;  %v9348_v9 = vld [vmem:[%s12383_s7 + $0x40] sm:$0xff]  }
 0x47e   :  { %6973 = vmatpush1.bf16.msra.mxu1 %v8748_v22  ;;  %v9349_v22 = vld [vmem:[%s12383_s7 + $0xc0] sm:$0xff]  }
 0x47f   :  { %7014 = vmatpush1.bf16.msra.mxu0 %v8750_v47  ;;  %6974 = vmatprep.subr.bf16.mxu1 %v8765_v18  ;;  %v9352_v47 = vld [vmem:[%s12383_s7 + $0x48] sm:$0xff]  }
 0x480   :  { %7015 = vmatprep.subr.bf16.mxu0 %v8767_v28  ;;  %v9353_v18 = vld [vmem:[%s12383_s7 + $0xc8] sm:$0xff]   ;;  %v9356_v28 = vld [vmem:[%s12383_s7 + $0x50] sm:$0xff]  }
 0x482   :  { %6975 = vmatpush1.bf16.msra.mxu1 %v8764_v1  ;;  %v9358_v1 = vld [vmem:[%s12383_s7 + $0x10] sm:$0xff]  }
 0x483   :  { %7016 = vmatpush1.bf16.msra.mxu0 %v8766_v60  ;;  %6976 = vmatprep.subr.bf16.mxu1 %v8781_v33  ;;  %v9361_v60 = vld [vmem:[%s12383_s7 + $0xd8] sm:$0xff]  }
 0x484   :  { %7017 = vmatprep.subr.bf16.mxu0 %v8783_v36  ;;  %v9362_v33 = vld [vmem:[%s12383_s7 + $0x18] sm:$0xff]   ;;  %v9365_v36 = vld [vmem:[%s12383_s7 + $0xe0] sm:$0xff]  }
 0x486   :  { %6977 = vmatpush1.bf16.msra.mxu1 %v8780_v48  ;;  %v9366_v48 = vld [vmem:[%s12383_s7 + $0x20] sm:$0xff]  }
 0x487   :  { %7018 = vmatpush1.bf16.msra.mxu0 %v8782_v11  ;;  %6978 = vmatprep.subr.bf16.mxu1 %v8797_v29  ;;  %v9369_v11 = vld [vmem:[%s12383_s7 + $0xe8] sm:$0xff]  }
 0x488   :  { %7019 = vmatprep.subr.bf16.mxu0 %v8799_v27  ;;  %v9370_v29 = vld [vmem:[%s12383_s7 + $0x28] sm:$0xff]   ;;  %v9373_v27 = vld [vmem:[%s12383_s7 + $0xf0] sm:$0xff]  }
 0x48a   :  { %6979 = vmatpush1.bf16.msra.mxu1 %v8796_v17  ;;  %v9374_v17 = vld [vmem:[%s12383_s7 + $0x30] sm:$0xff]  }
 0x48b   :  { %7020 = vmatpush1.bf16.msra.mxu0 %v8798_v30  ;;  %6980 = vmatprep.subr.bf16.mxu1 %v8813_v51  ;;  %v9375_v30 = vld [vmem:[%s12383_s7 + $0xb0] sm:$0xff]   ;;  %v9376_v51 = vld [vmem:[%s12383_s7 + $0x78] sm:$0xff]  }
 0x48c   :  { %7021 = vmatprep.subr.bf16.mxu0 %v8815_v21  ;;  %v9378_v21 = vld [vmem:[%s12383_s7 + $0x38] sm:$0xff]  }
 0x48e   :  { %6981 = vmatpush1.bf16.msra.mxu1 %v8812_v20  ;;  %v12660_v20 = vld [vmem:[#allocation4_spill] sm:$0xff] }
 0x48f   :  { %7022 = vmatpush1.bf16.msra.mxu0 %v8814_v5  ;;  %6982 = vmatprep.subr.bf16.mxu1 %v8829_v31  ;;  %v5508_v5 = vsub.s32 0, %v12660_v20  ;;  %v5516_v31 = vsub.s32 2, %v12660_v20  ;;  %v5512_v16 = vsub.s32 1, %v12660_v20 }
 0x490   :  { %7023 = vmatprep.subr.bf16.mxu0 %v8831_v45  ;;  %v5520_v45 = vsub.s32 3, %v12660_v20 }
 0x491   :  { %v5509_v55 = vrot.slane %v12025_v61, %v5508_v5  ;;  %v5517_v7 = vrot.slane %v12025_v61, %v5516_v31 }
 0x492   :  { %6983 = vmatpush1.bf16.msra.mxu1 %v8828_v19  ;;  %v5513_v19 = vrot.slane %v12025_v61, %v5512_v16  ;;  %v5521_v58 = vrot.slane %v12025_v61, %v5520_v45 }
 0x493   :  { %7024 = vmatpush1.bf16.msra.mxu0 %v8830_v35  ;;  %6984 = vmatprep.subr.bf16.mxu1 %v8845_v40 }
 0x494   :  { %7025 = vmatprep.subr.bf16.mxu0 %v8847_v62 }
 0x496   :  { %6985 = vmatpush1.bf16.msra.mxu1 %v8844_v25 }
 0x497   :  { %7026 = vmatpush1.bf16.msra.mxu0 %v8846_v49  ;;  %6986 = vmatprep.subr.bf16.mxu1 %v8861_v54 }
 0x498   :  { %7027 = vmatprep.subr.bf16.mxu0 %v8863_v38 }
 0x49a   :  { %6987 = vmatpush1.bf16.msra.mxu1 %v8860_v15 }
 0x49b   :  { %7028 = vmatpush1.bf16.msra.mxu0 %v8862_v14  ;;  %6988 = vmatprep.subr.bf16.mxu1 %v8877_v63 }
 0x49c   :  { %7029 = vmatprep.subr.bf16.mxu0 %v8879_v44 }
 0x49e   :  { %6989 = vmatpush1.bf16.msra.mxu1 %v8876_v42  ;;  %v9382_v42 = vld [vmem:[%s12383_s7 + $0x100] sm:$0xff]  }
 0x49f   :  { %7030 = vmatpush1.bf16.msra.mxu0 %v8878_v50  ;;  %9056 = vmatprep.subr.bf16.mxu1 %v9348_v9  ;;  %v9383_v50 = vld [vmem:[%s12383_s7 + $0x180] sm:$0xff]  }
 0x4a0   :  { %9078 = vmatprep.subr.bf16.mxu0 %v9349_v22 }
 0x4a1   :  { %6995 = vmatmul.mubr.bf16.vlgmr.msra.gmra.mrb[28].mxu1 %v11412_v4 }
 0x4a2   :  { %7036 = vmatmul.mubr.bf16.vlgmr.msra.gmra.mrb[44].mxu0 %v11412_v4  ;;  %9057 = vmatpush3.bf16.msra.mxu1 %v9350_v43  ;;  %v9357_v4 = vld [vmem:[%s12383_s7 + $0xd0] sm:$0xff]   ;;  %v9384_v43 = vld [vmem:[%s12383_s7 + $0x148] sm:$0xff]  }
 0x4a3   :  { %9079 = vmatpush3.bf16.msra.mxu0 %v9351_v10  ;;  %9058 = vmatprep.subr.bf16.mxu1 %v9352_v47  ;;  %v9385_v10 = vld [vmem:[%s12383_s7 + $0x1c8] sm:$0xff]  }
 0x4a4   :  { %9080 = vmatprep.subr.bf16.mxu0 %v9353_v18  ;;  %v9386_v47 = vld [vmem:[%s12383_s7 + $0x108] sm:$0xff]  }
 0x4a5   :  { %v9387_v18 = vld [vmem:[%s12383_s7 + $0x188] sm:$0xff]  }
 0x4a6   :  { %9059 = vmatpush3.bf16.msra.mxu1 %v9354_v2  ;;  %v9388_v2 = vld [vmem:[%s12383_s7 + $0x150] sm:$0xff]  }
 0x4a7   :  { %9081 = vmatpush3.bf16.msra.mxu0 %v9355_v59  ;;  %9060 = vmatprep.subr.bf16.mxu1 %v9356_v28  ;;  %v9389_v59 = vld [vmem:[%s12383_s7 + $0x1d0] sm:$0xff]  }
 0x4a8   :  { %9082 = vmatprep.subr.bf16.mxu0 %v9357_v4  ;;  %v9390_v28 = vld [vmem:[%s12383_s7 + $0x110] sm:$0xff]  }
 0x4a9   :  { %v9391_v4 = vld [vmem:[%s12383_s7 + $0x190] sm:$0xff]  }
 0x4aa   :  { %9061 = vmatpush3.bf16.msra.mxu1 %v9358_v1  ;;  %v9392_v1 = vld [vmem:[%s12383_s7 + $0x158] sm:$0xff]  }
 0x4ab   :  { %9083 = vmatpush3.bf16.msra.mxu0 %v9359_v41  ;;  %9062 = vmatprep.subr.bf16.mxu1 %v9360_v13  ;;  %v9393_v41 = vld [vmem:[%s12383_s7 + $0x1d8] sm:$0xff]  }
 0x4ac   :  { %9084 = vmatprep.subr.bf16.mxu0 %v9361_v60  ;;  %v9394_v13 = vld [vmem:[%s12383_s7 + $0x118] sm:$0xff]  }
 0x4ad   :  { %v9395_v60 = vld [vmem:[%s12383_s7 + $0x198] sm:$0xff]  }
 0x4ae   :  { %9063 = vmatpush3.bf16.msra.mxu1 %v9362_v33  ;;  %v9396_v33 = vld [vmem:[%s12383_s7 + $0x160] sm:$0xff]  }
 0x4af   :  { %9085 = vmatpush3.bf16.msra.mxu0 %v9363_v0  ;;  %9064 = vmatprep.subr.bf16.mxu1 %v9364_v3  ;;  %v9397_v0 = vld [vmem:[%s12383_s7 + $0x1e0] sm:$0xff]  }
 0x4b0   :  { %9086 = vmatprep.subr.bf16.mxu0 %v9365_v36  ;;  %v9398_v3 = vld [vmem:[%s12383_s7 + $0x120] sm:$0xff]  }
 0x4b1   :  { %v9399_v36 = vld [vmem:[%s12383_s7 + $0x1a0] sm:$0xff]  }
 0x4b2   :  { %9065 = vmatpush3.bf16.msra.mxu1 %v9366_v48  ;;  %v9400_v48 = vld [vmem:[%s12383_s7 + $0x168] sm:$0xff]  }
 0x4b3   :  { %9087 = vmatpush3.bf16.msra.mxu0 %v9367_v52  ;;  %9066 = vmatprep.subr.bf16.mxu1 %v9368_v8  ;;  %v9401_v52 = vld [vmem:[%s12383_s7 + $0x1e8] sm:$0xff]  }
 0x4b4   :  { %9088 = vmatprep.subr.bf16.mxu0 %v9369_v11  ;;  %v9402_v8 = vld [vmem:[%s12383_s7 + $0x128] sm:$0xff]  }
 0x4b5   :  { %v9403_v11 = vld [vmem:[%s12383_s7 + $0x1a8] sm:$0xff]  }
 0x4b6   :  { %9067 = vmatpush3.bf16.msra.mxu1 %v9370_v29  ;;  %v9404_v29 = vld [vmem:[%s12383_s7 + $0x170] sm:$0xff]  }
 0x4b7   :  { %9089 = vmatpush3.bf16.msra.mxu0 %v9371_v53  ;;  %9068 = vmatprep.subr.bf16.mxu1 %v9372_v26  ;;  %v9405_v53 = vld [vmem:[%s12383_s7 + $0x1f0] sm:$0xff]  }
 0x4b8   :  { %9090 = vmatprep.subr.bf16.mxu0 %v9373_v27  ;;  %v9406_v26 = vld [vmem:[%s12383_s7 + $0x130] sm:$0xff]  }
 0x4b9   :  { %v9407_v27 = vld [vmem:[%s12383_s7 + $0x1b0] sm:$0xff]  }
 0x4ba   :  { %9069 = vmatpush3.bf16.msra.mxu1 %v9374_v17  ;;  %v9408_v17 = vld [vmem:[%s12383_s7 + $0x178] sm:$0xff]  }
 0x4bb   :  { %9091 = vmatpush3.bf16.msra.mxu0 %v9375_v30  ;;  %9070 = vmatprep.subr.bf16.mxu1 %v9376_v51  ;;  %v9409_v30 = vld [vmem:[%s12383_s7 + $0x1f8] sm:$0xff]  }
 0x4bc   :  { %9092 = vmatprep.subr.bf16.mxu0 %v9377_v34  ;;  %v9410_v51 = vld [vmem:[%s12383_s7 + $0x138] sm:$0xff]  }
 0x4bd   :  { %v9411_v34 = vld [vmem:[%s12383_s7 + $0x1b8] sm:$0xff]  }
 0x4be   :  { %9071 = vmatpush3.bf16.msra.mxu1 %v9378_v21  ;;  %v9412_v21 = vld [vmem:[%s12383_s7 + $0x240] sm:$0xff]  }
 0x4bf   :  { %9093 = vmatpush3.bf16.msra.mxu0 %v9379_v56  ;;  %9100 = vmatprep.subr.bf16.mxu1 %v9380_v37  ;;  %v9413_v56 = vld [vmem:[%s12383_s7 + $0x2c0] sm:$0xff]   ;;  %v5524_v37 = vsub.s32 4, %v12660_v20 }
 0x4c0   :  { %9122 = vmatprep.subr.bf16.mxu0 %v9381_v6  ;;  %v5532_v6 = vsub.s32 6, %v12660_v20 }
 0x4cc   :  { %v6750_v35 = vpop.f32.mrb[16].mxu1  ;;  %v6791_v40 = vpop.f32.mrb[32].mxu0 }
 0x4cd   :  { %v6751_v23 = vadd.f32 %v6750_v35, %v5509_v55  ;;  %v6792_v57 = vadd.f32 %v6791_v40, %v5517_v7  ;;  %v6752_v62 = vpop.f32.mrb[17].mxu1  ;;  %v6793_v24 = vpop.f32.mrb[33].mxu0  ;;  %v5528_v55 = vsub.s32 5, %v12660_v20  ;;  %v5536_v7 = vsub.s32 7, %v12660_v20 }
 0x4ce   :  { %v6753_v25 = vadd.f32 %v6752_v62, %v5513_v19  ;;  %v6794_v49 = vadd.f32 %v6793_v24, %v5521_v58  ;;  %v6754_v54 = vpop.f32.mrb[18].mxu1  ;;  %v6795_v38 = vpop.f32.mrb[34].mxu0  ;;  %v5525_v19 = vrot.slane %v12025_v61, %v5524_v37  ;;  %v5533_v58 = vrot.slane %v12025_v61, %v5532_v6 }
 0x4cf   :  { %v7044_v12 = vmax.f32 %v6751_v23, 0.0  ;;  %v7046_v32 = vmax.f32 %v6792_v57, 0.0  ;;  %v6755_v46 = vpop.f32.mrb[19].mxu1  ;;  %v6796_v39 = vpop.f32.mrb[35].mxu0  ;;  %v5529_v35 = vrot.slane %v12025_v61, %v5528_v55  ;;  %v5537_v40 = vrot.slane %v12025_v61, %v5536_v7  ;;  %v9414_v61 = vld [vmem:[%s12383_s7 + $0x200] sm:$0xff]  }
 0x4d0   :  { %v7045_v15 = vmax.f32 %v6753_v25, 0.0  ;;  %v7047_v14 = vmax.f32 %v6794_v49, 0.0 }
 0x4d1   :  { %v7060_v9 = vpack.c.bf16 %v7044_v12, %v7044_v12  ;;  %v7062_v22 = vpack.c.bf16 %v7046_v32, %v7046_v32 }
 0x4d2   :  { %v7061_v63 = vpack.c.bf16 %v7045_v15, %v7045_v15  ;;  %v7063_v44 = vpack.c.bf16 %v7047_v14, %v7047_v14 }
 0x4d4   :  { %8139 = vmatprep.mubr.bf16.mxu1 %v7061_v63  ;;  %8179 = vmatprep.mubr.bf16.mxu0 %v7063_v44 }
 0x4d5   :  { %8140 = vmatmul.mubr.bf16.vlgmr.msra.gmra.mrb[32].mxu1 %v7060_v9  ;;  %8180 = vmatmul.mubr.bf16.vlgmr.msra.gmra.mrb[48].mxu0 %v7062_v22  ;;  %v9415_v9 = vld [vmem:[%s12383_s7 + $0x280] sm:$0xff]  }
 0x4d6   :  { %9101 = vmatpush3.bf16.msra.mxu1 %v9382_v42  ;;  %9123 = vmatpush3.bf16.msra.mxu0 %v9383_v50 }
 0x4d7   :  { %9102 = vmatprep.subr.bf16.mxu1 %v9384_v43  ;;  %9124 = vmatprep.subr.bf16.mxu0 %v9385_v10  ;;  %v9416_v10 = vld [vmem:[%s12383_s7 + $0x248] sm:$0xff]  }
 0x4da   :  { %9103 = vmatpush3.bf16.msra.mxu1 %v9386_v47  ;;  %9125 = vmatpush3.bf16.msra.mxu0 %v9387_v18  ;;  %v9417_v47 = vld [vmem:[%s12383_s7 + $0x2c8] sm:$0xff]  }
 0x4db   :  { %9104 = vmatprep.subr.bf16.mxu1 %v9388_v2  ;;  %9126 = vmatprep.subr.bf16.mxu0 %v9389_v59  ;;  %v9418_v18 = vld [vmem:[%s12383_s7 + $0x208] sm:$0xff]   ;;  %v9420_v59 = vld [vmem:[%s12383_s7 + $0x250] sm:$0xff]  }
 0x4dc   :  { %v9419_v2 = vld [vmem:[%s12383_s7 + $0x288] sm:$0xff]  }
 0x4de   :  { %9105 = vmatpush3.bf16.msra.mxu1 %v9390_v28  ;;  %9127 = vmatpush3.bf16.msra.mxu0 %v9391_v4  ;;  %v9421_v28 = vld [vmem:[%s12383_s7 + $0x2d0] sm:$0xff]  }
 0x4df   :  { %9106 = vmatprep.subr.bf16.mxu1 %v9392_v1  ;;  %9128 = vmatprep.subr.bf16.mxu0 %v9393_v41  ;;  %v9422_v4 = vld [vmem:[%s12383_s7 + $0x210] sm:$0xff]   ;;  %v9424_v41 = vld [vmem:[%s12383_s7 + $0x258] sm:$0xff]  }
 0x4e0   :  { %v9423_v1 = vld [vmem:[%s12383_s7 + $0x290] sm:$0xff]  }
 0x4e2   :  { %9107 = vmatpush3.bf16.msra.mxu1 %v9394_v13  ;;  %9129 = vmatpush3.bf16.msra.mxu0 %v9395_v60  ;;  %v9425_v13 = vld [vmem:[%s12383_s7 + $0x2d8] sm:$0xff]  }
 0x4e3   :  { %9108 = vmatprep.subr.bf16.mxu1 %v9396_v33  ;;  %9130 = vmatprep.subr.bf16.mxu0 %v9397_v0  ;;  %v9426_v60 = vld [vmem:[%s12383_s7 + $0x218] sm:$0xff]   ;;  %v9428_v0 = vld [vmem:[%s12383_s7 + $0x260] sm:$0xff]  }
 0x4e4   :  { %v9427_v33 = vld [vmem:[%s12383_s7 + $0x298] sm:$0xff]  }
 0x4e6   :  { %9109 = vmatpush3.bf16.msra.mxu1 %v9398_v3  ;;  %9131 = vmatpush3.bf16.msra.mxu0 %v9399_v36  ;;  %v9429_v3 = vld [vmem:[%s12383_s7 + $0x2e0] sm:$0xff]  }
 0x4e7   :  { %9110 = vmatprep.subr.bf16.mxu1 %v9400_v48  ;;  %9132 = vmatprep.subr.bf16.mxu0 %v9401_v52  ;;  %v9430_v36 = vld [vmem:[%s12383_s7 + $0x220] sm:$0xff]   ;;  %v9432_v52 = vld [vmem:[%s12383_s7 + $0x268] sm:$0xff]  }
 0x4e8   :  { %v9431_v48 = vld [vmem:[%s12383_s7 + $0x2a0] sm:$0xff]  }
 0x4ea   :  { %9111 = vmatpush3.bf16.msra.mxu1 %v9402_v8  ;;  %9133 = vmatpush3.bf16.msra.mxu0 %v9403_v11  ;;  %v9433_v8 = vld [vmem:[%s12383_s7 + $0x2e8] sm:$0xff]  }
 0x4eb   :  { %9112 = vmatprep.subr.bf16.mxu1 %v9404_v29  ;;  %9134 = vmatprep.subr.bf16.mxu0 %v9405_v53  ;;  %v9434_v11 = vld [vmem:[%s12383_s7 + $0x228] sm:$0xff]   ;;  %v9436_v53 = vld [vmem:[%s12383_s7 + $0x270] sm:$0xff]  }
 0x4ec   :  { %v9435_v29 = vld [vmem:[%s12383_s7 + $0x2a8] sm:$0xff]  }
 0x4ee   :  { %9113 = vmatpush3.bf16.msra.mxu1 %v9406_v26  ;;  %9135 = vmatpush3.bf16.msra.mxu0 %v9407_v27  ;;  %v9437_v26 = vld [vmem:[%s12383_s7 + $0x2f0] sm:$0xff]  }
 0x4ef   :  { %9114 = vmatprep.subr.bf16.mxu1 %v9408_v17  ;;  %9136 = vmatprep.subr.bf16.mxu0 %v9409_v30  ;;  %v9438_v27 = vld [vmem:[%s12383_s7 + $0x230] sm:$0xff]   ;;  %v9440_v30 = vld [vmem:[%s12383_s7 + $0x278] sm:$0xff]  }
 0x4f0   :  { %v9439_v17 = vld [vmem:[%s12383_s7 + $0x2b0] sm:$0xff]  }
 0x4f2   :  { %9115 = vmatpush3.bf16.msra.mxu1 %v9410_v51  ;;  %9137 = vmatpush3.bf16.msra.mxu0 %v9411_v34  ;;  %v9441_v51 = vld [vmem:[%s12383_s7 + $0x2f8] sm:$0xff]  }
 0x4f3   :  { %9144 = vmatprep.subr.bf16.mxu1 %v9412_v21  ;;  %9166 = vmatprep.subr.bf16.mxu0 %v9413_v56  ;;  %v9442_v34 = vld [vmem:[%s12383_s7 + $0x238] sm:$0xff]   ;;  %v9444_v56 = vld [vmem:[%s12383_s7 + $0x340] sm:$0xff]  }
 0x4f4   :  { %v9443_v21 = vld [vmem:[%s12383_s7 + $0x2b8] sm:$0xff]  }
 0x504   :  { %v6832_v23 = vpop.f32.mrb[20].mxu1  ;;  %v6873_v57 = vpop.f32.mrb[36].mxu0 }
 0x505   :  { %v6833_v62 = vadd.f32 %v6832_v23, %v5525_v19  ;;  %v6874_v24 = vadd.f32 %v6873_v57, %v5533_v58  ;;  %v6834_v25 = vpop.f32.mrb[21].mxu1  ;;  %v6875_v49 = vpop.f32.mrb[37].mxu0  ;;  %v9445_v19 = vld [vmem:[%s12383_s7 + $0x3c0] sm:$0xff]   ;;  %v12252_v58 = vld [vmem:[%s12384_s6 + $0x8] sm:$0xff] }
 0x506   :  { %v6835_v54 = vadd.f32 %v6834_v25, %v5529_v35  ;;  %v6876_v38 = vadd.f32 %v6875_v49, %v5537_v40  ;;  %v6836_v12 = vpop.f32.mrb[22].mxu1  ;;  %v6877_v32 = vpop.f32.mrb[38].mxu0  ;;  %v5541_v35 = vrot.slane %v12252_v58, %v5508_v5  ;;  %v5549_v40 = vrot.slane %v12252_v58, %v5516_v31 }
 0x507   :  { %v7048_v46 = vmax.f32 %v6833_v62, 0.0  ;;  %v7050_v39 = vmax.f32 %v6874_v24, 0.0  ;;  %v6837_v15 = vpop.f32.mrb[23].mxu1  ;;  %v6878_v14 = vpop.f32.mrb[39].mxu0  ;;  %v5545_v23 = vrot.slane %v12252_v58, %v5512_v16  ;;  %v5553_v57 = vrot.slane %v12252_v58, %v5520_v45  ;;  %v9446_v45 = vld [vmem:[%s12383_s7 + $0x300] sm:$0xff]  }
 0x508   :  { %v7049_v63 = vmax.f32 %v6835_v54, 0.0  ;;  %v7051_v44 = vmax.f32 %v6876_v38, 0.0 }
 0x509   :  { %v7064_v22 = vpack.c.bf16 %v7048_v46, %v7048_v46  ;;  %v7066_v43 = vpack.c.bf16 %v7050_v39, %v7050_v39 }
 0x50a   :  { %v7065_v42 = vpack.c.bf16 %v7049_v63, %v7049_v63  ;;  %v7067_v50 = vpack.c.bf16 %v7051_v44, %v7051_v44 }
 0x50c   :  { %8219 = vmatprep.mubr.bf16.mxu1 %v7065_v42  ;;  %8259 = vmatprep.mubr.bf16.mxu0 %v7067_v50 }
 0x50d   :  { %8220 = vmatmul.mubr.bf16.vlgmr.msra.gmra.mrb[36].mxu1 %v7064_v22  ;;  %8260 = vmatmul.mubr.bf16.vlgmr.msra.gmra.mrb[52].mxu0 %v7066_v43  ;;  %v9449_v43 = vld [vmem:[%s12383_s7 + $0x3c8] sm:$0xff]  }
 0x50e   :  { %9145 = vmatpush3.bf16.msra.mxu1 %v9414_v61  ;;  %9167 = vmatpush3.bf16.msra.mxu0 %v9415_v9  ;;  %v9447_v61 = vld [vmem:[%s12383_s7 + $0x380] sm:$0xff]   ;;  %v9448_v9 = vld [vmem:[%s12383_s7 + $0x348] sm:$0xff]  }
 0x50f   :  { %9146 = vmatprep.subr.bf16.mxu1 %v9416_v10  ;;  %9168 = vmatprep.subr.bf16.mxu0 %v9417_v47  ;;  %v9450_v10 = vld [vmem:[%s12383_s7 + $0x308] sm:$0xff]  }
 0x510   :  { %v9451_v47 = vld [vmem:[%s12383_s7 + $0x388] sm:$0xff]  }
 0x512   :  { %9147 = vmatpush3.bf16.msra.mxu1 %v9418_v18  ;;  %9169 = vmatpush3.bf16.msra.mxu0 %v9419_v2  ;;  %v9452_v18 = vld [vmem:[%s12383_s7 + $0x350] sm:$0xff]  }
 0x513   :  { %9148 = vmatprep.subr.bf16.mxu1 %v9420_v59  ;;  %9170 = vmatprep.subr.bf16.mxu0 %v9421_v28  ;;  %v9453_v2 = vld [vmem:[%s12383_s7 + $0x3d0] sm:$0xff]  }
 0x514   :  { %v9454_v59 = vld [vmem:[%s12383_s7 + $0x310] sm:$0xff]  }
 0x515   :  { %v9455_v28 = vld [vmem:[%s12383_s7 + $0x390] sm:$0xff]  }
 0x516   :  { %9149 = vmatpush3.bf16.msra.mxu1 %v9422_v4  ;;  %9171 = vmatpush3.bf16.msra.mxu0 %v9423_v1  ;;  %v9456_v4 = vld [vmem:[%s12383_s7 + $0x358] sm:$0xff]  }
 0x517   :  { %9150 = vmatprep.subr.bf16.mxu1 %v9424_v41  ;;  %9172 = vmatprep.subr.bf16.mxu0 %v9425_v13  ;;  %v9457_v1 = vld [vmem:[%s12383_s7 + $0x3d8] sm:$0xff]  }
 0x518   :  { %v9458_v41 = vld [vmem:[%s12383_s7 + $0x318] sm:$0xff]  }
 0x519   :  { %v9459_v13 = vld [vmem:[%s12383_s7 + $0x398] sm:$0xff]  }
 0x51a   :  { %9151 = vmatpush3.bf16.msra.mxu1 %v9426_v60  ;;  %9173 = vmatpush3.bf16.msra.mxu0 %v9427_v33  ;;  %v9460_v60 = vld [vmem:[%s12383_s7 + $0x360] sm:$0xff]  }
 0x51b   :  { %9152 = vmatprep.subr.bf16.mxu1 %v9428_v0  ;;  %9174 = vmatprep.subr.bf16.mxu0 %v9429_v3  ;;  %v9461_v33 = vld [vmem:[%s12383_s7 + $0x3e0] sm:$0xff]  }
 0x51c   :  { %v9462_v0 = vld [vmem:[%s12383_s7 + $0x320] sm:$0xff]  }
 0x51d   :  { %v9463_v3 = vld [vmem:[%s12383_s7 + $0x3a0] sm:$0xff]  }
 0x51e   :  { %9153 = vmatpush3.bf16.msra.mxu1 %v9430_v36  ;;  %9175 = vmatpush3.bf16.msra.mxu0 %v9431_v48  ;;  %v9464_v36 = vld [vmem:[%s12383_s7 + $0x368] sm:$0xff]  }
 0x51f   :  { %9154 = vmatprep.subr.bf16.mxu1 %v9432_v52  ;;  %9176 = vmatprep.subr.bf16.mxu0 %v9433_v8  ;;  %v9465_v48 = vld [vmem:[%s12383_s7 + $0x3e8] sm:$0xff]  }
 0x520   :  { %v9466_v52 = vld [vmem:[%s12383_s7 + $0x328] sm:$0xff]  }
 0x521   :  { %v9467_v8 = vld [vmem:[%s12383_s7 + $0x3a8] sm:$0xff]  }
 0x522   :  { %9155 = vmatpush3.bf16.msra.mxu1 %v9434_v11  ;;  %9177 = vmatpush3.bf16.msra.mxu0 %v9435_v29  ;;  %v9468_v11 = vld [vmem:[%s12383_s7 + $0x370] sm:$0xff]  }
 0x523   :  { %9156 = vmatprep.subr.bf16.mxu1 %v9436_v53  ;;  %9178 = vmatprep.subr.bf16.mxu0 %v9437_v26  ;;  %v9469_v29 = vld [vmem:[%s12383_s7 + $0x3f0] sm:$0xff]  }
 0x524   :  { %v9470_v53 = vld [vmem:[%s12383_s7 + $0x330] sm:$0xff]  }
 0x525   :  { %v9471_v26 = vld [vmem:[%s12383_s7 + $0x3b0] sm:$0xff]  }
 0x526   :  { %9157 = vmatpush3.bf16.msra.mxu1 %v9438_v27  ;;  %9179 = vmatpush3.bf16.msra.mxu0 %v9439_v17  ;;  %v9472_v27 = vld [vmem:[%s12383_s7 + $0x378] sm:$0xff]  }
 0x527   :  { %9158 = vmatprep.subr.bf16.mxu1 %v9440_v30  ;;  %9180 = vmatprep.subr.bf16.mxu0 %v9441_v51  ;;  %v9473_v17 = vld [vmem:[%s12383_s7 + $0x3f8] sm:$0xff]  }
 0x528   :  { %v9474_v30 = vld [vmem:[%s12383_s7 + $0x338] sm:$0xff]  }
 0x529   :  { %v9475_v51 = vld [vmem:[%s12383_s7 + $0x3b8] sm:$0xff]  }
 0x52a   :  { %9159 = vmatpush3.bf16.msra.mxu1 %v9442_v34  ;;  %9181 = vmatpush3.bf16.msra.mxu0 %v9443_v21  ;;  %v5557_v34 = vrot.slane %v12252_v58, %v5524_v37  ;;  %v5565_v21 = vrot.slane %v12252_v58, %v5532_v6 }
 0x52b   :  { %9188 = vmatprep.subr.bf16.mxu1 %v9444_v56  ;;  %9210 = vmatprep.subr.bf16.mxu0 %v9445_v19  ;;  %v5561_v56 = vrot.slane %v12252_v58, %v5528_v55  ;;  %v5569_v19 = vrot.slane %v12252_v58, %v5536_v7 }
 0x53c   :  { %v6914_v62 = vpop.f32.mrb[24].mxu1 }
 0x53d   :  { %v6915_v24 = vadd.f32 %v6914_v62, %v5541_v35  ;;  %v6955_v25 = vpop.f32.mrb[40].mxu0  ;;  %v6916_v49 = vpop.f32.mrb[25].mxu1 }
 0x53e   :  { %v6956_v54 = vadd.f32 %v6955_v25, %v5549_v40  ;;  %v6917_v38 = vadd.f32 %v6916_v49, %v5545_v23  ;;  %v6957_v12 = vpop.f32.mrb[41].mxu0  ;;  %v6918_v5 = vpop.f32.mrb[26].mxu1 }
 0x53f   :  { %v7052_v32 = vmax.f32 %v6915_v24, 0.0  ;;  %v6958_v46 = vadd.f32 %v6957_v12, %v5553_v57  ;;  %v6959_v39 = vpop.f32.mrb[42].mxu0  ;;  %v6919_v31 = vpop.f32.mrb[27].mxu1 }
 0x540   :  { %v7054_v15 = vmax.f32 %v6956_v54, 0.0  ;;  %v7053_v14 = vmax.f32 %v6917_v38, 0.0  ;;  %v6960_v63 = vpop.f32.mrb[43].mxu0 }
 0x541   :  { %v7055_v16 = vmax.f32 %v6958_v46, 0.0  ;;  %v7068_v42 = vpack.c.bf16 %v7052_v32, %v7052_v32 }
 0x542   :  { %v7069_v44 = vpack.c.bf16 %v7053_v14, %v7053_v14  ;;  %v7070_v22 = vpack.c.bf16 %v7054_v15, %v7054_v15  ;;  %v8888_v15 = vld [vmem:[%s12385_s8] ss:$0 sm:$0xff] }
 0x543   :  { %v7071_v50 = vpack.c.bf16 %v7055_v16, %v7055_v16 }
 0x544   :  { %8299 = vmatprep.mubr.bf16.mxu1 %v7069_v44 }
 0x545   :  { %8339 = vmatprep.mubr.bf16.mxu0 %v7071_v50  ;;  %8300 = vmatmul.mubr.bf16.vlgmr.msra.gmra.mrb[40].mxu1 %v7068_v42 }
 0x546   :  { %8340 = vmatmul.mubr.bf16.vlgmr.msra.gmra.mrb[56].mxu0 %v7070_v22  ;;  %9189 = vmatpush3.bf16.msra.mxu1 %v9446_v45 }
 0x547   :  { %9211 = vmatpush3.bf16.msra.mxu0 %v9447_v61  ;;  %9190 = vmatprep.subr.bf16.mxu1 %v9448_v9 }
 0x548   :  { %9212 = vmatprep.subr.bf16.mxu0 %v9449_v43 }
 0x54a   :  { %9191 = vmatpush3.bf16.msra.mxu1 %v9450_v10 }
 0x54b   :  { %9213 = vmatpush3.bf16.msra.mxu0 %v9451_v47  ;;  %9192 = vmatprep.subr.bf16.mxu1 %v9452_v18 }
 0x54c   :  { %9214 = vmatprep.subr.bf16.mxu0 %v9453_v2 }
 0x54e   :  { %9193 = vmatpush3.bf16.msra.mxu1 %v9454_v59 }
 0x54f   :  { %9215 = vmatpush3.bf16.msra.mxu0 %v9455_v28  ;;  %9194 = vmatprep.subr.bf16.mxu1 %v9456_v4 }
 0x550   :  { %9216 = vmatprep.subr.bf16.mxu0 %v9457_v1 }
 0x552   :  { %9195 = vmatpush3.bf16.msra.mxu1 %v9458_v41 }
 0x553   :  { %9217 = vmatpush3.bf16.msra.mxu0 %v9459_v13  ;;  %9196 = vmatprep.subr.bf16.mxu1 %v9460_v60 }
 0x554   :  { %9218 = vmatprep.subr.bf16.mxu0 %v9461_v33 }
 0x556   :  { %9197 = vmatpush3.bf16.msra.mxu1 %v9462_v0 }
 0x557   :  { %9219 = vmatpush3.bf16.msra.mxu0 %v9463_v3  ;;  %9198 = vmatprep.subr.bf16.mxu1 %v9464_v36 }
 0x558   :  { %9220 = vmatprep.subr.bf16.mxu0 %v9465_v48 }
 0x55a   :  { %9199 = vmatpush3.bf16.msra.mxu1 %v9466_v52 }
 0x55b   :  { %9221 = vmatpush3.bf16.msra.mxu0 %v9467_v8  ;;  %9200 = vmatprep.subr.bf16.mxu1 %v9468_v11 }
 0x55c   :  { %9222 = vmatprep.subr.bf16.mxu0 %v9469_v29 }
 0x55e   :  { %9201 = vmatpush3.bf16.msra.mxu1 %v9470_v53 }
 0x55f   :  { %9223 = vmatpush3.bf16.msra.mxu0 %v9471_v26  ;;  %9202 = vmatprep.subr.bf16.mxu1 %v9472_v27 }
 0x560   :  { %9224 = vmatprep.subr.bf16.mxu0 %v9473_v17 }
 0x562   :  { %9203 = vmatpush3.bf16.msra.mxu1 %v9474_v30 }
 0x563   :  { %9225 = vmatpush3.bf16.msra.mxu0 %v9475_v51 }
 0x574   :  { %v6996_v35 = vpop.f32.mrb[28].mxu1 }
 0x575   :  { %v6997_v40 = vadd.f32 %v6996_v35, %v5557_v34  ;;  %v7037_v23 = vpop.f32.mrb[44].mxu0  ;;  %v6998_v57 = vpop.f32.mrb[29].mxu1 }
 0x576   :  { %v7038_v62 = vadd.f32 %v7037_v23, %v5565_v21  ;;  %v6999_v24 = vadd.f32 %v6998_v57, %v5561_v56  ;;  %v7039_v25 = vpop.f32.mrb[45].mxu0  ;;  %v7000_v37 = vpop.f32.mrb[30].mxu1 }
 0x577   :  { %v7056_v49 = vmax.f32 %v6997_v40, 0.0  ;;  %v7040_v54 = vadd.f32 %v7039_v25, %v5569_v19  ;;  %v7041_v38 = vpop.f32.mrb[46].mxu0  ;;  %v7001_v6 = vpop.f32.mrb[31].mxu1 }
 0x578   :  { %v7058_v12 = vmax.f32 %v7038_v62, 0.0  ;;  %v7057_v5 = vmax.f32 %v6999_v24, 0.0  ;;  %v7042_v32 = vpop.f32.mrb[47].mxu0 }
 0x579   :  { %v7059_v55 = vmax.f32 %v7040_v54, 0.0  ;;  %v7072_v20 = vpack.c.bf16 %v7056_v49, %v7056_v49 }
 0x57a   :  { %v7073_v46 = vpack.c.bf16 %v7057_v5, %v7057_v5  ;;  %v7074_v7 = vpack.c.bf16 %v7058_v12, %v7058_v12 }
 0x57b   :  { %v7075_v39 = vpack.c.bf16 %v7059_v55, %v7059_v55 }
 0x57c   :  { %8379 = vmatprep.mubr.bf16.mxu1 %v7073_v46 }
 0x57d   :  { %8419 = vmatprep.mubr.bf16.mxu0 %v7075_v39  ;;  %8380 = vmatmul.mubr.bf16.vlgmr.msra.gmra.mrb[44].mxu1 %v7072_v20 }
 0x57e   :  { %8420 = vmatmul.mubr.bf16.vlgmr.msra.gmra.mrb[60].mxu0 %v7074_v7 }
 0x5a8   :  { %v9072_v58 = vpop.f32.mrb[32].mxu1  ;;  %v9094_v31 = vpop.f32.mrb[48].mxu0 }
 0x5a9   :  { %v9073_v14 = vpop.f32.mrb[33].mxu1  ;;  %v9095_v63 = vpop.f32.mrb[49].mxu0 }
 0x5aa   :  { %v9074_v16 = vadd.f32 %v9073_v14, %v9072_v58  ;;  %v9096_v44 = vadd.f32 %v9095_v63, %v9094_v31  ;;  %v9075_v45 = vpop.f32.mrb[34].mxu1  ;;  %v9097_v42 = vpop.f32.mrb[50].mxu0 }
 0x5ab   :  { %v9076_v50 = vpop.f32.mrb[35].mxu1  ;;  %v9098_v61 = vpop.f32.mrb[51].mxu0 }
 0x5ac   :  { %v8142_v9 = vadd.f32 %v9074_v16, %v8888_v15 }
 0x5ae   :  { %v8182_v22 = vadd.f32 %v9096_v44, %v8142_v9 }
 0x5e0   :  { %v9116_v43 = vpop.f32.mrb[36].mxu1  ;;  %v9138_v10 = vpop.f32.mrb[52].mxu0 }
 0x5e1   :  { %v9117_v47 = vpop.f32.mrb[37].mxu1  ;;  %v9139_v18 = vpop.f32.mrb[53].mxu0 }
 0x5e2   :  { %v9118_v2 = vadd.f32 %v9117_v47, %v9116_v43  ;;  %v9140_v59 = vadd.f32 %v9139_v18, %v9138_v10  ;;  %v9119_v28 = vpop.f32.mrb[38].mxu1  ;;  %v9141_v4 = vpop.f32.mrb[54].mxu0 }
 0x5e3   :  { %v9120_v1 = vpop.f32.mrb[39].mxu1  ;;  %v9142_v41 = vpop.f32.mrb[55].mxu0 }
 0x5e4   :  { %v8222_v13 = vadd.f32 %v9118_v2, %v8182_v22 }
 0x5e6   :  { %v8262_v60 = vadd.f32 %v9140_v59, %v8222_v13 }
 0x618   :  { %v9160_v33 = vpop.f32.mrb[40].mxu1 }
 0x619   :  { %v9182_v0 = vpop.f32.mrb[56].mxu0  ;;  %v9161_v3 = vpop.f32.mrb[41].mxu1 }
 0x61a   :  { %v9162_v36 = vadd.f32 %v9161_v3, %v9160_v33  ;;  %v9183_v48 = vpop.f32.mrb[57].mxu0  ;;  %v9163_v52 = vpop.f32.mrb[42].mxu1 }
 0x61b   :  { %v9184_v8 = vadd.f32 %v9183_v48, %v9182_v0  ;;  %v9185_v11 = vpop.f32.mrb[58].mxu0  ;;  %v9164_v29 = vpop.f32.mrb[43].mxu1 }
 0x61c   :  { %v8302_v53 = vadd.f32 %v9162_v36, %v8262_v60  ;;  %v9186_v26 = vpop.f32.mrb[59].mxu0 }
 0x61e   :  { %v8342_v27 = vadd.f32 %v9184_v8, %v8302_v53 }
 0x650   :  { %v9204_v17 = vpop.f32.mrb[44].mxu1 }
 0x651   :  { %v9226_v30 = vpop.f32.mrb[60].mxu0  ;;  %v9205_v51 = vpop.f32.mrb[45].mxu1 }
 0x652   :  { %v9206_v34 = vadd.f32 %v9205_v51, %v9204_v17  ;;  %v9227_v21 = vpop.f32.mrb[61].mxu0  ;;  %v9207_v56 = vpop.f32.mrb[46].mxu1 }
 0x653   :  { %v9228_v19 = vadd.f32 %v9227_v21, %v9226_v30  ;;  %v9229_v35 = vpop.f32.mrb[62].mxu0  ;;  %v9208_v40 = vpop.f32.mrb[47].mxu1 }
 0x654   :  { %v8382_v23 = vadd.f32 %v9206_v34, %v8342_v27  ;;  %v9230_v57 = vpop.f32.mrb[63].mxu0 }
 0x656   :  { %v8422_v62 = vadd.f32 %v9228_v19, %v8382_v23 }
 0x658   :  { %v8428_v24 = vsel %vm8427_vm2, %v8422_v62, -inf }
 0x659   :  { %8429 = vmax.xlane.f32.xlu1 %v8428_v24 }
 0x6e6   :  { %v8430_v25 = vpop.xlane.xlu1 %8429 }
 0x6e7   :  { %v8431_v37 = vsub.f32 %v8422_v62, %v8430_v25 }
 0x6e9   :  { %v8432_v49 = vmul.f32 1.442695, %v8431_v37 }
 0x6eb   :  { %9476 = vpow2.f32 %v8432_v49 }
 0x6f5   :  { %v9477_v54 = vpop.eup %9476 }
 0x6f6   :  { %v8434_v38 = vsel %vm8427_vm2, %v9477_v54, 0.0 }
 0x6f7   :  { %8435 = vadd.xlane.f32.xlu0 %v8434_v38 }
 0x784   :  { %v8436_v6 = vpop.xlane.xlu0 %8435 }
 0x785   :  { %9478 = vlog2.f32 %v8436_v6 }
 0x78f   :  { %v9479_v12 = vpop.eup %9478 }
 0x790   :  { %v8438_v5 = vmul.f32 0.6931472, %v9479_v12 }
 0x792   :  { %v8439_v32 = vsub.f32 %v8431_v37, %v8438_v5 }
 0x794   :  { %8440 = vst.msk [vmem:[%s12386_s9] sm:$0xff] %vm8427_vm2, %v8439_v32 }

</bundles_post_ra>
